<compile_context>
chip_gen: v7x
topology: tpu7x:2x2x1
jax: 0.10.0
libtpu: 0.0.40
codegen_flags: <defaults>
</compile_context>

<pallas_src>
import functools

import jax
import jax.numpy as jnp
from jax.experimental import pallas as pl
from jax.experimental.pallas import tpu as pltpu

EPS = 1e-5
LANE = 128


def _round_up(x, m):
    return (x + m - 1) // m * m


# ----------------------------------------------------------------------------
# Pallas kernels
# ----------------------------------------------------------------------------
def _conv1_bn_kernel(x_ref, s1_ref, b1_ref, w1_ref, s2_ref, b2_ref,
                     o_ref, act_ref, *, stride, Ho, Wo, row_blk):
    """Fused bn1+relu1 -> conv1 (3x3, stride) -> bn2+relu2, halo'd output.

    x_ref  : (S*S, Hq, Wq, Cin_p)    f32  phase-split, spatially padded raw x
    w1_ref : (9, Cin_p, tn)          bf16 conv1 taps (kh*3+kw major)
    o_ref  : (1, Ho+2, Wo+2, tn)     bf16 act2 with 1-pixel zero halo baked in
    act_ref: (S*S, Hq, Wq, Cin_p)    bf16 VMEM scratch holding relu(bn1(x))
    """
    S = stride
    Hq = x_ref.shape[1]
    Cin_p = x_ref.shape[3]
    tn = o_ref.shape[3]

    # Prologue: bn1 + relu1 into a bf16 VMEM scratch (never written to HBM).
    # Only needed once per image; reused across Cout tiles (inner grid axis).
    @pl.when(pl.program_id(1) == 0)
    def _prologue():
        s1 = s1_ref[...]                      # (1, Cin_p), hoisted
        b1 = b1_ref[...]
        for ph in range(S * S):
            for h in range(Hq):
                act_ref[ph, h] = jnp.maximum(
                    x_ref[ph, h] * s1 + b1, 0.0).astype(act_ref.dtype)

    # Zero the whole output block once (cheap lane-dense VMEM splat); this is
    # what bakes the conv2 zero-padding halo into the conv1 output.
    o_ref[...] = jnp.zeros(o_ref.shape, o_ref.dtype)

    s2 = s2_ref[...]                          # (1, tn)
    b2 = b2_ref[...]
    for ho0 in range(0, Ho, row_blk):
        rb = min(row_blk, Ho - ho0)
        acc = jnp.zeros((rb * Wo, tn), jnp.float32)
        for t in range(9):                    # 9 conv taps -> 9 MXU matmuls
            kh, kw = divmod(t, 3)
            ph = (kh % S) * S + (kw % S)
            win = act_ref[ph, pl.ds(ho0 + kh // S, rb), pl.ds(kw // S, Wo), :]
            acc = acc + jnp.dot(win.reshape(rb * Wo, Cin_p), w1_ref[t],
                                preferred_element_type=jnp.float32)
        out = jnp.maximum(acc * s2 + b2, 0.0)  # fused bn2 + relu2 epilogue
        o_ref[0, pl.ds(1 + ho0, rb), pl.ds(1, Wo), :] = (
            out.reshape(rb, Wo, tn).astype(o_ref.dtype))


def _conv2_add_kernel_eq(a2_ref, w2_ref, xsc_ref, o_ref, *, Ho, Wo, row_blk):
    """Fused conv2 (3x3, stride 1) + identity-shortcut residual add."""
    Cmid = a2_ref.shape[3]
    tn = o_ref.shape[3]
    for ho0 in range(0, Ho, row_blk):
        rb = min(row_blk, Ho - ho0)
        acc = jnp.zeros((rb * Wo, tn), jnp.float32)
        for t in range(9):
            kh, kw = divmod(t, 3)
            win = a2_ref[0, pl.ds(ho0 + kh, rb), pl.ds(kw, Wo), :]
            acc = acc + jnp.dot(win.reshape(rb * Wo, Cmid), w2_ref[t],
                                preferred_element_type=jnp.float32)
        sc = xsc_ref[0, pl.ds(ho0, rb), :, :]             # f32 identity shortcut
        acc = acc + sc.reshape(rb * Wo, tn)
        o_ref[0, ho0:ho0 + rb] = acc.reshape(rb, Wo, tn).astype(o_ref.dtype)


def _conv2_add_kernel_proj(a2_ref, w2_ref, xs_ref, s1_ref, b1_ref, wsc_ref,
                           o_ref, *, Ho, Wo, row_blk):
    """Fused conv2 (3x3) + [bn1+relu1 -> 1x1 projection shortcut] + add."""
    Cmid = a2_ref.shape[3]
    Cin_p = xs_ref.shape[3]
    tn = o_ref.shape[3]
    s1 = s1_ref[...]
    b1 = b1_ref[...]
    for ho0 in range(0, Ho, row_blk):
        rb = min(row_blk, Ho - ho0)
        acc = jnp.zeros((rb * Wo, tn), jnp.float32)
        for t in range(9):
            kh, kw = divmod(t, 3)
            win = a2_ref[0, pl.ds(ho0 + kh, rb), pl.ds(kw, Wo), :]
            acc = acc + jnp.dot(win.reshape(rb * Wo, Cmid), w2_ref[t],
                                preferred_element_type=jnp.float32)
        xs = xs_ref[0, pl.ds(ho0, rb), :, :]              # strided raw x (f32)
        a1 = jnp.maximum(xs * s1 + b1, 0.0).astype(jnp.bfloat16)
        acc = acc + jnp.dot(a1.reshape(rb * Wo, Cin_p), wsc_ref[...],
                            preferred_element_type=jnp.float32)
        o_ref[0, ho0:ho0 + rb] = acc.reshape(rb, Wo, tn).astype(o_ref.dtype)


# ----------------------------------------------------------------------------
# pallas_call wrappers
# ----------------------------------------------------------------------------
def _compiler_params():
    return pltpu.CompilerParams(
        dimension_semantics=("parallel", "arbitrary"),
        vmem_limit_bytes=48 * 1024 * 1024)


def _pick_tn(cin_p, cout_p):
    """Largest Cout tile (multiple of 128, dividing cout_p) whose
    double-buffered 3x3 weight block fits a 16 MiB VMEM budget.  A single
    tile keeps the weights resident in VMEM across the whole batch."""
    budget = 16 * 1024 * 1024
    n_tiles = cout_p // LANE
    for k in range(1, n_tiles + 1):
        if n_tiles % k:
            continue
        tn = cout_p // k
        if 2 * 9 * cin_p * tn * 2 <= budget:
            return tn
    return LANE


def _pick_row_blk(Ho, Wo, tn):
    """Keep each accumulator tile around 128 KiB of f32 (no vreg spilling)
    while giving the MXU ~256-row left operands when possible."""
    target_rows = max(Wo, min(256, (128 * 1024 // 4) // max(tn, 1)))
    return max(1, min(Ho, target_rows // max(Wo, 1)))


def conv1_bn_fused(x_ph, s1, b1, w1t, s2, b2, *, stride, Ho, Wo):
    S = stride
    nss, Hq, Wq, cin_p = x_ph.shape
    n_img = nss // (S * S)
    cout_p = w1t.shape[2]
    tn = _pick_tn(cin_p, cout_p)
    row_blk = _pick_row_blk(Ho, Wo, tn)
    kernel = functools.partial(_conv1_bn_kernel, stride=S, Ho=Ho, Wo=Wo,
                               row_blk=row_blk)
    return pl.pallas_call(
        kernel,
        out_shape=jax.ShapeDtypeStruct((n_img, Ho + 2, Wo + 2, cout_p),
                                       jnp.bfloat16),
        grid=(n_img, cout_p // tn),
        in_specs=[
            pl.BlockSpec((S * S, Hq, Wq, cin_p), lambda n, j: (n, 0, 0, 0)),
            pl.BlockSpec((1, cin_p), lambda n, j: (0, 0)),
            pl.BlockSpec((1, cin_p), lambda n, j: (0, 0)),
            pl.BlockSpec((9, cin_p, tn), lambda n, j: (0, 0, j)),
            pl.BlockSpec((1, tn), lambda n, j: (0, j)),
            pl.BlockSpec((1, tn), lambda n, j: (0, j)),
        ],
        out_specs=pl.BlockSpec((1, Ho + 2, Wo + 2, tn),
                               lambda n, j: (n, 0, 0, j)),
        scratch_shapes=[pltpu.VMEM((S * S, Hq, Wq, cin_p), jnp.bfloat16)],
        compiler_params=_compiler_params(),
    )(x_ph, s1, b1, w1t, s2, b2)


def conv2_residual_eq(a2p, w2t, x_id):
    n_img, hp2, wp2, cmid = a2p.shape
    Ho, Wo = hp2 - 2, wp2 - 2
    cout_p = w2t.shape[2]
    tn = _pick_tn(cmid, cout_p)
    row_blk = _pick_row_blk(Ho, Wo, tn)
    kernel = functools.partial(_conv2_add_kernel_eq, Ho=Ho, Wo=Wo,
                               row_blk=row_blk)
    return pl.pallas_call(
        kernel,
        out_shape=jax.ShapeDtypeStruct((n_img, Ho, Wo, cout_p), jnp.float32),
        grid=(n_img, cout_p // tn),
        in_specs=[
            pl.BlockSpec((1, hp2, wp2, cmid), lambda n, j: (n, 0, 0, 0)),
            pl.BlockSpec((9, cmid, tn), lambda n, j: (0, 0, j)),
            pl.BlockSpec((1, Ho, Wo, tn), lambda n, j: (n, 0, 0, j)),
        ],
        out_specs=pl.BlockSpec((1, Ho, Wo, tn), lambda n, j: (n, 0, 0, j)),
        compiler_params=_compiler_params(),
    )(a2p, w2t, x_id)


def conv2_residual_proj(a2p, w2t, x_s, s1, b1, wscm):
    n_img, hp2, wp2, cmid = a2p.shape
    Ho, Wo = hp2 - 2, wp2 - 2
    cin_p = x_s.shape[3]
    cout_p = w2t.shape[2]
    tn = _pick_tn(cmid, cout_p)
    row_blk = _pick_row_blk(Ho, Wo, tn)
    kernel = functools.partial(_conv2_add_kernel_proj, Ho=Ho, Wo=Wo,
                               row_blk=row_blk)
    return pl.pallas_call(
        kernel,
        out_shape=jax.ShapeDtypeStruct((n_img, Ho, Wo, cout_p), jnp.float32),
        grid=(n_img, cout_p // tn),
        in_specs=[
            pl.BlockSpec((1, hp2, wp2, cmid), lambda n, j: (n, 0, 0, 0)),
            pl.BlockSpec((9, cmid, tn), lambda n, j: (0, 0, j)),
            pl.BlockSpec((1, Ho, Wo, cin_p), lambda n, j: (n, 0, 0, 0)),
            pl.BlockSpec((1, cin_p), lambda n, j: (0, 0)),
            pl.BlockSpec((1, cin_p), lambda n, j: (0, 0)),
            pl.BlockSpec((cin_p, tn), lambda n, j: (0, j)),
        ],
        out_specs=pl.BlockSpec((1, Ho, Wo, tn), lambda n, j: (n, 0, 0, j)),
        compiler_params=_compiler_params(),
    )(a2p, w2t, x_s, s1, b1, wscm)


# ----------------------------------------------------------------------------
# JAX glue: parameter folding / channel padding / phase split
# ----------------------------------------------------------------------------
def _bn_fold(gamma, beta, mean, var, cp):
    scale = gamma / jnp.sqrt(var + EPS)
    bias = beta - mean * scale
    scale = jnp.pad(scale, (0, cp - scale.shape[0]), constant_values=1.0)
    bias = jnp.pad(bias, (0, cp - bias.shape[0]))
    return (scale.reshape(1, cp).astype(jnp.float32),
            bias.reshape(1, cp).astype(jnp.float32))


def _conv3x3_taps(w_oihw, cin_p, cout_p):
    cout, cin, _, _ = w_oihw.shape
    w = jnp.transpose(w_oihw, (2, 3, 1, 0)).reshape(9, cin, cout)
    w = jnp.pad(w, ((0, 0), (0, cin_p - cin), (0, cout_p - cout)))
    return w.astype(jnp.bfloat16)


def _conv1x1_mat(w_oihw, cin_p, cout_p):
    cout, cin, _, _ = w_oihw.shape
    w = jnp.transpose(w_oihw, (2, 3, 1, 0)).reshape(cin, cout)
    w = jnp.pad(w, ((0, cin_p - cin), (0, cout_p - cout)))
    return w.astype(jnp.bfloat16)


def _phase_split(xpad, stride):
    """(N, Hp, Wp, C) -> (N*S*S, ceil(Hp/S), ceil(Wp/S), C), phase-major.

    Lets the conv kernel use only unit-stride slices for strided convolutions.
    """
    n, hp, wp, c = xpad.shape
    s = stride
    hq, wq = -(-hp // s), -(-wp // s)
    xpp = jnp.pad(xpad, ((0, 0), (0, s * hq - hp), (0, s * wq - wp), (0, 0)))
    xph = xpp.reshape(n, hq, s, wq, s, c).transpose(0, 2, 4, 1, 3, 5)
    return xph.reshape(n * s * s, hq, wq, c)


# ----------------------------------------------------------------------------
# BasicBlock forward (Pallas)
# ----------------------------------------------------------------------------
def basic_block_forward(x_nchw, p, stride, equal_in_out):
    if equal_in_out and stride != 1:
        raise ValueError("equalInOut with stride > 1 is unsupported (the "
                         "PyTorch module's residual add would fail too).")

    x = jnp.transpose(x_nchw, (0, 2, 3, 1)).astype(jnp.float32)     # NHWC
    n, h, w, cin = x.shape
    cout = p["w1"].shape[0]
    cin_p = _round_up(cin, LANE)
    cout_p = _round_up(cout, LANE)
    ho = (h - 1) // stride + 1
    wo = (w - 1) // stride + 1

    # channel pad -> every kernel operand / output is lane-dense
    x_cp = jnp.pad(x, ((0, 0), (0, 0), (0, 0), (0, cin_p - cin)))

    s1, b1 = _bn_fold(p["gamma1"], p["beta1"], p["mean1"], p["var1"], cin_p)
    s2, b2 = _bn_fold(p["gamma2"], p["beta2"], p["mean2"], p["var2"], cout_p)

    # spatial pad for conv1; the pad value is chosen per-channel so that the
    # in-kernel bn1+relu1 maps it to exactly 0 (== zero-padding relu(bn1(x))).
    pad_val = -(b1 / s1)                                            # (1, cin_p)
    xpad = jnp.pad(x_cp - pad_val, ((0, 0), (1, 1), (1, 1), (0, 0))) + pad_val
    x_ph = _phase_split(xpad, stride)

    w1t = _conv3x3_taps(p["w1"], cin_p, cout_p)
    # act2p already carries the 1-pixel zero halo needed by conv2 (no XLA pad).
    act2p = conv1_bn_fused(x_ph, s1, b1, w1t, s2, b2,
                           stride=stride, Ho=ho, Wo=wo)             # bf16 NHWC

    # TODO(synk): dropout (dropRate > 0, training) not implemented; default
    # dropRate=0.0 makes it a no-op.

    w2t = _conv3x3_taps(p["w2"], cout_p, cout_p)

    if equal_in_out:
        out = conv2_residual_eq(act2p, w2t, x_cp)
    else:
        x_s = x_cp[:, ::stride, ::stride, :][:, :ho, :wo, :]
        wscm = _conv1x1_mat(p["w_sc"], cin_p, cout_p)
        out = conv2_residual_proj(act2p, w2t, x_s, s1, b1, wscm)

    out = out[:, :, :, :cout]
    return jnp.transpose(out, (0, 3, 1, 2))                         # NCHW


# ----------------------------------------------------------------------------
# Pure-JAX reference (f32, HIGHEST precision)
# ----------------------------------------------------------------------------
def _conv_ref(x_nhwc, w_oihw, stride, padding):
    w_hwio = jnp.transpose(w_oihw, (2, 3, 1, 0))
    return jax.lax.conv_general_dilated(
        x_nhwc, w_hwio, (stride, stride),
        ((padding, padding), (padding, padding)),
        dimension_numbers=("NHWC", "HWIO", "NHWC"),
        precision=jax.lax.Precision.HIGHEST)


def reference_forward(x_nchw, p, stride, equal_in_out):
    x = jnp.transpose(x_nchw, (0, 2, 3, 1)).astype(jnp.float32)

    def bn_relu_ref(h, g, b, m, v):
        return jnp.maximum((h - m) / jnp.sqrt(v + EPS) * g + b, 0.0)

    act1 = bn_relu_ref(x, p["gamma1"], p["beta1"], p["mean1"], p["var1"])
    y1 = _conv_ref(act1, p["w1"], stride, 1)
    act2 = bn_relu_ref(y1, p["gamma2"], p["beta2"], p["mean2"], p["var2"])
    y2 = _conv_ref(act2, p["w2"], 1, 1)
    sc = x if equal_in_out else _conv_ref(act1, p["w_sc"], stride, 0)
    return jnp.transpose(sc + y2, (0, 3, 1, 2))


# ----------------------------------------------------------------------------
# Deterministic parameters (mirrors BasicBlock.__init__ shapes)
# ----------------------------------------------------------------------------
def make_params(key, in_channels, out_channels):
    keys = jax.random.split(key, 9)
    p = {
        "gamma1": jax.random.uniform(keys[0], (in_channels,), jnp.float32, 0.5, 1.5),
        "beta1":  jax.random.normal(keys[1], (in_channels,), jnp.float32) * 0.1,
        "mean1":  jax.random.normal(keys[2], (in_channels,), jnp.float32) * 0.1,
        "var1":   jax.random.uniform(keys[3], (in_channels,), jnp.float32, 0.5, 1.5),
        "w1":     jax.random.normal(keys[4], (out_channels, in_channels, 3, 3),
                                    jnp.float32) * 0.1,
        "gamma2": jax.random.uniform(keys[5], (out_channels,), jnp.float32, 0.5, 1.5),
        "beta2":  jax.random.normal(keys[6], (out_channels,), jnp.float32) * 0.1,
        "mean2":  jnp.zeros((out_channels,), jnp.float32),
        "var2":   jnp.ones((out_channels,), jnp.float32),
        "w2":     jax.random.normal(keys[7], (out_channels, out_channels, 3, 3),
                                    jnp.float32) * 0.1,
    }
    if in_channels != out_channels:
        p["w_sc"] = jax.random.normal(keys[8], (out_channels, in_channels, 1, 1),
                                      jnp.float32) * 0.1
    return p


if __name__ == "__main__":
    key = jax.random.PRNGKey(0)

    configs = [
        (4, 8, 2),   # projection-shortcut path (not equalInOut, stride 2)
        (8, 8, 1),   # identity-shortcut path  (equalInOut, stride 1)
    ]
    for cin, cout, stride in configs:
        equal = cin == cout
        k_x, k_p, key = jax.random.split(key, 3)
        x = jax.random.normal(k_x, (2, cin, 16, 16), jnp.float32)   # NCHW
        params = make_params(k_p, cin, cout)

        fwd = jax.jit(functools.partial(basic_block_forward,
                                        stride=stride, equal_in_out=equal))
        out = jax.block_until_ready(fwd(x, params))
        ref = jax.block_until_ready(reference_forward(x, params, stride, equal))

        ho = (16 - 1) // stride + 1
        assert out.shape == (2, cout, ho, ho), out.shape
        err = float(jnp.max(jnp.abs(out - ref)))
        # bf16 MXU operands vs. an f32 HIGHEST-precision reference -> ~1e-2 diffs
        assert jnp.allclose(out, ref, atol=5e-2, rtol=5e-2), (cin, cout, stride, err)

    print("KERNEL_OK")
</pallas_src>

<mosaic_0001>
module attributes {stable_mosaic.version = 11 : i64} {
  func.func @_conv1_bn_kernel(%arg0: i32, %arg1: i32, %arg2: memref<4x9x9x128xf32, #tpu.memory_space<vmem>>, %arg3: memref<1x128xf32, #tpu.memory_space<vmem>>, %arg4: memref<1x128xf32, #tpu.memory_space<vmem>>, %arg5: memref<9x128x128xbf16, #tpu.memory_space<vmem>>, %arg6: memref<1x128xf32, #tpu.memory_space<vmem>>, %arg7: memref<1x128xf32, #tpu.memory_space<vmem>>, %arg8: memref<1x10x10x128xbf16, #tpu.memory_space<vmem>>, %arg9: memref<4x9x9x128xbf16, #tpu.memory_space<vmem>>) attributes {dimension_semantics = [#tpu.dimension_semantics<parallel>, #tpu.dimension_semantics<arbitrary>], iteration_bounds = array<i64: 2, 1>, scalar_prefetch = 0 : i64, scratch_operands = 1 : i64, tpu.core_type = #tpu.core_type<tc>, window_params = [{transform_indices = @transform_0, window_bounds = array<i64: 4, 9, 9, 128>}, {pipeline_mode = #tpu.pipeline_mode<synchronous>, transform_indices = @transform_1, window_bounds = array<i64: 1, 128>}, {pipeline_mode = #tpu.pipeline_mode<synchronous>, transform_indices = @transform_2, window_bounds = array<i64: 1, 128>}, {transform_indices = @transform_3, window_bounds = array<i64: 9, 128, 128>}, {transform_indices = @transform_4, window_bounds = array<i64: 1, 128>}, {transform_indices = @transform_5, window_bounds = array<i64: 1, 128>}, {transform_indices = @transform_6, window_bounds = array<i64: 1, 10, 10, 128>}]} {
    %c0_i32 = arith.constant 0 : i32
    %0 = arith.cmpi eq, %arg1, %c0_i32 : i32
    %1 = arith.extui %0 : i1 to i32
    %c0_i32_0 = arith.constant 0 : i32
    %2 = arith.cmpi ne, %1, %c0_i32_0 : i32
    scf.if %2 {
      %c0_78 = arith.constant 0 : index
      %c0_79 = arith.constant 0 : index
      %82 = vector.load %arg3[%c0_78, %c0_79] : memref<1x128xf32, #tpu.memory_space<vmem>>, vector<1x128xf32>
      %c0_80 = arith.constant 0 : index
      %c0_81 = arith.constant 0 : index
      %83 = vector.load %arg4[%c0_80, %c0_81] : memref<1x128xf32, #tpu.memory_space<vmem>>, vector<1x128xf32>
      %c0_82 = arith.constant 0 : index
      %c0_83 = arith.constant 0 : index
      %c0_84 = arith.constant 0 : index
      %c0_85 = arith.constant 0 : index
      %84 = vector.load %arg2[%c0_82, %c0_83, %c0_84, %c0_85] : memref<4x9x9x128xf32, #tpu.memory_space<vmem>>, vector<1x1x9x128xf32>
      %85 = vector.shape_cast %84 : vector<1x1x9x128xf32> to vector<9x128xf32>
      %86 = vector.broadcast %82 : vector<1x128xf32> to vector<9x128xf32>
      %87 = arith.mulf %85, %86 : vector<9x128xf32>
      %88 = vector.broadcast %83 : vector<1x128xf32> to vector<9x128xf32>
      %89 = arith.addf %87, %88 : vector<9x128xf32>
      %cst_86 = arith.constant 0.000000e+00 : f32
      %90 = vector.broadcast %cst_86 : f32 to vector<9x128xf32>
      %91 = arith.maximumf %89, %90 : vector<9x128xf32>
      %92 = arith.truncf %91 : vector<9x128xf32> to vector<9x128xbf16>
      %c0_87 = arith.constant 0 : index
      %c0_88 = arith.constant 0 : index
      %c0_89 = arith.constant 0 : index
      %c0_90 = arith.constant 0 : index
      %93 = vector.load %arg9[%c0_87, %c0_88, %c0_89, %c0_90] : memref<4x9x9x128xbf16, #tpu.memory_space<vmem>>, vector<1x1x9x128xbf16>
      %94 = vector.shape_cast %93 : vector<1x1x9x128xbf16> to vector<9x128xbf16>
      %95 = vector.shape_cast %92 : vector<9x128xbf16> to vector<1x1x9x128xbf16>
      tpu.vector_store %arg9[%c0_87, %c0_88, %c0_89, %c0_90], %95 {strides = array<i32>} : memref<4x9x9x128xbf16, #tpu.memory_space<vmem>>, vector<1x1x9x128xbf16>,
      %c0_91 = arith.constant 0 : index
      %c1_92 = arith.constant 1 : index
      %c0_93 = arith.constant 0 : index
      %c0_94 = arith.constant 0 : index
      %96 = vector.load %arg2[%c0_91, %c1_92, %c0_93, %c0_94] : memref<4x9x9x128xf32, #tpu.memory_space<vmem>>, vector<1x1x9x128xf32>
      %97 = vector.shape_cast %96 : vector<1x1x9x128xf32> to vector<9x128xf32>
      %98 = vector.broadcast %82 : vector<1x128xf32> to vector<9x128xf32>
      %99 = arith.mulf %97, %98 : vector<9x128xf32>
      %100 = vector.broadcast %83 : vector<1x128xf32> to vector<9x128xf32>
      %101 = arith.addf %99, %100 : vector<9x128xf32>
      %cst_95 = arith.constant 0.000000e+00 : f32
      %102 = vector.broadcast %cst_95 : f32 to vector<9x128xf32>
      %103 = arith.maximumf %101, %102 : vector<9x128xf32>
      %104 = arith.truncf %103 : vector<9x128xf32> to vector<9x128xbf16>
      %c0_96 = arith.constant 0 : index
      %c1_97 = arith.constant 1 : index
      %c0_98 = arith.constant 0 : index
      %c0_99 = arith.constant 0 : index
      %105 = vector.load %arg9[%c0_96, %c1_97, %c0_98, %c0_99] : memref<4x9x9x128xbf16, #tpu.memory_space<vmem>>, vector<1x1x9x128xbf16>
      %106 = vector.shape_cast %105 : vector<1x1x9x128xbf16> to vector<9x128xbf16>
      %107 = vector.shape_cast %104 : vector<9x128xbf16> to vector<1x1x9x128xbf16>
      tpu.vector_store %arg9[%c0_96, %c1_97, %c0_98, %c0_99], %107 {strides = array<i32>} : memref<4x9x9x128xbf16, #tpu.memory_space<vmem>>, vector<1x1x9x128xbf16>,
      %c0_100 = arith.constant 0 : index
      %c2_101 = arith.constant 2 : index
      %c0_102 = arith.constant 0 : index
      %c0_103 = arith.constant 0 : index
      %108 = vector.load %arg2[%c0_100, %c2_101, %c0_102, %c0_103] : memref<4x9x9x128xf32, #tpu.memory_space<vmem>>, vector<1x1x9x128xf32>
      %109 = vector.shape_cast %108 : vector<1x1x9x128xf32> to vector<9x128xf32>
      %110 = vector.broadcast %82 : vector<1x128xf32> to vector<9x128xf32>
      %111 = arith.mulf %109, %110 : vector<9x128xf32>
      %112 = vector.broadcast %83 : vector<1x128xf32> to vector<9x128xf32>
      %113 = arith.addf %111, %112 : vector<9x128xf32>
      %cst_104 = arith.constant 0.000000e+00 : f32
      %114 = vector.broadcast %cst_104 : f32 to vector<9x128xf32>
      %115 = arith.maximumf %113, %114 : vector<9x128xf32>
      %116 = arith.truncf %115 : vector<9x128xf32> to vector<9x128xbf16>
      %c0_105 = arith.constant 0 : index
      %c2_106 = arith.constant 2 : index
      %c0_107 = arith.constant 0 : index
      %c0_108 = arith.constant 0 : index
      %117 = vector.load %arg9[%c0_105, %c2_106, %c0_107, %c0_108] : memref<4x9x9x128xbf16, #tpu.memory_space<vmem>>, vector<1x1x9x128xbf16>
      %118 = vector.shape_cast %117 : vector<1x1x9x128xbf16> to vector<9x128xbf16>
      %119 = vector.shape_cast %116 : vector<9x128xbf16> to vector<1x1x9x128xbf16>
      tpu.vector_store %arg9[%c0_105, %c2_106, %c0_107, %c0_108], %119 {strides = array<i32>} : memref<4x9x9x128xbf16, #tpu.memory_space<vmem>>, vector<1x1x9x128xbf16>,
      %c0_109 = arith.constant 0 : index
      %c3_110 = arith.constant 3 : index
      %c0_111 = arith.constant 0 : index
      %c0_112 = arith.constant 0 : index
      %120 = vector.load %arg2[%c0_109, %c3_110, %c0_111, %c0_112] : memref<4x9x9x128xf32, #tpu.memory_space<vmem>>, vector<1x1x9x128xf32>
      %121 = vector.shape_cast %120 : vector<1x1x9x128xf32> to vector<9x128xf32>
      %122 = vector.broadcast %82 : vector<1x128xf32> to vector<9x128xf32>
      %123 = arith.mulf %121, %122 : vector<9x128xf32>
      %124 = vector.broadcast %83 : vector<1x128xf32> to vector<9x128xf32>
      %125 = arith.addf %123, %124 : vector<9x128xf32>
      %cst_113 = arith.constant 0.000000e+00 : f32
      %126 = vector.broadcast %cst_113 : f32 to vector<9x128xf32>
      %127 = arith.maximumf %125, %126 : vector<9x128xf32>
      %128 = arith.truncf %127 : vector<9x128xf32> to vector<9x128xbf16>
      %c0_114 = arith.constant 0 : index
      %c3_115 = arith.constant 3 : index
      %c0_116 = arith.constant 0 : index
      %c0_117 = arith.constant 0 : index
      %129 = vector.load %arg9[%c0_114, %c3_115, %c0_116, %c0_117] : memref<4x9x9x128xbf16, #tpu.memory_space<vmem>>, vector<1x1x9x128xbf16>
      %130 = vector.shape_cast %129 : vector<1x1x9x128xbf16> to vector<9x128xbf16>
      %131 = vector.shape_cast %128 : vector<9x128xbf16> to vector<1x1x9x128xbf16>
      tpu.vector_store %arg9[%c0_114, %c3_115, %c0_116, %c0_117], %131 {strides = array<i32>} : memref<4x9x9x128xbf16, #tpu.memory_space<vmem>>, vector<1x1x9x128xbf16>,
      %c0_118 = arith.constant 0 : index
      %c4_119 = arith.constant 4 : index
      %c0_120 = arith.constant 0 : index
      %c0_121 = arith.constant 0 : index
      %132 = vector.load %arg2[%c0_118, %c4_119, %c0_120, %c0_121] : memref<4x9x9x128xf32, #tpu.memory_space<vmem>>, vector<1x1x9x128xf32>
      %133 = vector.shape_cast %132 : vector<1x1x9x128xf32> to vector<9x128xf32>
      %134 = vector.broadcast %82 : vector<1x128xf32> to vector<9x128xf32>
      %135 = arith.mulf %133, %134 : vector<9x128xf32>
      %136 = vector.broadcast %83 : vector<1x128xf32> to vector<9x128xf32>
      %137 = arith.addf %135, %136 : vector<9x128xf32>
      %cst_122 = arith.constant 0.000000e+00 : f32
      %138 = vector.broadcast %cst_122 : f32 to vector<9x128xf32>
      %139 = arith.maximumf %137, %138 : vector<9x128xf32>
      %140 = arith.truncf %139 : vector<9x128xf32> to vector<9x128xbf16>
      %c0_123 = arith.constant 0 : index
      %c4_124 = arith.constant 4 : index
      %c0_125 = arith.constant 0 : index
      %c0_126 = arith.constant 0 : index
      %141 = vector.load %arg9[%c0_123, %c4_124, %c0_125, %c0_126] : memref<4x9x9x128xbf16, #tpu.memory_space<vmem>>, vector<1x1x9x128xbf16>
      %142 = vector.shape_cast %141 : vector<1x1x9x128xbf16> to vector<9x128xbf16>
      %143 = vector.shape_cast %140 : vector<9x128xbf16> to vector<1x1x9x128xbf16>
      tpu.vector_store %arg9[%c0_123, %c4_124, %c0_125, %c0_126], %143 {strides = array<i32>} : memref<4x9x9x128xbf16, #tpu.memory_space<vmem>>, vector<1x1x9x128xbf16>,
      %c0_127 = arith.constant 0 : index
      %c5_128 = arith.constant 5 : index
      %c0_129 = arith.constant 0 : index
      %c0_130 = arith.constant 0 : index
      %144 = vector.load %arg2[%c0_127, %c5_128, %c0_129, %c0_130] : memref<4x9x9x128xf32, #tpu.memory_space<vmem>>, vector<1x1x9x128xf32>
      %145 = vector.shape_cast %144 : vector<1x1x9x128xf32> to vector<9x128xf32>
      %146 = vector.broadcast %82 : vector<1x128xf32> to vector<9x128xf32>
      %147 = arith.mulf %145, %146 : vector<9x128xf32>
      %148 = vector.broadcast %83 : vector<1x128xf32> to vector<9x128xf32>
      %149 = arith.addf %147, %148 : vector<9x128xf32>
      %cst_131 = arith.constant 0.000000e+00 : f32
      %150 = vector.broadcast %cst_131 : f32 to vector<9x128xf32>
      %151 = arith.maximumf %149, %150 : vector<9x128xf32>
      %152 = arith.truncf %151 : vector<9x128xf32> to vector<9x128xbf16>
      %c0_132 = arith.constant 0 : index
      %c5_133 = arith.constant 5 : index
      %c0_134 = arith.constant 0 : index
      %c0_135 = arith.constant 0 : index
      %153 = vector.load %arg9[%c0_132, %c5_133, %c0_134, %c0_135] : memref<4x9x9x128xbf16, #tpu.memory_space<vmem>>, vector<1x1x9x128xbf16>
      %154 = vector.shape_cast %153 : vector<1x1x9x128xbf16> to vector<9x128xbf16>
      %155 = vector.shape_cast %152 : vector<9x128xbf16> to vector<1x1x9x128xbf16>
      tpu.vector_store %arg9[%c0_132, %c5_133, %c0_134, %c0_135], %155 {strides = array<i32>} : memref<4x9x9x128xbf16, #tpu.memory_space<vmem>>, vector<1x1x9x128xbf16>,
      %c0_136 = arith.constant 0 : index
      %c6_137 = arith.constant 6 : index
      %c0_138 = arith.constant 0 : index
      %c0_139 = arith.constant 0 : index
      %156 = vector.load %arg2[%c0_136, %c6_137, %c0_138, %c0_139] : memref<4x9x9x128xf32, #tpu.memory_space<vmem>>, vector<1x1x9x128xf32>
      %157 = vector.shape_cast %156 : vector<1x1x9x128xf32> to vector<9x128xf32>
      %158 = vector.broadcast %82 : vector<1x128xf32> to vector<9x128xf32>
      %159 = arith.mulf %157, %158 : vector<9x128xf32>
      %160 = vector.broadcast %83 : vector<1x128xf32> to vector<9x128xf32>
      %161 = arith.addf %159, %160 : vector<9x128xf32>
      %cst_140 = arith.constant 0.000000e+00 : f32
      %162 = vector.broadcast %cst_140 : f32 to vector<9x128xf32>
      %163 = arith.maximumf %161, %162 : vector<9x128xf32>
      %164 = arith.truncf %163 : vector<9x128xf32> to vector<9x128xbf16>
      %c0_141 = arith.constant 0 : index
      %c6_142 = arith.constant 6 : index
      %c0_143 = arith.constant 0 : index
      %c0_144 = arith.constant 0 : index
      %165 = vector.load %arg9[%c0_141, %c6_142, %c0_143, %c0_144] : memref<4x9x9x128xbf16, #tpu.memory_space<vmem>>, vector<1x1x9x128xbf16>
      %166 = vector.shape_cast %165 : vector<1x1x9x128xbf16> to vector<9x128xbf16>
      %167 = vector.shape_cast %164 : vector<9x128xbf16> to vector<1x1x9x128xbf16>
      tpu.vector_store %arg9[%c0_141, %c6_142, %c0_143, %c0_144], %167 {strides = array<i32>} : memref<4x9x9x128xbf16, #tpu.memory_space<vmem>>, vector<1x1x9x128xbf16>,
      %c0_145 = arith.constant 0 : index
      %c7_146 = arith.constant 7 : index
      %c0_147 = arith.constant 0 : index
      %c0_148 = arith.constant 0 : index
      %168 = vector.load %arg2[%c0_145, %c7_146, %c0_147, %c0_148] : memref<4x9x9x128xf32, #tpu.memory_space<vmem>>, vector<1x1x9x128xf32>
      %169 = vector.shape_cast %168 : vector<1x1x9x128xf32> to vector<9x128xf32>
      %170 = vector.broadcast %82 : vector<1x128xf32> to vector<9x128xf32>
      %171 = arith.mulf %169, %170 : vector<9x128xf32>
      %172 = vector.broadcast %83 : vector<1x128xf32> to vector<9x128xf32>
      %173 = arith.addf %171, %172 : vector<9x128xf32>
      %cst_149 = arith.constant 0.000000e+00 : f32
      %174 = vector.broadcast %cst_149 : f32 to vector<9x128xf32>
      %175 = arith.maximumf %173, %174 : vector<9x128xf32>
      %176 = arith.truncf %175 : vector<9x128xf32> to vector<9x128xbf16>
      %c0_150 = arith.constant 0 : index
      %c7_151 = arith.constant 7 : index
      %c0_152 = arith.constant 0 : index
      %c0_153 = arith.constant 0 : index
      %177 = vector.load %arg9[%c0_150, %c7_151, %c0_152, %c0_153] : memref<4x9x9x128xbf16, #tpu.memory_space<vmem>>, vector<1x1x9x128xbf16>
      %178 = vector.shape_cast %177 : vector<1x1x9x128xbf16> to vector<9x128xbf16>
      %179 = vector.shape_cast %176 : vector<9x128xbf16> to vector<1x1x9x128xbf16>
      tpu.vector_store %arg9[%c0_150, %c7_151, %c0_152, %c0_153], %179 {strides = array<i32>} : memref<4x9x9x128xbf16, #tpu.memory_space<vmem>>, vector<1x1x9x128xbf16>,
      %c0_154 = arith.constant 0 : index
      %c8_155 = arith.constant 8 : index
      %c0_156 = arith.constant 0 : index
      %c0_157 = arith.constant 0 : index
      %180 = vector.load %arg2[%c0_154, %c8_155, %c0_156, %c0_157] : memref<4x9x9x128xf32, #tpu.memory_space<vmem>>, vector<1x1x9x128xf32>
      %181 = vector.shape_cast %180 : vector<1x1x9x128xf32> to vector<9x128xf32>
      %182 = vector.broadcast %82 : vector<1x128xf32> to vector<9x128xf32>
      %183 = arith.mulf %181, %182 : vector<9x128xf32>
      %184 = vector.broadcast %83 : vector<1x128xf32> to vector<9x128xf32>
      %185 = arith.addf %183, %184 : vector<9x128xf32>
      %cst_158 = arith.constant 0.000000e+00 : f32
      %186 = vector.broadcast %cst_158 : f32 to vector<9x128xf32>
      %187 = arith.maximumf %185, %186 : vector<9x128xf32>
      %188 = arith.truncf %187 : vector<9x128xf32> to vector<9x128xbf16>
      %c0_159 = arith.constant 0 : index
      %c8_160 = arith.constant 8 : index
      %c0_161 = arith.constant 0 : index
      %c0_162 = arith.constant 0 : index
      %189 = vector.load %arg9[%c0_159, %c8_160, %c0_161, %c0_162] : memref<4x9x9x128xbf16, #tpu.memory_space<vmem>>, vector<1x1x9x128xbf16>
      %190 = vector.shape_cast %189 : vector<1x1x9x128xbf16> to vector<9x128xbf16>
      %191 = vector.shape_cast %188 : vector<9x128xbf16> to vector<1x1x9x128xbf16>
      tpu.vector_store %arg9[%c0_159, %c8_160, %c0_161, %c0_162], %191 {strides = array<i32>} : memref<4x9x9x128xbf16, #tpu.memory_space<vmem>>, vector<1x1x9x128xbf16>,
      %c1_163 = arith.constant 1 : index
      %c0_164 = arith.constant 0 : index
      %c0_165 = arith.constant 0 : index
      %c0_166 = arith.constant 0 : index
      %192 = vector.load %arg2[%c1_163, %c0_164, %c0_165, %c0_166] : memref<4x9x9x128xf32, #tpu.memory_space<vmem>>, vector<1x1x9x128xf32>
      %193 = vector.shape_cast %192 : vector<1x1x9x128xf32> to vector<9x128xf32>
      %194 = vector.broadcast %82 : vector<1x128xf32> to vector<9x128xf32>
      %195 = arith.mulf %193, %194 : vector<9x128xf32>
      %196 = vector.broadcast %83 : vector<1x128xf32> to vector<9x128xf32>
      %197 = arith.addf %195, %196 : vector<9x128xf32>
      %cst_167 = arith.constant 0.000000e+00 : f32
      %198 = vector.broadcast %cst_167 : f32 to vector<9x128xf32>
      %199 = arith.maximumf %197, %198 : vector<9x128xf32>
      %200 = arith.truncf %199 : vector<9x128xf32> to vector<9x128xbf16>
      %c1_168 = arith.constant 1 : index
      %c0_169 = arith.constant 0 : index
      %c0_170 = arith.constant 0 : index
      %c0_171 = arith.constant 0 : index
      %201 = vector.load %arg9[%c1_168, %c0_169, %c0_170, %c0_171] : memref<4x9x9x128xbf16, #tpu.memory_space<vmem>>, vector<1x1x9x128xbf16>
      %202 = vector.shape_cast %201 : vector<1x1x9x128xbf16> to vector<9x128xbf16>
      %203 = vector.shape_cast %200 : vector<9x128xbf16> to vector<1x1x9x128xbf16>
      tpu.vector_store %arg9[%c1_168, %c0_169, %c0_170, %c0_171], %203 {strides = array<i32>} : memref<4x9x9x128xbf16, #tpu.memory_space<vmem>>, vector<1x1x9x128xbf16>,
      %c1_172 = arith.constant 1 : index
      %c1_173 = arith.constant 1 : index
      %c0_174 = arith.constant 0 : index
      %c0_175 = arith.constant 0 : index
      %204 = vector.load %arg2[%c1_172, %c1_173, %c0_174, %c0_175] : memref<4x9x9x128xf32, #tpu.memory_space<vmem>>, vector<1x1x9x128xf32>
      %205 = vector.shape_cast %204 : vector<1x1x9x128xf32> to vector<9x128xf32>
      %206 = vector.broadcast %82 : vector<1x128xf32> to vector<9x128xf32>
      %207 = arith.mulf %205, %206 : vector<9x128xf32>
      %208 = vector.broadcast %83 : vector<1x128xf32> to vector<9x128xf32>
      %209 = arith.addf %207, %208 : vector<9x128xf32>
      %cst_176 = arith.constant 0.000000e+00 : f32
      %210 = vector.broadcast %cst_176 : f32 to vector<9x128xf32>
      %211 = arith.maximumf %209, %210 : vector<9x128xf32>
      %212 = arith.truncf %211 : vector<9x128xf32> to vector<9x128xbf16>
      %c1_177 = arith.constant 1 : index
      %c1_178 = arith.constant 1 : index
      %c0_179 = arith.constant 0 : index
      %c0_180 = arith.constant 0 : index
      %213 = vector.load %arg9[%c1_177, %c1_178, %c0_179, %c0_180] : memref<4x9x9x128xbf16, #tpu.memory_space<vmem>>, vector<1x1x9x128xbf16>
      %214 = vector.shape_cast %213 : vector<1x1x9x128xbf16> to vector<9x128xbf16>
      %215 = vector.shape_cast %212 : vector<9x128xbf16> to vector<1x1x9x128xbf16>
      tpu.vector_store %arg9[%c1_177, %c1_178, %c0_179, %c0_180], %215 {strides = array<i32>} : memref<4x9x9x128xbf16, #tpu.memory_space<vmem>>, vector<1x1x9x128xbf16>,
      %c1_181 = arith.constant 1 : index
      %c2_182 = arith.constant 2 : index
      %c0_183 = arith.constant 0 : index
      %c0_184 = arith.constant 0 : index
      %216 = vector.load %arg2[%c1_181, %c2_182, %c0_183, %c0_184] : memref<4x9x9x128xf32, #tpu.memory_space<vmem>>, vector<1x1x9x128xf32>
      %217 = vector.shape_cast %216 : vector<1x1x9x128xf32> to vector<9x128xf32>
      %218 = vector.broadcast %82 : vector<1x128xf32> to vector<9x128xf32>
      %219 = arith.mulf %217, %218 : vector<9x128xf32>
      %220 = vector.broadcast %83 : vector<1x128xf32> to vector<9x128xf32>
      %221 = arith.addf %219, %220 : vector<9x128xf32>
      %cst_185 = arith.constant 0.000000e+00 : f32
      %222 = vector.broadcast %cst_185 : f32 to vector<9x128xf32>
      %223 = arith.maximumf %221, %222 : vector<9x128xf32>
      %224 = arith.truncf %223 : vector<9x128xf32> to vector<9x128xbf16>
      %c1_186 = arith.constant 1 : index
      %c2_187 = arith.constant 2 : index
      %c0_188 = arith.constant 0 : index
      %c0_189 = arith.constant 0 : index
      %225 = vector.load %arg9[%c1_186, %c2_187, %c0_188, %c0_189] : memref<4x9x9x128xbf16, #tpu.memory_space<vmem>>, vector<1x1x9x128xbf16>
      %226 = vector.shape_cast %225 : vector<1x1x9x128xbf16> to vector<9x128xbf16>
      %227 = vector.shape_cast %224 : vector<9x128xbf16> to vector<1x1x9x128xbf16>
      tpu.vector_store %arg9[%c1_186, %c2_187, %c0_188, %c0_189], %227 {strides = array<i32>} : memref<4x9x9x128xbf16, #tpu.memory_space<vmem>>, vector<1x1x9x128xbf16>,
      %c1_190 = arith.constant 1 : index
      %c3_191 = arith.constant 3 : index
      %c0_192 = arith.constant 0 : index
      %c0_193 = arith.constant 0 : index
      %228 = vector.load %arg2[%c1_190, %c3_191, %c0_192, %c0_193] : memref<4x9x9x128xf32, #tpu.memory_space<vmem>>, vector<1x1x9x128xf32>
      %229 = vector.shape_cast %228 : vector<1x1x9x128xf32> to vector<9x128xf32>
      %230 = vector.broadcast %82 : vector<1x128xf32> to vector<9x128xf32>
      %231 = arith.mulf %229, %230 : vector<9x128xf32>
      %232 = vector.broadcast %83 : vector<1x128xf32> to vector<9x128xf32>
      %233 = arith.addf %231, %232 : vector<9x128xf32>
      %cst_194 = arith.constant 0.000000e+00 : f32
      %234 = vector.broadcast %cst_194 : f32 to vector<9x128xf32>
      %235 = arith.maximumf %233, %234 : vector<9x128xf32>
      %236 = arith.truncf %235 : vector<9x128xf32> to vector<9x128xbf16>
      %c1_195 = arith.constant 1 : index
      %c3_196 = arith.constant 3 : index
      %c0_197 = arith.constant 0 : index
      %c0_198 = arith.constant 0 : index
      %237 = vector.load %arg9[%c1_195, %c3_196, %c0_197, %c0_198] : memref<4x9x9x128xbf16, #tpu.memory_space<vmem>>, vector<1x1x9x128xbf16>
      %238 = vector.shape_cast %237 : vector<1x1x9x128xbf16> to vector<9x128xbf16>
      %239 = vector.shape_cast %236 : vector<9x128xbf16> to vector<1x1x9x128xbf16>
      tpu.vector_store %arg9[%c1_195, %c3_196, %c0_197, %c0_198], %239 {strides = array<i32>} : memref<4x9x9x128xbf16, #tpu.memory_space<vmem>>, vector<1x1x9x128xbf16>,
      %c1_199 = arith.constant 1 : index
      %c4_200 = arith.constant 4 : index
      %c0_201 = arith.constant 0 : index
      %c0_202 = arith.constant 0 : index
      %240 = vector.load %arg2[%c1_199, %c4_200, %c0_201, %c0_202] : memref<4x9x9x128xf32, #tpu.memory_space<vmem>>, vector<1x1x9x128xf32>
      %241 = vector.shape_cast %240 : vector<1x1x9x128xf32> to vector<9x128xf32>
      %242 = vector.broadcast %82 : vector<1x128xf32> to vector<9x128xf32>
      %243 = arith.mulf %241, %242 : vector<9x128xf32>
      %244 = vector.broadcast %83 : vector<1x128xf32> to vector<9x128xf32>
      %245 = arith.addf %243, %244 : vector<9x128xf32>
      %cst_203 = arith.constant 0.000000e+00 : f32
      %246 = vector.broadcast %cst_203 : f32 to vector<9x128xf32>
      %247 = arith.maximumf %245, %246 : vector<9x128xf32>
      %248 = arith.truncf %247 : vector<9x128xf32> to vector<9x128xbf16>
      %c1_204 = arith.constant 1 : index
      %c4_205 = arith.constant 4 : index
      %c0_206 = arith.constant 0 : index
      %c0_207 = arith.constant 0 : index
      %249 = vector.load %arg9[%c1_204, %c4_205, %c0_206, %c0_207] : memref<4x9x9x128xbf16, #tpu.memory_space<vmem>>, vector<1x1x9x128xbf16>
      %250 = vector.shape_cast %249 : vector<1x1x9x128xbf16> to vector<9x128xbf16>
      %251 = vector.shape_cast %248 : vector<9x128xbf16> to vector<1x1x9x128xbf16>
      tpu.vector_store %arg9[%c1_204, %c4_205, %c0_206, %c0_207], %251 {strides = array<i32>} : memref<4x9x9x128xbf16, #tpu.memory_space<vmem>>, vector<1x1x9x128xbf16>,
      %c1_208 = arith.constant 1 : index
      %c5_209 = arith.constant 5 : index
      %c0_210 = arith.constant 0 : index
      %c0_211 = arith.constant 0 : index
      %252 = vector.load %arg2[%c1_208, %c5_209, %c0_210, %c0_211] : memref<4x9x9x128xf32, #tpu.memory_space<vmem>>, vector<1x1x9x128xf32>
      %253 = vector.shape_cast %252 : vector<1x1x9x128xf32> to vector<9x128xf32>
      %254 = vector.broadcast %82 : vector<1x128xf32> to vector<9x128xf32>
      %255 = arith.mulf %253, %254 : vector<9x128xf32>
      %256 = vector.broadcast %83 : vector<1x128xf32> to vector<9x128xf32>
      %257 = arith.addf %255, %256 : vector<9x128xf32>
      %cst_212 = arith.constant 0.000000e+00 : f32
      %258 = vector.broadcast %cst_212 : f32 to vector<9x128xf32>
      %259 = arith.maximumf %257, %258 : vector<9x128xf32>
      %260 = arith.truncf %259 : vector<9x128xf32> to vector<9x128xbf16>
      %c1_213 = arith.constant 1 : index
      %c5_214 = arith.constant 5 : index
      %c0_215 = arith.constant 0 : index
      %c0_216 = arith.constant 0 : index
      %261 = vector.load %arg9[%c1_213, %c5_214, %c0_215, %c0_216] : memref<4x9x9x128xbf16, #tpu.memory_space<vmem>>, vector<1x1x9x128xbf16>
      %262 = vector.shape_cast %261 : vector<1x1x9x128xbf16> to vector<9x128xbf16>
      %263 = vector.shape_cast %260 : vector<9x128xbf16> to vector<1x1x9x128xbf16>
      tpu.vector_store %arg9[%c1_213, %c5_214, %c0_215, %c0_216], %263 {strides = array<i32>} : memref<4x9x9x128xbf16, #tpu.memory_space<vmem>>, vector<1x1x9x128xbf16>,
      %c1_217 = arith.constant 1 : index
      %c6_218 = arith.constant 6 : index
      %c0_219 = arith.constant 0 : index
      %c0_220 = arith.constant 0 : index
      %264 = vector.load %arg2[%c1_217, %c6_218, %c0_219, %c0_220] : memref<4x9x9x128xf32, #tpu.memory_space<vmem>>, vector<1x1x9x128xf32>
      %265 = vector.shape_cast %264 : vector<1x1x9x128xf32> to vector<9x128xf32>
      %266 = vector.broadcast %82 : vector<1x128xf32> to vector<9x128xf32>
      %267 = arith.mulf %265, %266 : vector<9x128xf32>
      %268 = vector.broadcast %83 : vector<1x128xf32> to vector<9x128xf32>
      %269 = arith.addf %267, %268 : vector<9x128xf32>
      %cst_221 = arith.constant 0.000000e+00 : f32
      %270 = vector.broadcast %cst_221 : f32 to vector<9x128xf32>
      %271 = arith.maximumf %269, %270 : vector<9x128xf32>
      %272 = arith.truncf %271 : vector<9x128xf32> to vector<9x128xbf16>
      %c1_222 = arith.constant 1 : index
      %c6_223 = arith.constant 6 : index
      %c0_224 = arith.constant 0 : index
      %c0_225 = arith.constant 0 : index
      %273 = vector.load %arg9[%c1_222, %c6_223, %c0_224, %c0_225] : memref<4x9x9x128xbf16, #tpu.memory_space<vmem>>, vector<1x1x9x128xbf16>
      %274 = vector.shape_cast %273 : vector<1x1x9x128xbf16> to vector<9x128xbf16>
      %275 = vector.shape_cast %272 : vector<9x128xbf16> to vector<1x1x9x128xbf16>
      tpu.vector_store %arg9[%c1_222, %c6_223, %c0_224, %c0_225], %275 {strides = array<i32>} : memref<4x9x9x128xbf16, #tpu.memory_space<vmem>>, vector<1x1x9x128xbf16>,
      %c1_226 = arith.constant 1 : index
      %c7_227 = arith.constant 7 : index
      %c0_228 = arith.constant 0 : index
      %c0_229 = arith.constant 0 : index
      %276 = vector.load %arg2[%c1_226, %c7_227, %c0_228, %c0_229] : memref<4x9x9x128xf32, #tpu.memory_space<vmem>>, vector<1x1x9x128xf32>
      %277 = vector.shape_cast %276 : vector<1x1x9x128xf32> to vector<9x128xf32>
      %278 = vector.broadcast %82 : vector<1x128xf32> to vector<9x128xf32>
      %279 = arith.mulf %277, %278 : vector<9x128xf32>
      %280 = vector.broadcast %83 : vector<1x128xf32> to vector<9x128xf32>
      %281 = arith.addf %279, %280 : vector<9x128xf32>
      %cst_230 = arith.constant 0.000000e+00 : f32
      %282 = vector.broadcast %cst_230 : f32 to vector<9x128xf32>
      %283 = arith.maximumf %281, %282 : vector<9x128xf32>
      %284 = arith.truncf %283 : vector<9x128xf32> to vector<9x128xbf16>
      %c1_231 = arith.constant 1 : index
      %c7_232 = arith.constant 7 : index
      %c0_233 = arith.constant 0 : index
      %c0_234 = arith.constant 0 : index
      %285 = vector.load %arg9[%c1_231, %c7_232, %c0_233, %c0_234] : memref<4x9x9x128xbf16, #tpu.memory_space<vmem>>, vector<1x1x9x128xbf16>
      %286 = vector.shape_cast %285 : vector<1x1x9x128xbf16> to vector<9x128xbf16>
      %287 = vector.shape_cast %284 : vector<9x128xbf16> to vector<1x1x9x128xbf16>
      tpu.vector_store %arg9[%c1_231, %c7_232, %c0_233, %c0_234], %287 {strides = array<i32>} : memref<4x9x9x128xbf16, #tpu.memory_space<vmem>>, vector<1x1x9x128xbf16>,
      %c1_235 = arith.constant 1 : index
      %c8_236 = arith.constant 8 : index
      %c0_237 = arith.constant 0 : index
      %c0_238 = arith.constant 0 : index
      %288 = vector.load %arg2[%c1_235, %c8_236, %c0_237, %c0_238] : memref<4x9x9x128xf32, #tpu.memory_space<vmem>>, vector<1x1x9x128xf32>
      %289 = vector.shape_cast %288 : vector<1x1x9x128xf32> to vector<9x128xf32>
      %290 = vector.broadcast %82 : vector<1x128xf32> to vector<9x128xf32>
      %291 = arith.mulf %289, %290 : vector<9x128xf32>
      %292 = vector.broadcast %83 : vector<1x128xf32> to vector<9x128xf32>
      %293 = arith.addf %291, %292 : vector<9x128xf32>
      %cst_239 = arith.constant 0.000000e+00 : f32
      %294 = vector.broadcast %cst_239 : f32 to vector<9x128xf32>
      %295 = arith.maximumf %293, %294 : vector<9x128xf32>
      %296 = arith.truncf %295 : vector<9x128xf32> to vector<9x128xbf16>
      %c1_240 = arith.constant 1 : index
      %c8_241 = arith.constant 8 : index
      %c0_242 = arith.constant 0 : index
      %c0_243 = arith.constant 0 : index
      %297 = vector.load %arg9[%c1_240, %c8_241, %c0_242, %c0_243] : memref<4x9x9x128xbf16, #tpu.memory_space<vmem>>, vector<1x1x9x128xbf16>
      %298 = vector.shape_cast %297 : vector<1x1x9x128xbf16> to vector<9x128xbf16>
      %299 = vector.shape_cast %296 : vector<9x128xbf16> to vector<1x1x9x128xbf16>
      tpu.vector_store %arg9[%c1_240, %c8_241, %c0_242, %c0_243], %299 {strides = array<i32>} : memref<4x9x9x128xbf16, #tpu.memory_space<vmem>>, vector<1x1x9x128xbf16>,
      %c2_244 = arith.constant 2 : index
      %c0_245 = arith.constant 0 : index
      %c0_246 = arith.constant 0 : index
      %c0_247 = arith.constant 0 : index
      %300 = vector.load %arg2[%c2_244, %c0_245, %c0_246, %c0_247] : memref<4x9x9x128xf32, #tpu.memory_space<vmem>>, vector<1x1x9x128xf32>
      %301 = vector.shape_cast %300 : vector<1x1x9x128xf32> to vector<9x128xf32>
      %302 = vector.broadcast %82 : vector<1x128xf32> to vector<9x128xf32>
      %303 = arith.mulf %301, %302 : vector<9x128xf32>
      %304 = vector.broadcast %83 : vector<1x128xf32> to vector<9x128xf32>
      %305 = arith.addf %303, %304 : vector<9x128xf32>
      %cst_248 = arith.constant 0.000000e+00 : f32
      %306 = vector.broadcast %cst_248 : f32 to vector<9x128xf32>
      %307 = arith.maximumf %305, %306 : vector<9x128xf32>
      %308 = arith.truncf %307 : vector<9x128xf32> to vector<9x128xbf16>
      %c2_249 = arith.constant 2 : index
      %c0_250 = arith.constant 0 : index
      %c0_251 = arith.constant 0 : index
      %c0_252 = arith.constant 0 : index
      %309 = vector.load %arg9[%c2_249, %c0_250, %c0_251, %c0_252] : memref<4x9x9x128xbf16, #tpu.memory_space<vmem>>, vector<1x1x9x128xbf16>
      %310 = vector.shape_cast %309 : vector<1x1x9x128xbf16> to vector<9x128xbf16>
      %311 = vector.shape_cast %308 : vector<9x128xbf16> to vector<1x1x9x128xbf16>
      tpu.vector_store %arg9[%c2_249, %c0_250, %c0_251, %c0_252], %311 {strides = array<i32>} : memref<4x9x9x128xbf16, #tpu.memory_space<vmem>>, vector<1x1x9x128xbf16>,
      %c2_253 = arith.constant 2 : index
      %c1_254 = arith.constant 1 : index
      %c0_255 = arith.constant 0 : index
      %c0_256 = arith.constant 0 : index
      %312 = vector.load %arg2[%c2_253, %c1_254, %c0_255, %c0_256] : memref<4x9x9x128xf32, #tpu.memory_space<vmem>>, vector<1x1x9x128xf32>
      %313 = vector.shape_cast %312 : vector<1x1x9x128xf32> to vector<9x128xf32>
      %314 = vector.broadcast %82 : vector<1x128xf32> to vector<9x128xf32>
      %315 = arith.mulf %313, %314 : vector<9x128xf32>
      %316 = vector.broadcast %83 : vector<1x128xf32> to vector<9x128xf32>
      %317 = arith.addf %315, %316 : vector<9x128xf32>
      %cst_257 = arith.constant 0.000000e+00 : f32
      %318 = vector.broadcast %cst_257 : f32 to vector<9x128xf32>
      %319 = arith.maximumf %317, %318 : vector<9x128xf32>
      %320 = arith.truncf %319 : vector<9x128xf32> to vector<9x128xbf16>
      %c2_258 = arith.constant 2 : index
      %c1_259 = arith.constant 1 : index
      %c0_260 = arith.constant 0 : index
      %c0_261 = arith.constant 0 : index
      %321 = vector.load %arg9[%c2_258, %c1_259, %c0_260, %c0_261] : memref<4x9x9x128xbf16, #tpu.memory_space<vmem>>, vector<1x1x9x128xbf16>
      %322 = vector.shape_cast %321 : vector<1x1x9x128xbf16> to vector<9x128xbf16>
      %323 = vector.shape_cast %320 : vector<9x128xbf16> to vector<1x1x9x128xbf16>
      tpu.vector_store %arg9[%c2_258, %c1_259, %c0_260, %c0_261], %323 {strides = array<i32>} : memref<4x9x9x128xbf16, #tpu.memory_space<vmem>>, vector<1x1x9x128xbf16>,
      %c2_262 = arith.constant 2 : index
      %c2_263 = arith.constant 2 : index
      %c0_264 = arith.constant 0 : index
      %c0_265 = arith.constant 0 : index
      %324 = vector.load %arg2[%c2_262, %c2_263, %c0_264, %c0_265] : memref<4x9x9x128xf32, #tpu.memory_space<vmem>>, vector<1x1x9x128xf32>
      %325 = vector.shape_cast %324 : vector<1x1x9x128xf32> to vector<9x128xf32>
      %326 = vector.broadcast %82 : vector<1x128xf32> to vector<9x128xf32>
      %327 = arith.mulf %325, %326 : vector<9x128xf32>
      %328 = vector.broadcast %83 : vector<1x128xf32> to vector<9x128xf32>
      %329 = arith.addf %327, %328 : vector<9x128xf32>
      %cst_266 = arith.constant 0.000000e+00 : f32
      %330 = vector.broadcast %cst_266 : f32 to vector<9x128xf32>
      %331 = arith.maximumf %329, %330 : vector<9x128xf32>
      %332 = arith.truncf %331 : vector<9x128xf32> to vector<9x128xbf16>
      %c2_267 = arith.constant 2 : index
      %c2_268 = arith.constant 2 : index
      %c0_269 = arith.constant 0 : index
      %c0_270 = arith.constant 0 : index
      %333 = vector.load %arg9[%c2_267, %c2_268, %c0_269, %c0_270] : memref<4x9x9x128xbf16, #tpu.memory_space<vmem>>, vector<1x1x9x128xbf16>
      %334 = vector.shape_cast %333 : vector<1x1x9x128xbf16> to vector<9x128xbf16>
      %335 = vector.shape_cast %332 : vector<9x128xbf16> to vector<1x1x9x128xbf16>
      tpu.vector_store %arg9[%c2_267, %c2_268, %c0_269, %c0_270], %335 {strides = array<i32>} : memref<4x9x9x128xbf16, #tpu.memory_space<vmem>>, vector<1x1x9x128xbf16>,
      %c2_271 = arith.constant 2 : index
      %c3_272 = arith.constant 3 : index
      %c0_273 = arith.constant 0 : index
      %c0_274 = arith.constant 0 : index
      %336 = vector.load %arg2[%c2_271, %c3_272, %c0_273, %c0_274] : memref<4x9x9x128xf32, #tpu.memory_space<vmem>>, vector<1x1x9x128xf32>
      %337 = vector.shape_cast %336 : vector<1x1x9x128xf32> to vector<9x128xf32>
      %338 = vector.broadcast %82 : vector<1x128xf32> to vector<9x128xf32>
      %339 = arith.mulf %337, %338 : vector<9x128xf32>
      %340 = vector.broadcast %83 : vector<1x128xf32> to vector<9x128xf32>
      %341 = arith.addf %339, %340 : vector<9x128xf32>
      %cst_275 = arith.constant 0.000000e+00 : f32
      %342 = vector.broadcast %cst_275 : f32 to vector<9x128xf32>
      %343 = arith.maximumf %341, %342 : vector<9x128xf32>
      %344 = arith.truncf %343 : vector<9x128xf32> to vector<9x128xbf16>
      %c2_276 = arith.constant 2 : index
      %c3_277 = arith.constant 3 : index
      %c0_278 = arith.constant 0 : index
      %c0_279 = arith.constant 0 : index
      %345 = vector.load %arg9[%c2_276, %c3_277, %c0_278, %c0_279] : memref<4x9x9x128xbf16, #tpu.memory_space<vmem>>, vector<1x1x9x128xbf16>
      %346 = vector.shape_cast %345 : vector<1x1x9x128xbf16> to vector<9x128xbf16>
      %347 = vector.shape_cast %344 : vector<9x128xbf16> to vector<1x1x9x128xbf16>
      tpu.vector_store %arg9[%c2_276, %c3_277, %c0_278, %c0_279], %347 {strides = array<i32>} : memref<4x9x9x128xbf16, #tpu.memory_space<vmem>>, vector<1x1x9x128xbf16>,
      %c2_280 = arith.constant 2 : index
      %c4_281 = arith.constant 4 : index
      %c0_282 = arith.constant 0 : index
      %c0_283 = arith.constant 0 : index
      %348 = vector.load %arg2[%c2_280, %c4_281, %c0_282, %c0_283] : memref<4x9x9x128xf32, #tpu.memory_space<vmem>>, vector<1x1x9x128xf32>
      %349 = vector.shape_cast %348 : vector<1x1x9x128xf32> to vector<9x128xf32>
      %350 = vector.broadcast %82 : vector<1x128xf32> to vector<9x128xf32>
      %351 = arith.mulf %349, %350 : vector<9x128xf32>
      %352 = vector.broadcast %83 : vector<1x128xf32> to vector<9x128xf32>
      %353 = arith.addf %351, %352 : vector<9x128xf32>
      %cst_284 = arith.constant 0.000000e+00 : f32
      %354 = vector.broadcast %cst_284 : f32 to vector<9x128xf32>
      %355 = arith.maximumf %353, %354 : vector<9x128xf32>
      %356 = arith.truncf %355 : vector<9x128xf32> to vector<9x128xbf16>
      %c2_285 = arith.constant 2 : index
      %c4_286 = arith.constant 4 : index
      %c0_287 = arith.constant 0 : index
      %c0_288 = arith.constant 0 : index
      %357 = vector.load %arg9[%c2_285, %c4_286, %c0_287, %c0_288] : memref<4x9x9x128xbf16, #tpu.memory_space<vmem>>, vector<1x1x9x128xbf16>
      %358 = vector.shape_cast %357 : vector<1x1x9x128xbf16> to vector<9x128xbf16>
      %359 = vector.shape_cast %356 : vector<9x128xbf16> to vector<1x1x9x128xbf16>
      tpu.vector_store %arg9[%c2_285, %c4_286, %c0_287, %c0_288], %359 {strides = array<i32>} : memref<4x9x9x128xbf16, #tpu.memory_space<vmem>>, vector<1x1x9x128xbf16>,
      %c2_289 = arith.constant 2 : index
      %c5_290 = arith.constant 5 : index
      %c0_291 = arith.constant 0 : index
      %c0_292 = arith.constant 0 : index
      %360 = vector.load %arg2[%c2_289, %c5_290, %c0_291, %c0_292] : memref<4x9x9x128xf32, #tpu.memory_space<vmem>>, vector<1x1x9x128xf32>
      %361 = vector.shape_cast %360 : vector<1x1x9x128xf32> to vector<9x128xf32>
      %362 = vector.broadcast %82 : vector<1x128xf32> to vector<9x128xf32>
      %363 = arith.mulf %361, %362 : vector<9x128xf32>
      %364 = vector.broadcast %83 : vector<1x128xf32> to vector<9x128xf32>
      %365 = arith.addf %363, %364 : vector<9x128xf32>
      %cst_293 = arith.constant 0.000000e+00 : f32
      %366 = vector.broadcast %cst_293 : f32 to vector<9x128xf32>
      %367 = arith.maximumf %365, %366 : vector<9x128xf32>
      %368 = arith.truncf %367 : vector<9x128xf32> to vector<9x128xbf16>
      %c2_294 = arith.constant 2 : index
      %c5_295 = arith.constant 5 : index
      %c0_296 = arith.constant 0 : index
      %c0_297 = arith.constant 0 : index
      %369 = vector.load %arg9[%c2_294, %c5_295, %c0_296, %c0_297] : memref<4x9x9x128xbf16, #tpu.memory_space<vmem>>, vector<1x1x9x128xbf16>
      %370 = vector.shape_cast %369 : vector<1x1x9x128xbf16> to vector<9x128xbf16>
      %371 = vector.shape_cast %368 : vector<9x128xbf16> to vector<1x1x9x128xbf16>
      tpu.vector_store %arg9[%c2_294, %c5_295, %c0_296, %c0_297], %371 {strides = array<i32>} : memref<4x9x9x128xbf16, #tpu.memory_space<vmem>>, vector<1x1x9x128xbf16>,
      %c2_298 = arith.constant 2 : index
      %c6_299 = arith.constant 6 : index
      %c0_300 = arith.constant 0 : index
      %c0_301 = arith.constant 0 : index
      %372 = vector.load %arg2[%c2_298, %c6_299, %c0_300, %c0_301] : memref<4x9x9x128xf32, #tpu.memory_space<vmem>>, vector<1x1x9x128xf32>
      %373 = vector.shape_cast %372 : vector<1x1x9x128xf32> to vector<9x128xf32>
      %374 = vector.broadcast %82 : vector<1x128xf32> to vector<9x128xf32>
      %375 = arith.mulf %373, %374 : vector<9x128xf32>
      %376 = vector.broadcast %83 : vector<1x128xf32> to vector<9x128xf32>
      %377 = arith.addf %375, %376 : vector<9x128xf32>
      %cst_302 = arith.constant 0.000000e+00 : f32
      %378 = vector.broadcast %cst_302 : f32 to vector<9x128xf32>
      %379 = arith.maximumf %377, %378 : vector<9x128xf32>
      %380 = arith.truncf %379 : vector<9x128xf32> to vector<9x128xbf16>
      %c2_303 = arith.constant 2 : index
      %c6_304 = arith.constant 6 : index
      %c0_305 = arith.constant 0 : index
      %c0_306 = arith.constant 0 : index
      %381 = vector.load %arg9[%c2_303, %c6_304, %c0_305, %c0_306] : memref<4x9x9x128xbf16, #tpu.memory_space<vmem>>, vector<1x1x9x128xbf16>
      %382 = vector.shape_cast %381 : vector<1x1x9x128xbf16> to vector<9x128xbf16>
      %383 = vector.shape_cast %380 : vector<9x128xbf16> to vector<1x1x9x128xbf16>
      tpu.vector_store %arg9[%c2_303, %c6_304, %c0_305, %c0_306], %383 {strides = array<i32>} : memref<4x9x9x128xbf16, #tpu.memory_space<vmem>>, vector<1x1x9x128xbf16>,
      %c2_307 = arith.constant 2 : index
      %c7_308 = arith.constant 7 : index
      %c0_309 = arith.constant 0 : index
      %c0_310 = arith.constant 0 : index
      %384 = vector.load %arg2[%c2_307, %c7_308, %c0_309, %c0_310] : memref<4x9x9x128xf32, #tpu.memory_space<vmem>>, vector<1x1x9x128xf32>
      %385 = vector.shape_cast %384 : vector<1x1x9x128xf32> to vector<9x128xf32>
      %386 = vector.broadcast %82 : vector<1x128xf32> to vector<9x128xf32>
      %387 = arith.mulf %385, %386 : vector<9x128xf32>
      %388 = vector.broadcast %83 : vector<1x128xf32> to vector<9x128xf32>
      %389 = arith.addf %387, %388 : vector<9x128xf32>
      %cst_311 = arith.constant 0.000000e+00 : f32
      %390 = vector.broadcast %cst_311 : f32 to vector<9x128xf32>
      %391 = arith.maximumf %389, %390 : vector<9x128xf32>
      %392 = arith.truncf %391 : vector<9x128xf32> to vector<9x128xbf16>
      %c2_312 = arith.constant 2 : index
      %c7_313 = arith.constant 7 : index
      %c0_314 = arith.constant 0 : index
      %c0_315 = arith.constant 0 : index
      %393 = vector.load %arg9[%c2_312, %c7_313, %c0_314, %c0_315] : memref<4x9x9x128xbf16, #tpu.memory_space<vmem>>, vector<1x1x9x128xbf16>
      %394 = vector.shape_cast %393 : vector<1x1x9x128xbf16> to vector<9x128xbf16>
      %395 = vector.shape_cast %392 : vector<9x128xbf16> to vector<1x1x9x128xbf16>
      tpu.vector_store %arg9[%c2_312, %c7_313, %c0_314, %c0_315], %395 {strides = array<i32>} : memref<4x9x9x128xbf16, #tpu.memory_space<vmem>>, vector<1x1x9x128xbf16>,
      %c2_316 = arith.constant 2 : index
      %c8_317 = arith.constant 8 : index
      %c0_318 = arith.constant 0 : index
      %c0_319 = arith.constant 0 : index
      %396 = vector.load %arg2[%c2_316, %c8_317, %c0_318, %c0_319] : memref<4x9x9x128xf32, #tpu.memory_space<vmem>>, vector<1x1x9x128xf32>
      %397 = vector.shape_cast %396 : vector<1x1x9x128xf32> to vector<9x128xf32>
      %398 = vector.broadcast %82 : vector<1x128xf32> to vector<9x128xf32>
      %399 = arith.mulf %397, %398 : vector<9x128xf32>
      %400 = vector.broadcast %83 : vector<1x128xf32> to vector<9x128xf32>
      %401 = arith.addf %399, %400 : vector<9x128xf32>
      %cst_320 = arith.constant 0.000000e+00 : f32
      %402 = vector.broadcast %cst_320 : f32 to vector<9x128xf32>
      %403 = arith.maximumf %401, %402 : vector<9x128xf32>
      %404 = arith.truncf %403 : vector<9x128xf32> to vector<9x128xbf16>
      %c2_321 = arith.constant 2 : index
      %c8_322 = arith.constant 8 : index
      %c0_323 = arith.constant 0 : index
      %c0_324 = arith.constant 0 : index
      %405 = vector.load %arg9[%c2_321, %c8_322, %c0_323, %c0_324] : memref<4x9x9x128xbf16, #tpu.memory_space<vmem>>, vector<1x1x9x128xbf16>
      %406 = vector.shape_cast %405 : vector<1x1x9x128xbf16> to vector<9x128xbf16>
      %407 = vector.shape_cast %404 : vector<9x128xbf16> to vector<1x1x9x128xbf16>
      tpu.vector_store %arg9[%c2_321, %c8_322, %c0_323, %c0_324], %407 {strides = array<i32>} : memref<4x9x9x128xbf16, #tpu.memory_space<vmem>>, vector<1x1x9x128xbf16>,
      %c3_325 = arith.constant 3 : index
      %c0_326 = arith.constant 0 : index
      %c0_327 = arith.constant 0 : index
      %c0_328 = arith.constant 0 : index
      %408 = vector.load %arg2[%c3_325, %c0_326, %c0_327, %c0_328] : memref<4x9x9x128xf32, #tpu.memory_space<vmem>>, vector<1x1x9x128xf32>
      %409 = vector.shape_cast %408 : vector<1x1x9x128xf32> to vector<9x128xf32>
      %410 = vector.broadcast %82 : vector<1x128xf32> to vector<9x128xf32>
      %411 = arith.mulf %409, %410 : vector<9x128xf32>
      %412 = vector.broadcast %83 : vector<1x128xf32> to vector<9x128xf32>
      %413 = arith.addf %411, %412 : vector<9x128xf32>
      %cst_329 = arith.constant 0.000000e+00 : f32
      %414 = vector.broadcast %cst_329 : f32 to vector<9x128xf32>
      %415 = arith.maximumf %413, %414 : vector<9x128xf32>
      %416 = arith.truncf %415 : vector<9x128xf32> to vector<9x128xbf16>
      %c3_330 = arith.constant 3 : index
      %c0_331 = arith.constant 0 : index
      %c0_332 = arith.constant 0 : index
      %c0_333 = arith.constant 0 : index
      %417 = vector.load %arg9[%c3_330, %c0_331, %c0_332, %c0_333] : memref<4x9x9x128xbf16, #tpu.memory_space<vmem>>, vector<1x1x9x128xbf16>
      %418 = vector.shape_cast %417 : vector<1x1x9x128xbf16> to vector<9x128xbf16>
      %419 = vector.shape_cast %416 : vector<9x128xbf16> to vector<1x1x9x128xbf16>
      tpu.vector_store %arg9[%c3_330, %c0_331, %c0_332, %c0_333], %419 {strides = array<i32>} : memref<4x9x9x128xbf16, #tpu.memory_space<vmem>>, vector<1x1x9x128xbf16>,
      %c3_334 = arith.constant 3 : index
      %c1_335 = arith.constant 1 : index
      %c0_336 = arith.constant 0 : index
      %c0_337 = arith.constant 0 : index
      %420 = vector.load %arg2[%c3_334, %c1_335, %c0_336, %c0_337] : memref<4x9x9x128xf32, #tpu.memory_space<vmem>>, vector<1x1x9x128xf32>
      %421 = vector.shape_cast %420 : vector<1x1x9x128xf32> to vector<9x128xf32>
      %422 = vector.broadcast %82 : vector<1x128xf32> to vector<9x128xf32>
      %423 = arith.mulf %421, %422 : vector<9x128xf32>
      %424 = vector.broadcast %83 : vector<1x128xf32> to vector<9x128xf32>
      %425 = arith.addf %423, %424 : vector<9x128xf32>
      %cst_338 = arith.constant 0.000000e+00 : f32
      %426 = vector.broadcast %cst_338 : f32 to vector<9x128xf32>
      %427 = arith.maximumf %425, %426 : vector<9x128xf32>
      %428 = arith.truncf %427 : vector<9x128xf32> to vector<9x128xbf16>
      %c3_339 = arith.constant 3 : index
      %c1_340 = arith.constant 1 : index
      %c0_341 = arith.constant 0 : index
      %c0_342 = arith.constant 0 : index
      %429 = vector.load %arg9[%c3_339, %c1_340, %c0_341, %c0_342] : memref<4x9x9x128xbf16, #tpu.memory_space<vmem>>, vector<1x1x9x128xbf16>
      %430 = vector.shape_cast %429 : vector<1x1x9x128xbf16> to vector<9x128xbf16>
      %431 = vector.shape_cast %428 : vector<9x128xbf16> to vector<1x1x9x128xbf16>
      tpu.vector_store %arg9[%c3_339, %c1_340, %c0_341, %c0_342], %431 {strides = array<i32>} : memref<4x9x9x128xbf16, #tpu.memory_space<vmem>>, vector<1x1x9x128xbf16>,
      %c3_343 = arith.constant 3 : index
      %c2_344 = arith.constant 2 : index
      %c0_345 = arith.constant 0 : index
      %c0_346 = arith.constant 0 : index
      %432 = vector.load %arg2[%c3_343, %c2_344, %c0_345, %c0_346] : memref<4x9x9x128xf32, #tpu.memory_space<vmem>>, vector<1x1x9x128xf32>
      %433 = vector.shape_cast %432 : vector<1x1x9x128xf32> to vector<9x128xf32>
      %434 = vector.broadcast %82 : vector<1x128xf32> to vector<9x128xf32>
      %435 = arith.mulf %433, %434 : vector<9x128xf32>
      %436 = vector.broadcast %83 : vector<1x128xf32> to vector<9x128xf32>
      %437 = arith.addf %435, %436 : vector<9x128xf32>
      %cst_347 = arith.constant 0.000000e+00 : f32
      %438 = vector.broadcast %cst_347 : f32 to vector<9x128xf32>
      %439 = arith.maximumf %437, %438 : vector<9x128xf32>
      %440 = arith.truncf %439 : vector<9x128xf32> to vector<9x128xbf16>
      %c3_348 = arith.constant 3 : index
      %c2_349 = arith.constant 2 : index
      %c0_350 = arith.constant 0 : index
      %c0_351 = arith.constant 0 : index
      %441 = vector.load %arg9[%c3_348, %c2_349, %c0_350, %c0_351] : memref<4x9x9x128xbf16, #tpu.memory_space<vmem>>, vector<1x1x9x128xbf16>
      %442 = vector.shape_cast %441 : vector<1x1x9x128xbf16> to vector<9x128xbf16>
      %443 = vector.shape_cast %440 : vector<9x128xbf16> to vector<1x1x9x128xbf16>
      tpu.vector_store %arg9[%c3_348, %c2_349, %c0_350, %c0_351], %443 {strides = array<i32>} : memref<4x9x9x128xbf16, #tpu.memory_space<vmem>>, vector<1x1x9x128xbf16>,
      %c3_352 = arith.constant 3 : index
      %c3_353 = arith.constant 3 : index
      %c0_354 = arith.constant 0 : index
      %c0_355 = arith.constant 0 : index
      %444 = vector.load %arg2[%c3_352, %c3_353, %c0_354, %c0_355] : memref<4x9x9x128xf32, #tpu.memory_space<vmem>>, vector<1x1x9x128xf32>
      %445 = vector.shape_cast %444 : vector<1x1x9x128xf32> to vector<9x128xf32>
      %446 = vector.broadcast %82 : vector<1x128xf32> to vector<9x128xf32>
      %447 = arith.mulf %445, %446 : vector<9x128xf32>
      %448 = vector.broadcast %83 : vector<1x128xf32> to vector<9x128xf32>
      %449 = arith.addf %447, %448 : vector<9x128xf32>
      %cst_356 = arith.constant 0.000000e+00 : f32
      %450 = vector.broadcast %cst_356 : f32 to vector<9x128xf32>
      %451 = arith.maximumf %449, %450 : vector<9x128xf32>
      %452 = arith.truncf %451 : vector<9x128xf32> to vector<9x128xbf16>
      %c3_357 = arith.constant 3 : index
      %c3_358 = arith.constant 3 : index
      %c0_359 = arith.constant 0 : index
      %c0_360 = arith.constant 0 : index
      %453 = vector.load %arg9[%c3_357, %c3_358, %c0_359, %c0_360] : memref<4x9x9x128xbf16, #tpu.memory_space<vmem>>, vector<1x1x9x128xbf16>
      %454 = vector.shape_cast %453 : vector<1x1x9x128xbf16> to vector<9x128xbf16>
      %455 = vector.shape_cast %452 : vector<9x128xbf16> to vector<1x1x9x128xbf16>
      tpu.vector_store %arg9[%c3_357, %c3_358, %c0_359, %c0_360], %455 {strides = array<i32>} : memref<4x9x9x128xbf16, #tpu.memory_space<vmem>>, vector<1x1x9x128xbf16>,
      %c3_361 = arith.constant 3 : index
      %c4_362 = arith.constant 4 : index
      %c0_363 = arith.constant 0 : index
      %c0_364 = arith.constant 0 : index
      %456 = vector.load %arg2[%c3_361, %c4_362, %c0_363, %c0_364] : memref<4x9x9x128xf32, #tpu.memory_space<vmem>>, vector<1x1x9x128xf32>
      %457 = vector.shape_cast %456 : vector<1x1x9x128xf32> to vector<9x128xf32>
      %458 = vector.broadcast %82 : vector<1x128xf32> to vector<9x128xf32>
      %459 = arith.mulf %457, %458 : vector<9x128xf32>
      %460 = vector.broadcast %83 : vector<1x128xf32> to vector<9x128xf32>
      %461 = arith.addf %459, %460 : vector<9x128xf32>
      %cst_365 = arith.constant 0.000000e+00 : f32
      %462 = vector.broadcast %cst_365 : f32 to vector<9x128xf32>
      %463 = arith.maximumf %461, %462 : vector<9x128xf32>
      %464 = arith.truncf %463 : vector<9x128xf32> to vector<9x128xbf16>
      %c3_366 = arith.constant 3 : index
      %c4_367 = arith.constant 4 : index
      %c0_368 = arith.constant 0 : index
      %c0_369 = arith.constant 0 : index
      %465 = vector.load %arg9[%c3_366, %c4_367, %c0_368, %c0_369] : memref<4x9x9x128xbf16, #tpu.memory_space<vmem>>, vector<1x1x9x128xbf16>
      %466 = vector.shape_cast %465 : vector<1x1x9x128xbf16> to vector<9x128xbf16>
      %467 = vector.shape_cast %464 : vector<9x128xbf16> to vector<1x1x9x128xbf16>
      tpu.vector_store %arg9[%c3_366, %c4_367, %c0_368, %c0_369], %467 {strides = array<i32>} : memref<4x9x9x128xbf16, #tpu.memory_space<vmem>>, vector<1x1x9x128xbf16>,
      %c3_370 = arith.constant 3 : index
      %c5_371 = arith.constant 5 : index
      %c0_372 = arith.constant 0 : index
      %c0_373 = arith.constant 0 : index
      %468 = vector.load %arg2[%c3_370, %c5_371, %c0_372, %c0_373] : memref<4x9x9x128xf32, #tpu.memory_space<vmem>>, vector<1x1x9x128xf32>
      %469 = vector.shape_cast %468 : vector<1x1x9x128xf32> to vector<9x128xf32>
      %470 = vector.broadcast %82 : vector<1x128xf32> to vector<9x128xf32>
      %471 = arith.mulf %469, %470 : vector<9x128xf32>
      %472 = vector.broadcast %83 : vector<1x128xf32> to vector<9x128xf32>
      %473 = arith.addf %471, %472 : vector<9x128xf32>
      %cst_374 = arith.constant 0.000000e+00 : f32
      %474 = vector.broadcast %cst_374 : f32 to vector<9x128xf32>
      %475 = arith.maximumf %473, %474 : vector<9x128xf32>
      %476 = arith.truncf %475 : vector<9x128xf32> to vector<9x128xbf16>
      %c3_375 = arith.constant 3 : index
      %c5_376 = arith.constant 5 : index
      %c0_377 = arith.constant 0 : index
      %c0_378 = arith.constant 0 : index
      %477 = vector.load %arg9[%c3_375, %c5_376, %c0_377, %c0_378] : memref<4x9x9x128xbf16, #tpu.memory_space<vmem>>, vector<1x1x9x128xbf16>
      %478 = vector.shape_cast %477 : vector<1x1x9x128xbf16> to vector<9x128xbf16>
      %479 = vector.shape_cast %476 : vector<9x128xbf16> to vector<1x1x9x128xbf16>
      tpu.vector_store %arg9[%c3_375, %c5_376, %c0_377, %c0_378], %479 {strides = array<i32>} : memref<4x9x9x128xbf16, #tpu.memory_space<vmem>>, vector<1x1x9x128xbf16>,
      %c3_379 = arith.constant 3 : index
      %c6_380 = arith.constant 6 : index
      %c0_381 = arith.constant 0 : index
      %c0_382 = arith.constant 0 : index
      %480 = vector.load %arg2[%c3_379, %c6_380, %c0_381, %c0_382] : memref<4x9x9x128xf32, #tpu.memory_space<vmem>>, vector<1x1x9x128xf32>
      %481 = vector.shape_cast %480 : vector<1x1x9x128xf32> to vector<9x128xf32>
      %482 = vector.broadcast %82 : vector<1x128xf32> to vector<9x128xf32>
      %483 = arith.mulf %481, %482 : vector<9x128xf32>
      %484 = vector.broadcast %83 : vector<1x128xf32> to vector<9x128xf32>
      %485 = arith.addf %483, %484 : vector<9x128xf32>
      %cst_383 = arith.constant 0.000000e+00 : f32
      %486 = vector.broadcast %cst_383 : f32 to vector<9x128xf32>
      %487 = arith.maximumf %485, %486 : vector<9x128xf32>
      %488 = arith.truncf %487 : vector<9x128xf32> to vector<9x128xbf16>
      %c3_384 = arith.constant 3 : index
      %c6_385 = arith.constant 6 : index
      %c0_386 = arith.constant 0 : index
      %c0_387 = arith.constant 0 : index
      %489 = vector.load %arg9[%c3_384, %c6_385, %c0_386, %c0_387] : memref<4x9x9x128xbf16, #tpu.memory_space<vmem>>, vector<1x1x9x128xbf16>
      %490 = vector.shape_cast %489 : vector<1x1x9x128xbf16> to vector<9x128xbf16>
      %491 = vector.shape_cast %488 : vector<9x128xbf16> to vector<1x1x9x128xbf16>
      tpu.vector_store %arg9[%c3_384, %c6_385, %c0_386, %c0_387], %491 {strides = array<i32>} : memref<4x9x9x128xbf16, #tpu.memory_space<vmem>>, vector<1x1x9x128xbf16>,
      %c3_388 = arith.constant 3 : index
      %c7_389 = arith.constant 7 : index
      %c0_390 = arith.constant 0 : index
      %c0_391 = arith.constant 0 : index
      %492 = vector.load %arg2[%c3_388, %c7_389, %c0_390, %c0_391] : memref<4x9x9x128xf32, #tpu.memory_space<vmem>>, vector<1x1x9x128xf32>
      %493 = vector.shape_cast %492 : vector<1x1x9x128xf32> to vector<9x128xf32>
      %494 = vector.broadcast %82 : vector<1x128xf32> to vector<9x128xf32>
      %495 = arith.mulf %493, %494 : vector<9x128xf32>
      %496 = vector.broadcast %83 : vector<1x128xf32> to vector<9x128xf32>
      %497 = arith.addf %495, %496 : vector<9x128xf32>
      %cst_392 = arith.constant 0.000000e+00 : f32
      %498 = vector.broadcast %cst_392 : f32 to vector<9x128xf32>
      %499 = arith.maximumf %497, %498 : vector<9x128xf32>
      %500 = arith.truncf %499 : vector<9x128xf32> to vector<9x128xbf16>
      %c3_393 = arith.constant 3 : index
      %c7_394 = arith.constant 7 : index
      %c0_395 = arith.constant 0 : index
      %c0_396 = arith.constant 0 : index
      %501 = vector.load %arg9[%c3_393, %c7_394, %c0_395, %c0_396] : memref<4x9x9x128xbf16, #tpu.memory_space<vmem>>, vector<1x1x9x128xbf16>
      %502 = vector.shape_cast %501 : vector<1x1x9x128xbf16> to vector<9x128xbf16>
      %503 = vector.shape_cast %500 : vector<9x128xbf16> to vector<1x1x9x128xbf16>
      tpu.vector_store %arg9[%c3_393, %c7_394, %c0_395, %c0_396], %503 {strides = array<i32>} : memref<4x9x9x128xbf16, #tpu.memory_space<vmem>>, vector<1x1x9x128xbf16>,
      %c3_397 = arith.constant 3 : index
      %c8_398 = arith.constant 8 : index
      %c0_399 = arith.constant 0 : index
      %c0_400 = arith.constant 0 : index
      %504 = vector.load %arg2[%c3_397, %c8_398, %c0_399, %c0_400] : memref<4x9x9x128xf32, #tpu.memory_space<vmem>>, vector<1x1x9x128xf32>
      %505 = vector.shape_cast %504 : vector<1x1x9x128xf32> to vector<9x128xf32>
      %506 = vector.broadcast %82 : vector<1x128xf32> to vector<9x128xf32>
      %507 = arith.mulf %505, %506 : vector<9x128xf32>
      %508 = vector.broadcast %83 : vector<1x128xf32> to vector<9x128xf32>
      %509 = arith.addf %507, %508 : vector<9x128xf32>
      %cst_401 = arith.constant 0.000000e+00 : f32
      %510 = vector.broadcast %cst_401 : f32 to vector<9x128xf32>
      %511 = arith.maximumf %509, %510 : vector<9x128xf32>
      %512 = arith.truncf %511 : vector<9x128xf32> to vector<9x128xbf16>
      %c3_402 = arith.constant 3 : index
      %c8_403 = arith.constant 8 : index
      %c0_404 = arith.constant 0 : index
      %c0_405 = arith.constant 0 : index
      %513 = vector.load %arg9[%c3_402, %c8_403, %c0_404, %c0_405] : memref<4x9x9x128xbf16, #tpu.memory_space<vmem>>, vector<1x1x9x128xbf16>
      %514 = vector.shape_cast %513 : vector<1x1x9x128xbf16> to vector<9x128xbf16>
      %515 = vector.shape_cast %512 : vector<9x128xbf16> to vector<1x1x9x128xbf16>
      tpu.vector_store %arg9[%c3_402, %c8_403, %c0_404, %c0_405], %515 {strides = array<i32>} : memref<4x9x9x128xbf16, #tpu.memory_space<vmem>>, vector<1x1x9x128xbf16>,
    } else {
    }
    %cst = arith.constant 0.000000e+00 : bf16
    %3 = vector.broadcast %cst : bf16 to vector<1x10x10x128xbf16>
    %c0 = arith.constant 0 : index
    %c0_1 = arith.constant 0 : index
    %c0_2 = arith.constant 0 : index
    %c0_3 = arith.constant 0 : index
    %4 = vector.load %arg8[%c0, %c0_1, %c0_2, %c0_3] : memref<1x10x10x128xbf16, #tpu.memory_space<vmem>>, vector<1x10x10x128xbf16>
    tpu.vector_store %arg8[%c0, %c0_1, %c0_2, %c0_3], %3 {strides = array<i32>} : memref<1x10x10x128xbf16, #tpu.memory_space<vmem>>, vector<1x10x10x128xbf16>,
    %c0_4 = arith.constant 0 : index
    %c0_5 = arith.constant 0 : index
    %5 = vector.load %arg6[%c0_4, %c0_5] : memref<1x128xf32, #tpu.memory_space<vmem>>, vector<1x128xf32>
    %c0_6 = arith.constant 0 : index
    %c0_7 = arith.constant 0 : index
    %6 = vector.load %arg7[%c0_6, %c0_7] : memref<1x128xf32, #tpu.memory_space<vmem>>, vector<1x128xf32>
    %cst_8 = arith.constant 0.000000e+00 : f32
    %7 = vector.broadcast %cst_8 : f32 to vector<64x128xf32>
    %c0_9 = arith.constant 0 : index
    %c0_10 = arith.constant 0 : index
    %c0_11 = arith.constant 0 : index
    %c0_12 = arith.constant 0 : index
    %8 = vector.load %arg9[%c0_9, %c0_10, %c0_11, %c0_12] : memref<4x9x9x128xbf16, #tpu.memory_space<vmem>>, vector<1x8x8x128xbf16>
    %9 = vector.shape_cast %8 : vector<1x8x8x128xbf16> to vector<8x8x128xbf16>
    %10 = vector.shape_cast %9 : vector<8x8x128xbf16> to vector<64x128xbf16>
    %c0_13 = arith.constant 0 : index
    %c0_14 = arith.constant 0 : index
    %c0_15 = arith.constant 0 : index
    %11 = vector.load %arg5[%c0_13, %c0_14, %c0_15] : memref<9x128x128xbf16, #tpu.memory_space<vmem>>, vector<1x128x128xbf16>
    %12 = vector.shape_cast %11 : vector<1x128x128xbf16> to vector<128x128xbf16>
    %cst_16 = arith.constant dense<0.000000e+00> : vector<64x128xf32>
    %13 = tpu.matmul %10, %12, %cst_16 {dimension_numbers = #tpu.dot_dimension_numbers<[1], [0], [0], [1], [0, 0, 1, 1], [], []>} : vector<64x128xbf16>, vector<128x128xbf16>, vector<64x128xf32> -> vector<64x128xf32>
    %14 = arith.addf %7, %13 : vector<64x128xf32>
    %c1 = arith.constant 1 : index
    %c0_17 = arith.constant 0 : index
    %c0_18 = arith.constant 0 : index
    %c0_19 = arith.constant 0 : index
    %15 = vector.load %arg9[%c1, %c0_17, %c0_18, %c0_19] : memref<4x9x9x128xbf16, #tpu.memory_space<vmem>>, vector<1x8x8x128xbf16>
    %16 = vector.shape_cast %15 : vector<1x8x8x128xbf16> to vector<8x8x128xbf16>
    %17 = vector.shape_cast %16 : vector<8x8x128xbf16> to vector<64x128xbf16>
    %c1_20 = arith.constant 1 : index
    %c0_21 = arith.constant 0 : index
    %c0_22 = arith.constant 0 : index
    %18 = vector.load %arg5[%c1_20, %c0_21, %c0_22] : memref<9x128x128xbf16, #tpu.memory_space<vmem>>, vector<1x128x128xbf16>
    %19 = vector.shape_cast %18 : vector<1x128x128xbf16> to vector<128x128xbf16>
    %cst_23 = arith.constant dense<0.000000e+00> : vector<64x128xf32>
    %20 = tpu.matmul %17, %19, %cst_23 {dimension_numbers = #tpu.dot_dimension_numbers<[1], [0], [0], [1], [0, 0, 1, 1], [], []>} : vector<64x128xbf16>, vector<128x128xbf16>, vector<64x128xf32> -> vector<64x128xf32>
    %21 = arith.addf %14, %20 : vector<64x128xf32>
    %c0_24 = arith.constant 0 : index
    %c0_25 = arith.constant 0 : index
    %c1_26 = arith.constant 1 : index
    %c0_27 = arith.constant 0 : index
    %22 = vector.load %arg9[%c0_24, %c0_25, %c1_26, %c0_27] : memref<4x9x9x128xbf16, #tpu.memory_space<vmem>>, vector<1x8x8x128xbf16>
    %23 = vector.shape_cast %22 : vector<1x8x8x128xbf16> to vector<8x8x128xbf16>
    %24 = vector.shape_cast %23 : vector<8x8x128xbf16> to vector<64x128xbf16>
    %c2 = arith.constant 2 : index
    %c0_28 = arith.constant 0 : index
    %c0_29 = arith.constant 0 : index
    %25 = vector.load %arg5[%c2, %c0_28, %c0_29] : memref<9x128x128xbf16, #tpu.memory_space<vmem>>, vector<1x128x128xbf16>
    %26 = vector.shape_cast %25 : vector<1x128x128xbf16> to vector<128x128xbf16>
    %cst_30 = arith.constant dense<0.000000e+00> : vector<64x128xf32>
    %27 = tpu.matmul %24, %26, %cst_30 {dimension_numbers = #tpu.dot_dimension_numbers<[1], [0], [0], [1], [0, 0, 1, 1], [], []>} : vector<64x128xbf16>, vector<128x128xbf16>, vector<64x128xf32> -> vector<64x128xf32>
    %28 = arith.addf %21, %27 : vector<64x128xf32>
    %c2_31 = arith.constant 2 : index
    %c0_32 = arith.constant 0 : index
    %c0_33 = arith.constant 0 : index
    %c0_34 = arith.constant 0 : index
    %29 = vector.load %arg9[%c2_31, %c0_32, %c0_33, %c0_34] : memref<4x9x9x128xbf16, #tpu.memory_space<vmem>>, vector<1x8x8x128xbf16>
    %30 = vector.shape_cast %29 : vector<1x8x8x128xbf16> to vector<8x8x128xbf16>
    %31 = vector.shape_cast %30 : vector<8x8x128xbf16> to vector<64x128xbf16>
    %c3 = arith.constant 3 : index
    %c0_35 = arith.constant 0 : index
    %c0_36 = arith.constant 0 : index
    %32 = vector.load %arg5[%c3, %c0_35, %c0_36] : memref<9x128x128xbf16, #tpu.memory_space<vmem>>, vector<1x128x128xbf16>
    %33 = vector.shape_cast %32 : vector<1x128x128xbf16> to vector<128x128xbf16>
    %cst_37 = arith.constant dense<0.000000e+00> : vector<64x128xf32>
    %34 = tpu.matmul %31, %33, %cst_37 {dimension_numbers = #tpu.dot_dimension_numbers<[1], [0], [0], [1], [0, 0, 1, 1], [], []>} : vector<64x128xbf16>, vector<128x128xbf16>, vector<64x128xf32> -> vector<64x128xf32>
    %35 = arith.addf %28, %34 : vector<64x128xf32>
    %c3_38 = arith.constant 3 : index
    %c0_39 = arith.constant 0 : index
    %c0_40 = arith.constant 0 : index
    %c0_41 = arith.constant 0 : index
    %36 = vector.load %arg9[%c3_38, %c0_39, %c0_40, %c0_41] : memref<4x9x9x128xbf16, #tpu.memory_space<vmem>>, vector<1x8x8x128xbf16>
    %37 = vector.shape_cast %36 : vector<1x8x8x128xbf16> to vector<8x8x128xbf16>
    %38 = vector.shape_cast %37 : vector<8x8x128xbf16> to vector<64x128xbf16>
    %c4 = arith.constant 4 : index
    %c0_42 = arith.constant 0 : index
    %c0_43 = arith.constant 0 : index
    %39 = vector.load %arg5[%c4, %c0_42, %c0_43] : memref<9x128x128xbf16, #tpu.memory_space<vmem>>, vector<1x128x128xbf16>
    %40 = vector.shape_cast %39 : vector<1x128x128xbf16> to vector<128x128xbf16>
    %cst_44 = arith.constant dense<0.000000e+00> : vector<64x128xf32>
    %41 = tpu.matmul %38, %40, %cst_44 {dimension_numbers = #tpu.dot_dimension_numbers<[1], [0], [0], [1], [0, 0, 1, 1], [], []>} : vector<64x128xbf16>, vector<128x128xbf16>, vector<64x128xf32> -> vector<64x128xf32>
    %42 = arith.addf %35, %41 : vector<64x128xf32>
    %c2_45 = arith.constant 2 : index
    %c0_46 = arith.constant 0 : index
    %c1_47 = arith.constant 1 : index
    %c0_48 = arith.constant 0 : index
    %43 = vector.load %arg9[%c2_45, %c0_46, %c1_47, %c0_48] : memref<4x9x9x128xbf16, #tpu.memory_space<vmem>>, vector<1x8x8x128xbf16>
    %44 = vector.shape_cast %43 : vector<1x8x8x128xbf16> to vector<8x8x128xbf16>
    %45 = vector.shape_cast %44 : vector<8x8x128xbf16> to vector<64x128xbf16>
    %c5 = arith.constant 5 : index
    %c0_49 = arith.constant 0 : index
    %c0_50 = arith.constant 0 : index
    %46 = vector.load %arg5[%c5, %c0_49, %c0_50] : memref<9x128x128xbf16, #tpu.memory_space<vmem>>, vector<1x128x128xbf16>
    %47 = vector.shape_cast %46 : vector<1x128x128xbf16> to vector<128x128xbf16>
    %cst_51 = arith.constant dense<0.000000e+00> : vector<64x128xf32>
    %48 = tpu.matmul %45, %47, %cst_51 {dimension_numbers = #tpu.dot_dimension_numbers<[1], [0], [0], [1], [0, 0, 1, 1], [], []>} : vector<64x128xbf16>, vector<128x128xbf16>, vector<64x128xf32> -> vector<64x128xf32>
    %49 = arith.addf %42, %48 : vector<64x128xf32>
    %c0_52 = arith.constant 0 : index
    %c1_53 = arith.constant 1 : index
    %c0_54 = arith.constant 0 : index
    %c0_55 = arith.constant 0 : index
    %50 = vector.load %arg9[%c0_52, %c1_53, %c0_54, %c0_55] : memref<4x9x9x128xbf16, #tpu.memory_space<vmem>>, vector<1x8x8x128xbf16>
    %51 = vector.shape_cast %50 : vector<1x8x8x128xbf16> to vector<8x8x128xbf16>
    %52 = vector.shape_cast %51 : vector<8x8x128xbf16> to vector<64x128xbf16>
    %c6 = arith.constant 6 : index
    %c0_56 = arith.constant 0 : index
    %c0_57 = arith.constant 0 : index
    %53 = vector.load %arg5[%c6, %c0_56, %c0_57] : memref<9x128x128xbf16, #tpu.memory_space<vmem>>, vector<1x128x128xbf16>
    %54 = vector.shape_cast %53 : vector<1x128x128xbf16> to vector<128x128xbf16>
    %cst_58 = arith.constant dense<0.000000e+00> : vector<64x128xf32>
    %55 = tpu.matmul %52, %54, %cst_58 {dimension_numbers = #tpu.dot_dimension_numbers<[1], [0], [0], [1], [0, 0, 1, 1], [], []>} : vector<64x128xbf16>, vector<128x128xbf16>, vector<64x128xf32> -> vector<64x128xf32>
    %56 = arith.addf %49, %55 : vector<64x128xf32>
    %c1_59 = arith.constant 1 : index
    %c1_60 = arith.constant 1 : index
    %c0_61 = arith.constant 0 : index
    %c0_62 = arith.constant 0 : index
    %57 = vector.load %arg9[%c1_59, %c1_60, %c0_61, %c0_62] : memref<4x9x9x128xbf16, #tpu.memory_space<vmem>>, vector<1x8x8x128xbf16>
    %58 = vector.shape_cast %57 : vector<1x8x8x128xbf16> to vector<8x8x128xbf16>
    %59 = vector.shape_cast %58 : vector<8x8x128xbf16> to vector<64x128xbf16>
    %c7 = arith.constant 7 : index
    %c0_63 = arith.constant 0 : index
    %c0_64 = arith.constant 0 : index
    %60 = vector.load %arg5[%c7, %c0_63, %c0_64] : memref<9x128x128xbf16, #tpu.memory_space<vmem>>, vector<1x128x128xbf16>
    %61 = vector.shape_cast %60 : vector<1x128x128xbf16> to vector<128x128xbf16>
    %cst_65 = arith.constant dense<0.000000e+00> : vector<64x128xf32>
    %62 = tpu.matmul %59, %61, %cst_65 {dimension_numbers = #tpu.dot_dimension_numbers<[1], [0], [0], [1], [0, 0, 1, 1], [], []>} : vector<64x128xbf16>, vector<128x128xbf16>, vector<64x128xf32> -> vector<64x128xf32>
    %63 = arith.addf %56, %62 : vector<64x128xf32>
    %c0_66 = arith.constant 0 : index
    %c1_67 = arith.constant 1 : index
    %c1_68 = arith.constant 1 : index
    %c0_69 = arith.constant 0 : index
    %64 = vector.load %arg9[%c0_66, %c1_67, %c1_68, %c0_69] : memref<4x9x9x128xbf16, #tpu.memory_space<vmem>>, vector<1x8x8x128xbf16>
    %65 = vector.shape_cast %64 : vector<1x8x8x128xbf16> to vector<8x8x128xbf16>
    %66 = vector.shape_cast %65 : vector<8x8x128xbf16> to vector<64x128xbf16>
    %c8 = arith.constant 8 : index
    %c0_70 = arith.constant 0 : index
    %c0_71 = arith.constant 0 : index
    %67 = vector.load %arg5[%c8, %c0_70, %c0_71] : memref<9x128x128xbf16, #tpu.memory_space<vmem>>, vector<1x128x128xbf16>
    %68 = vector.shape_cast %67 : vector<1x128x128xbf16> to vector<128x128xbf16>
    %cst_72 = arith.constant dense<0.000000e+00> : vector<64x128xf32>
    %69 = tpu.matmul %66, %68, %cst_72 {dimension_numbers = #tpu.dot_dimension_numbers<[1], [0], [0], [1], [0, 0, 1, 1], [], []>} : vector<64x128xbf16>, vector<128x128xbf16>, vector<64x128xf32> -> vector<64x128xf32>
    %70 = arith.addf %63, %69 : vector<64x128xf32>
    %71 = vector.broadcast %5 : vector<1x128xf32> to vector<64x128xf32>
    %72 = arith.mulf %70, %71 : vector<64x128xf32>
    %73 = vector.broadcast %6 : vector<1x128xf32> to vector<64x128xf32>
    %74 = arith.addf %72, %73 : vector<64x128xf32>
    %cst_73 = arith.constant 0.000000e+00 : f32
    %75 = vector.broadcast %cst_73 : f32 to vector<64x128xf32>
    %76 = arith.maximumf %74, %75 : vector<64x128xf32>
    %77 = vector.shape_cast %76 : vector<64x128xf32> to vector<8x8x128xf32>
    %78 = arith.truncf %77 : vector<8x8x128xf32> to vector<8x8x128xbf16>
    %c0_74 = arith.constant 0 : index
    %c1_75 = arith.constant 1 : index
    %c1_76 = arith.constant 1 : index
    %c0_77 = arith.constant 0 : index
    %79 = vector.load %arg8[%c0_74, %c1_75, %c1_76, %c0_77] : memref<1x10x10x128xbf16, #tpu.memory_space<vmem>>, vector<1x8x8x128xbf16>
    %80 = vector.shape_cast %79 : vector<1x8x8x128xbf16> to vector<8x8x128xbf16>
    %81 = vector.shape_cast %78 : vector<8x8x128xbf16> to vector<1x8x8x128xbf16>
    tpu.vector_store %arg8[%c0_74, %c1_75, %c1_76, %c0_77], %81 {strides = array<i32>} : memref<1x10x10x128xbf16, #tpu.memory_space<vmem>>, vector<1x8x8x128xbf16>,
    return
  }
  func.func @transform_0(%arg0: i32, %arg1: i32) -> (i32, i32, i32, i32) {
    %c0_i32 = arith.constant 0 : i32
    %c0_i32_0 = arith.constant 0 : i32
    %c0_i32_1 = arith.constant 0 : i32
    %c0_i32_2 = arith.constant 0 : i32
    return %arg0, %c0_i32, %c0_i32_0, %c0_i32_1 : i32, i32, i32, i32
  }
  func.func @transform_1(%arg0: i32, %arg1: i32) -> (i32, i32) {
    %c0_i32 = arith.constant 0 : i32
    %c0_i32_0 = arith.constant 0 : i32
    %c0_i32_1 = arith.constant 0 : i32
    return %c0_i32, %c0_i32_0 : i32, i32
  }
  func.func @transform_2(%arg0: i32, %arg1: i32) -> (i32, i32) {
    %c0_i32 = arith.constant 0 : i32
    %c0_i32_0 = arith.constant 0 : i32
    %c0_i32_1 = arith.constant 0 : i32
    return %c0_i32, %c0_i32_0 : i32, i32
  }
  func.func @transform_3(%arg0: i32, %arg1: i32) -> (i32, i32, i32) {
    %c0_i32 = arith.constant 0 : i32
    %c0_i32_0 = arith.constant 0 : i32
    %c0_i32_1 = arith.constant 0 : i32
    return %c0_i32, %c0_i32_0, %arg1 : i32, i32, i32
  }
  func.func @transform_4(%arg0: i32, %arg1: i32) -> (i32, i32) {
    %c0_i32 = arith.constant 0 : i32
    %c0_i32_0 = arith.constant 0 : i32
    return %c0_i32, %arg1 : i32, i32
  }
  func.func @transform_5(%arg0: i32, %arg1: i32) -> (i32, i32) {
    %c0_i32 = arith.constant 0 : i32
    %c0_i32_0 = arith.constant 0 : i32
    return %c0_i32, %arg1 : i32, i32
  }
  func.func @transform_6(%arg0: i32, %arg1: i32) -> (i32, i32, i32, i32) {
    %c0_i32 = arith.constant 0 : i32
    %c0_i32_0 = arith.constant 0 : i32
    %c0_i32_1 = arith.constant 0 : i32
    return %arg0, %c0_i32, %c0_i32_0, %arg1 : i32, i32, i32, i32
  }
}

module attributes {stable_mosaic.version = 11 : i64} {
  func.func @_conv2_add_kernel_proj(%arg0: i32, %arg1: i32, %arg2: memref<1x10x10x128xbf16, #tpu.memory_space<vmem>>, %arg3: memref<9x128x128xbf16, #tpu.memory_space<vmem>>, %arg4: memref<1x8x8x128xf32, #tpu.memory_space<vmem>>, %arg5: memref<1x128xf32, #tpu.memory_space<vmem>>, %arg6: memref<1x128xf32, #tpu.memory_space<vmem>>, %arg7: memref<128x128xbf16, #tpu.memory_space<vmem>>, %arg8: memref<1x8x8x128xf32, #tpu.memory_space<vmem>>) attributes {dimension_semantics = [#tpu.dimension_semantics<parallel>, #tpu.dimension_semantics<arbitrary>], iteration_bounds = array<i64: 2, 1>, scalar_prefetch = 0 : i64, scratch_operands = 0 : i64, tpu.core_type = #tpu.core_type<tc>, window_params = [{transform_indices = @transform_0, window_bounds = array<i64: 1, 10, 10, 128>}, {transform_indices = @transform_1, window_bounds = array<i64: 9, 128, 128>}, {transform_indices = @transform_2, window_bounds = array<i64: 1, 8, 8, 128>}, {pipeline_mode = #tpu.pipeline_mode<synchronous>, transform_indices = @transform_3, window_bounds = array<i64: 1, 128>}, {pipeline_mode = #tpu.pipeline_mode<synchronous>, transform_indices = @transform_4, window_bounds = array<i64: 1, 128>}, {transform_indices = @transform_5, window_bounds = array<i64: 128, 128>}, {transform_indices = @transform_6, window_bounds = array<i64: 1, 8, 8, 128>}]} {
    %c0 = arith.constant 0 : index
    %c0_0 = arith.constant 0 : index
    %0 = vector.load %arg5[%c0, %c0_0] : memref<1x128xf32, #tpu.memory_space<vmem>>, vector<1x128xf32>
    %c0_1 = arith.constant 0 : index
    %c0_2 = arith.constant 0 : index
    %1 = vector.load %arg6[%c0_1, %c0_2] : memref<1x128xf32, #tpu.memory_space<vmem>>, vector<1x128xf32>
    %cst = arith.constant 0.000000e+00 : f32
    %2 = vector.broadcast %cst : f32 to vector<64x128xf32>
    %c0_3 = arith.constant 0 : index
    %c0_4 = arith.constant 0 : index
    %c0_5 = arith.constant 0 : index
    %c0_6 = arith.constant 0 : index
    %3 = vector.load %arg2[%c0_3, %c0_4, %c0_5, %c0_6] : memref<1x10x10x128xbf16, #tpu.memory_space<vmem>>, vector<1x8x8x128xbf16>
    %4 = vector.shape_cast %3 : vector<1x8x8x128xbf16> to vector<8x8x128xbf16>
    %5 = vector.shape_cast %4 : vector<8x8x128xbf16> to vector<64x128xbf16>
    %c0_7 = arith.constant 0 : index
    %c0_8 = arith.constant 0 : index
    %c0_9 = arith.constant 0 : index
    %6 = vector.load %arg3[%c0_7, %c0_8, %c0_9] : memref<9x128x128xbf16, #tpu.memory_space<vmem>>, vector<1x128x128xbf16>
    %7 = vector.shape_cast %6 : vector<1x128x128xbf16> to vector<128x128xbf16>
    %cst_10 = arith.constant dense<0.000000e+00> : vector<64x128xf32>
    %8 = tpu.matmul %5, %7, %cst_10 {dimension_numbers = #tpu.dot_dimension_numbers<[1], [0], [0], [1], [0, 0, 1, 1], [], []>} : vector<64x128xbf16>, vector<128x128xbf16>, vector<64x128xf32> -> vector<64x128xf32>
    %9 = arith.addf %2, %8 : vector<64x128xf32>
    %c0_11 = arith.constant 0 : index
    %c0_12 = arith.constant 0 : index
    %c1 = arith.constant 1 : index
    %c0_13 = arith.constant 0 : index
    %10 = vector.load %arg2[%c0_11, %c0_12, %c1, %c0_13] : memref<1x10x10x128xbf16, #tpu.memory_space<vmem>>, vector<1x8x8x128xbf16>
    %11 = vector.shape_cast %10 : vector<1x8x8x128xbf16> to vector<8x8x128xbf16>
    %12 = vector.shape_cast %11 : vector<8x8x128xbf16> to vector<64x128xbf16>
    %c1_14 = arith.constant 1 : index
    %c0_15 = arith.constant 0 : index
    %c0_16 = arith.constant 0 : index
    %13 = vector.load %arg3[%c1_14, %c0_15, %c0_16] : memref<9x128x128xbf16, #tpu.memory_space<vmem>>, vector<1x128x128xbf16>
    %14 = vector.shape_cast %13 : vector<1x128x128xbf16> to vector<128x128xbf16>
    %cst_17 = arith.constant dense<0.000000e+00> : vector<64x128xf32>
    %15 = tpu.matmul %12, %14, %cst_17 {dimension_numbers = #tpu.dot_dimension_numbers<[1], [0], [0], [1], [0, 0, 1, 1], [], []>} : vector<64x128xbf16>, vector<128x128xbf16>, vector<64x128xf32> -> vector<64x128xf32>
    %16 = arith.addf %9, %15 : vector<64x128xf32>
    %c0_18 = arith.constant 0 : index
    %c0_19 = arith.constant 0 : index
    %c2 = arith.constant 2 : index
    %c0_20 = arith.constant 0 : index
    %17 = vector.load %arg2[%c0_18, %c0_19, %c2, %c0_20] : memref<1x10x10x128xbf16, #tpu.memory_space<vmem>>, vector<1x8x8x128xbf16>
    %18 = vector.shape_cast %17 : vector<1x8x8x128xbf16> to vector<8x8x128xbf16>
    %19 = vector.shape_cast %18 : vector<8x8x128xbf16> to vector<64x128xbf16>
    %c2_21 = arith.constant 2 : index
    %c0_22 = arith.constant 0 : index
    %c0_23 = arith.constant 0 : index
    %20 = vector.load %arg3[%c2_21, %c0_22, %c0_23] : memref<9x128x128xbf16, #tpu.memory_space<vmem>>, vector<1x128x128xbf16>
    %21 = vector.shape_cast %20 : vector<1x128x128xbf16> to vector<128x128xbf16>
    %cst_24 = arith.constant dense<0.000000e+00> : vector<64x128xf32>
    %22 = tpu.matmul %19, %21, %cst_24 {dimension_numbers = #tpu.dot_dimension_numbers<[1], [0], [0], [1], [0, 0, 1, 1], [], []>} : vector<64x128xbf16>, vector<128x128xbf16>, vector<64x128xf32> -> vector<64x128xf32>
    %23 = arith.addf %16, %22 : vector<64x128xf32>
    %c0_25 = arith.constant 0 : index
    %c1_26 = arith.constant 1 : index
    %c0_27 = arith.constant 0 : index
    %c0_28 = arith.constant 0 : index
    %24 = vector.load %arg2[%c0_25, %c1_26, %c0_27, %c0_28] : memref<1x10x10x128xbf16, #tpu.memory_space<vmem>>, vector<1x8x8x128xbf16>
    %25 = vector.shape_cast %24 : vector<1x8x8x128xbf16> to vector<8x8x128xbf16>
    %26 = vector.shape_cast %25 : vector<8x8x128xbf16> to vector<64x128xbf16>
    %c3 = arith.constant 3 : index
    %c0_29 = arith.constant 0 : index
    %c0_30 = arith.constant 0 : index
    %27 = vector.load %arg3[%c3, %c0_29, %c0_30] : memref<9x128x128xbf16, #tpu.memory_space<vmem>>, vector<1x128x128xbf16>
    %28 = vector.shape_cast %27 : vector<1x128x128xbf16> to vector<128x128xbf16>
    %cst_31 = arith.constant dense<0.000000e+00> : vector<64x128xf32>
    %29 = tpu.matmul %26, %28, %cst_31 {dimension_numbers = #tpu.dot_dimension_numbers<[1], [0], [0], [1], [0, 0, 1, 1], [], []>} : vector<64x128xbf16>, vector<128x128xbf16>, vector<64x128xf32> -> vector<64x128xf32>
    %30 = arith.addf %23, %29 : vector<64x128xf32>
    %c0_32 = arith.constant 0 : index
    %c1_33 = arith.constant 1 : index
    %c1_34 = arith.constant 1 : index
    %c0_35 = arith.constant 0 : index
    %31 = vector.load %arg2[%c0_32, %c1_33, %c1_34, %c0_35] : memref<1x10x10x128xbf16, #tpu.memory_space<vmem>>, vector<1x8x8x128xbf16>
    %32 = vector.shape_cast %31 : vector<1x8x8x128xbf16> to vector<8x8x128xbf16>
    %33 = vector.shape_cast %32 : vector<8x8x128xbf16> to vector<64x128xbf16>
    %c4 = arith.constant 4 : index
    %c0_36 = arith.constant 0 : index
    %c0_37 = arith.constant 0 : index
    %34 = vector.load %arg3[%c4, %c0_36, %c0_37] : memref<9x128x128xbf16, #tpu.memory_space<vmem>>, vector<1x128x128xbf16>
    %35 = vector.shape_cast %34 : vector<1x128x128xbf16> to vector<128x128xbf16>
    %cst_38 = arith.constant dense<0.000000e+00> : vector<64x128xf32>
    %36 = tpu.matmul %33, %35, %cst_38 {dimension_numbers = #tpu.dot_dimension_numbers<[1], [0], [0], [1], [0, 0, 1, 1], [], []>} : vector<64x128xbf16>, vector<128x128xbf16>, vector<64x128xf32> -> vector<64x128xf32>
    %37 = arith.addf %30, %36 : vector<64x128xf32>
    %c0_39 = arith.constant 0 : index
    %c1_40 = arith.constant 1 : index
    %c2_41 = arith.constant 2 : index
    %c0_42 = arith.constant 0 : index
    %38 = vector.load %arg2[%c0_39, %c1_40, %c2_41, %c0_42] : memref<1x10x10x128xbf16, #tpu.memory_space<vmem>>, vector<1x8x8x128xbf16>
    %39 = vector.shape_cast %38 : vector<1x8x8x128xbf16> to vector<8x8x128xbf16>
    %40 = vector.shape_cast %39 : vector<8x8x128xbf16> to vector<64x128xbf16>
    %c5 = arith.constant 5 : index
    %c0_43 = arith.constant 0 : index
    %c0_44 = arith.constant 0 : index
    %41 = vector.load %arg3[%c5, %c0_43, %c0_44] : memref<9x128x128xbf16, #tpu.memory_space<vmem>>, vector<1x128x128xbf16>
    %42 = vector.shape_cast %41 : vector<1x128x128xbf16> to vector<128x128xbf16>
    %cst_45 = arith.constant dense<0.000000e+00> : vector<64x128xf32>
    %43 = tpu.matmul %40, %42, %cst_45 {dimension_numbers = #tpu.dot_dimension_numbers<[1], [0], [0], [1], [0, 0, 1, 1], [], []>} : vector<64x128xbf16>, vector<128x128xbf16>, vector<64x128xf32> -> vector<64x128xf32>
    %44 = arith.addf %37, %43 : vector<64x128xf32>
    %c0_46 = arith.constant 0 : index
    %c2_47 = arith.constant 2 : index
    %c0_48 = arith.constant 0 : index
    %c0_49 = arith.constant 0 : index
    %45 = vector.load %arg2[%c0_46, %c2_47, %c0_48, %c0_49] : memref<1x10x10x128xbf16, #tpu.memory_space<vmem>>, vector<1x8x8x128xbf16>
    %46 = vector.shape_cast %45 : vector<1x8x8x128xbf16> to vector<8x8x128xbf16>
    %47 = vector.shape_cast %46 : vector<8x8x128xbf16> to vector<64x128xbf16>
    %c6 = arith.constant 6 : index
    %c0_50 = arith.constant 0 : index
    %c0_51 = arith.constant 0 : index
    %48 = vector.load %arg3[%c6, %c0_50, %c0_51] : memref<9x128x128xbf16, #tpu.memory_space<vmem>>, vector<1x128x128xbf16>
    %49 = vector.shape_cast %48 : vector<1x128x128xbf16> to vector<128x128xbf16>
    %cst_52 = arith.constant dense<0.000000e+00> : vector<64x128xf32>
    %50 = tpu.matmul %47, %49, %cst_52 {dimension_numbers = #tpu.dot_dimension_numbers<[1], [0], [0], [1], [0, 0, 1, 1], [], []>} : vector<64x128xbf16>, vector<128x128xbf16>, vector<64x128xf32> -> vector<64x128xf32>
    %51 = arith.addf %44, %50 : vector<64x128xf32>
    %c0_53 = arith.constant 0 : index
    %c2_54 = arith.constant 2 : index
    %c1_55 = arith.constant 1 : index
    %c0_56 = arith.constant 0 : index
    %52 = vector.load %arg2[%c0_53, %c2_54, %c1_55, %c0_56] : memref<1x10x10x128xbf16, #tpu.memory_space<vmem>>, vector<1x8x8x128xbf16>
    %53 = vector.shape_cast %52 : vector<1x8x8x128xbf16> to vector<8x8x128xbf16>
    %54 = vector.shape_cast %53 : vector<8x8x128xbf16> to vector<64x128xbf16>
    %c7 = arith.constant 7 : index
    %c0_57 = arith.constant 0 : index
    %c0_58 = arith.constant 0 : index
    %55 = vector.load %arg3[%c7, %c0_57, %c0_58] : memref<9x128x128xbf16, #tpu.memory_space<vmem>>, vector<1x128x128xbf16>
    %56 = vector.shape_cast %55 : vector<1x128x128xbf16> to vector<128x128xbf16>
    %cst_59 = arith.constant dense<0.000000e+00> : vector<64x128xf32>
    %57 = tpu.matmul %54, %56, %cst_59 {dimension_numbers = #tpu.dot_dimension_numbers<[1], [0], [0], [1], [0, 0, 1, 1], [], []>} : vector<64x128xbf16>, vector<128x128xbf16>, vector<64x128xf32> -> vector<64x128xf32>
    %58 = arith.addf %51, %57 : vector<64x128xf32>
    %c0_60 = arith.constant 0 : index
    %c2_61 = arith.constant 2 : index
    %c2_62 = arith.constant 2 : index
    %c0_63 = arith.constant 0 : index
    %59 = vector.load %arg2[%c0_60, %c2_61, %c2_62, %c0_63] : memref<1x10x10x128xbf16, #tpu.memory_space<vmem>>, vector<1x8x8x128xbf16>
    %60 = vector.shape_cast %59 : vector<1x8x8x128xbf16> to vector<8x8x128xbf16>
    %61 = vector.shape_cast %60 : vector<8x8x128xbf16> to vector<64x128xbf16>
    %c8 = arith.constant 8 : index
    %c0_64 = arith.constant 0 : index
    %c0_65 = arith.constant 0 : index
    %62 = vector.load %arg3[%c8, %c0_64, %c0_65] : memref<9x128x128xbf16, #tpu.memory_space<vmem>>, vector<1x128x128xbf16>
    %63 = vector.shape_cast %62 : vector<1x128x128xbf16> to vector<128x128xbf16>
    %cst_66 = arith.constant dense<0.000000e+00> : vector<64x128xf32>
    %64 = tpu.matmul %61, %63, %cst_66 {dimension_numbers = #tpu.dot_dimension_numbers<[1], [0], [0], [1], [0, 0, 1, 1], [], []>} : vector<64x128xbf16>, vector<128x128xbf16>, vector<64x128xf32> -> vector<64x128xf32>
    %65 = arith.addf %58, %64 : vector<64x128xf32>
    %c0_67 = arith.constant 0 : index
    %c0_68 = arith.constant 0 : index
    %c0_69 = arith.constant 0 : index
    %c0_70 = arith.constant 0 : index
    %66 = vector.load %arg4[%c0_67, %c0_68, %c0_69, %c0_70] : memref<1x8x8x128xf32, #tpu.memory_space<vmem>>, vector<1x8x8x128xf32>
    %67 = vector.shape_cast %66 : vector<1x8x8x128xf32> to vector<8x8x128xf32>
    %68 = vector.shape_cast %0 : vector<1x128xf32> to vector<1x1x128xf32>
    %69 = vector.broadcast %68 : vector<1x1x128xf32> to vector<8x8x128xf32>
    %70 = arith.mulf %67, %69 : vector<8x8x128xf32>
    %71 = vector.shape_cast %1 : vector<1x128xf32> to vector<1x1x128xf32>
    %72 = vector.broadcast %71 : vector<1x1x128xf32> to vector<8x8x128xf32>
    %73 = arith.addf %70, %72 : vector<8x8x128xf32>
    %cst_71 = arith.constant 0.000000e+00 : f32
    %74 = vector.broadcast %cst_71 : f32 to vector<8x8x128xf32>
    %75 = arith.maximumf %73, %74 : vector<8x8x128xf32>
    %76 = arith.truncf %75 : vector<8x8x128xf32> to vector<8x8x128xbf16>
    %77 = vector.shape_cast %76 : vector<8x8x128xbf16> to vector<64x128xbf16>
    %c0_72 = arith.constant 0 : index
    %c0_73 = arith.constant 0 : index
    %78 = vector.load %arg7[%c0_72, %c0_73] : memref<128x128xbf16, #tpu.memory_space<vmem>>, vector<128x128xbf16>
    %cst_74 = arith.constant dense<0.000000e+00> : vector<64x128xf32>
    %79 = tpu.matmul %77, %78, %cst_74 {dimension_numbers = #tpu.dot_dimension_numbers<[1], [0], [0], [1], [0, 0, 1, 1], [], []>} : vector<64x128xbf16>, vector<128x128xbf16>, vector<64x128xf32> -> vector<64x128xf32>
    %80 = arith.addf %65, %79 : vector<64x128xf32>
    %81 = vector.shape_cast %80 : vector<64x128xf32> to vector<8x8x128xf32>
    %c0_75 = arith.constant 0 : index
    %c0_76 = arith.constant 0 : index
    %c0_77 = arith.constant 0 : index
    %c0_78 = arith.constant 0 : index
    %82 = vector.load %arg8[%c0_75, %c0_76, %c0_77, %c0_78] : memref<1x8x8x128xf32, #tpu.memory_space<vmem>>, vector<1x8x8x128xf32>
    %83 = vector.shape_cast %82 : vector<1x8x8x128xf32> to vector<8x8x128xf32>
    %84 = vector.shape_cast %81 : vector<8x8x128xf32> to vector<1x8x8x128xf32>
    tpu.vector_store %arg8[%c0_75, %c0_76, %c0_77, %c0_78], %84 {strides = array<i32>} : memref<1x8x8x128xf32, #tpu.memory_space<vmem>>, vector<1x8x8x128xf32>,
    return
  }
  func.func @transform_0(%arg0: i32, %arg1: i32) -> (i32, i32, i32, i32) {
    %c0_i32 = arith.constant 0 : i32
    %c0_i32_0 = arith.constant 0 : i32
    %c0_i32_1 = arith.constant 0 : i32
    %c0_i32_2 = arith.constant 0 : i32
    return %arg0, %c0_i32, %c0_i32_0, %c0_i32_1 : i32, i32, i32, i32
  }
  func.func @transform_1(%arg0: i32, %arg1: i32) -> (i32, i32, i32) {
    %c0_i32 = arith.constant 0 : i32
    %c0_i32_0 = arith.constant 0 : i32
    %c0_i32_1 = arith.constant 0 : i32
    return %c0_i32, %c0_i32_0, %arg1 : i32, i32, i32
  }
  func.func @transform_2(%arg0: i32, %arg1: i32) -> (i32, i32, i32, i32) {
    %c0_i32 = arith.constant 0 : i32
    %c0_i32_0 = arith.constant 0 : i32
    %c0_i32_1 = arith.constant 0 : i32
    %c0_i32_2 = arith.constant 0 : i32
    return %arg0, %c0_i32, %c0_i32_0, %c0_i32_1 : i32, i32, i32, i32
  }
  func.func @transform_3(%arg0: i32, %arg1: i32) -> (i32, i32) {
    %c0_i32 = arith.constant 0 : i32
    %c0_i32_0 = arith.constant 0 : i32
    %c0_i32_1 = arith.constant 0 : i32
    return %c0_i32, %c0_i32_0 : i32, i32
  }
  func.func @transform_4(%arg0: i32, %arg1: i32) -> (i32, i32) {
    %c0_i32 = arith.constant 0 : i32
    %c0_i32_0 = arith.constant 0 : i32
    %c0_i32_1 = arith.constant 0 : i32
    return %c0_i32, %c0_i32_0 : i32, i32
  }
  func.func @transform_5(%arg0: i32, %arg1: i32) -> (i32, i32) {
    %c0_i32 = arith.constant 0 : i32
    %c0_i32_0 = arith.constant 0 : i32
    return %c0_i32, %arg1 : i32, i32
  }
  func.func @transform_6(%arg0: i32, %arg1: i32) -> (i32, i32, i32, i32) {
    %c0_i32 = arith.constant 0 : i32
    %c0_i32_0 = arith.constant 0 : i32
    %c0_i32_1 = arith.constant 0 : i32
    return %arg0, %c0_i32, %c0_i32_0, %arg1 : i32, i32, i32, i32
  }
}

</mosaic_0001>

<bundles_post_ra>
// kernel: basic_block_forward.3
= control target key start
LH: loop header
LB: loop body
LE: loop exit
PB: predicated region body
PF: predicated region fallthrough
CT: control target
= control target key end

     0   :  { %s3613_s21 = smov 0   ;;  %s3615_s22 = smov 0   ;;  %s4269_s0 = inlined_call_operand.vmem [shape: bf16[2,10,10,128], index: 0, kind: input, shape index: {}]   ;;  %s4270_s1 = inlined_call_operand.vmem [shape: bf16[9,128,128], index: 1, kind: input, shape index: {}]   ;;  %s4271_s2 = inlined_call_operand.vmem [shape: f32[2,8,8,128], index: 2, kind: input, shape index: {}]   ;;  %s4272_s3 = inlined_call_operand.vmem [shape: f32[1,128], index: 3, kind: input, shape index: {}]   ;;  %s4273_s4 = inlined_call_operand.vmem [shape: f32[1,128], index: 4, kind: input, shape index: {}]   ;;  %s4274_s5 = inlined_call_operand.vmem [shape: bf16[128,128], index: 5, kind: input, shape index: {}]   ;;  %s4275_s6 = inlined_call_operand.vmem [shape: f32[2,8,8,128], index: 6, kind: output, shape index: {}]  }
   0x1   :  { %s3617_s23 = smov 0  }
   0x2 LB: > { %s28_s24 = sadd.s32 1, %s3572_s22  ;;  %p2645_p0 = scmp.ge.s32.totalorder %s3576_s23, 1  ;;  %s3576_s23 = sphi %s3617_s23, %s16_s23   ;;  %s3572_s22 = sphi %s3615_s22, %s4281_s22   ;;  %s3568_s21 = sphi %s3613_s21, %s4280_s21  }
   0x3   : > { %p30_p1 = scmp.ge.s32.totalorder %s28_s24, 2  ;;  %p254_p2 = scmp.lt.s32.totalorder %s3576_s23, 3 }
   0x5   : > { %s4283_s24 = smov (%p30_p1, %s28_s24), 0  ;;  %p255_p3 = pnand %p2645_p0, %p254_p2 }
   0x6   : > { %v3454_v0 = vld [vmem:[%s4270_s1 + $0x40] sm:$0xff] (!%p255_p3)   ;;  %p300_p4 = scmp.lt.s32.totalorder (!%p255_p3), %s3568_s21, 1  ;;  %v3456_v2 = vld [vmem:[%s4270_s1 + $0x48] sm:$0xff] (!%p255_p3)   ;;  %v3458_v4 = vld [vmem:[%s4270_s1 + $0x50] sm:$0xff] (!%p255_p3)   ;;  %vm783_vm0 = vcmask (!%p255_p3), 1042432   ;;  %vm784_vm1 = vcmask (!%p255_p3), 1046532  }
   0x7   : > { %258 = sbr.rel (%p255_p3) target bundleno = 394 (0x18a), region = 44  ;;  %v3455_v1 = vld [vmem:[%s4270_s1 + $0x140] sm:$0xff] (!%p255_p3)   ;;  %3117 = vmatprep.subr.bf16.mxu1 (!%p255_p3), %v3454_v0  ;;  %v3457_v3 = vld [vmem:[%s4270_s1 + $0x148] sm:$0xff] (!%p255_p3)   ;;  %v3459_v5 = vld [vmem:[%s4270_s1 + $0x150] sm:$0xff] (!%p255_p3)   ;;  %vm361_vm2 = vsmask.f32 (!%p255_p3), 3328 }
   0x8   : > { %3237 = vmatprep.subr.bf16.mxu0 (!%p255_p3), %v3455_v1  ;;  %3118 = vmatpush3.bf16.msra.mxu1 (!%p255_p3), %v3454_v0  ;;  %v3460_v6 = vld [vmem:[%s4270_s1 + $0x58] sm:$0xff] (!%p255_p3)   ;;  %v3462_v8 = vld [vmem:[%s4270_s1 + $0x60] sm:$0xff] (!%p255_p3)   ;;  %v3464_v10 = vld [vmem:[%s4270_s1 + $0x68] sm:$0xff] (!%p255_p3)   ;;  %vm362_vm3 = vsmask.f32 (!%p255_p3), 7440 }
   0x9   : > { %3238 = vmatpush3.bf16.msra.mxu0 (!%p255_p3), %v3455_v1  ;;  %3119 = vmatprep.subr.bf16.mxu1 (!%p255_p3), %v3456_v2  ;;  %v3461_v7 = vld [vmem:[%s4270_s1 + $0x158] sm:$0xff] (!%p255_p3)   ;;  %v3463_v9 = vld [vmem:[%s4270_s1 + $0x160] sm:$0xff] (!%p255_p3)   ;;  %v3465_v14 = vld [vmem:[%s4270_s1 + $0x168] sm:$0xff] (!%p255_p3)  }
   0xa   : > { %3239 = vmatprep.subr.bf16.mxu0 (!%p255_p3), %v3457_v3  ;;  %v3466_v22 = vld [vmem:[%s4270_s1 + $0x70] sm:$0xff] (!%p255_p3)   ;;  %vm3703_vm4 = vmor (!%p255_p3), %vm783_vm0, %vm784_vm1  ;;  %v3468_v41 = vld [vmem:[%s4270_s1 + $0x78] sm:$0xff] (!%p255_p3)  }
   0xb   : > { %v3467_v26 = vld [vmem:[%s4270_s1 + $0x170] sm:$0xff] (!%p255_p3)   ;;  %vm3711_vm5 = vmor (!%p255_p3), %vm361_vm2, %vm362_vm3  ;;  %v3469_v44 = vld [vmem:[%s4270_s1 + $0x178] sm:$0xff] (!%p255_p3)  }
   0xc   : > { %3120 = vmatpush3.bf16.msra.mxu1 (!%p255_p3), %v3456_v2  ;;  %v3470_v61 = vld [vmem:[%s4270_s1] sm:$0xff] (!%p255_p3)  }
   0xd   : > { %3240 = vmatpush3.bf16.msra.mxu0 (!%p255_p3), %v3457_v3  ;;  %3121 = vmatprep.subr.bf16.mxu1 (!%p255_p3), %v3458_v4  ;;  %v3471_v2 = vld [vmem:[%s4270_s1 + $0x180] sm:$0xff] (!%p255_p3)  }
   0xe   : > { %s4285_s21 = smov (!%p300_p4, %s3568_s21), 1  ;;  %3241 = vmatprep.subr.bf16.mxu0 %v3459_v5 }
   0xf   : > { %s3429_s17 = smul.u32 80, %s4285_s21  ;;  %s2991_s20 = sshll.u32 %s4285_s21, 6 }
  0x10   : > { %3122 = vmatpush3.bf16.msra.mxu1 %v3458_v4  ;;  %s4126_s30 = scalar_lea.vmem %s4271_s2, %s2991_s20  ;;  %s325_s27 = scalar_lea.vmem %s4275_s6, %s2991_s20 }
  0x11   : > { %3242 = vmatpush3.bf16.msra.mxu0 %v3459_v5  ;;  %3123 = vmatprep.subr.bf16.mxu1 %v3460_v6  ;;  %s3667_s28 = scalar_lea.vmem %s4269_s0, %s3429_s17 }
  0x12   : > { %3243 = vmatprep.subr.bf16.mxu0 %v3461_v7  ;;  %v3673_v11 = vld [vmem:[%s3667_s28] sm:$0xf]  ;;  %v3676_v12 = vld [vmem:[%s3667_s28 + $0x8] sm:$0xf]  ;;  %v3679_v13 = vld [vmem:[%s3667_s28 + $0x4] sm:$0x1] }
  0x13   : > { %v3685_v15 = vld [vmem:[%s3667_s28 + $0xc] sm:$0x1]  ;;  %v365_v16 = vshrl.u32 %v3673_v11, 16  ;;  %v368_v17 = vshll.u32 %v3673_v11, 16  ;;  %v374_v18 = vshll.u32 %v3679_v13, 16  ;;  %v379_v19 = vshrl.u32 %v3676_v12, 16 }
  0x14   : > { %3124 = vmatpush3.bf16.msra.mxu1 %v3460_v6  ;;  %v382_v20 = vshll.u32 %v3676_v12, 16  ;;  %v388_v21 = vshll.u32 %v3685_v15, 16  ;;  %v2764_v28 = vld [vmem:[%s3667_s28 + $0xc] sm:$0x1]  ;;  %v2766_v29 = vld [vmem:[%s3667_s28 + $0x14] sm:$0x1] }
  0x15   : > { %3244 = vmatpush3.bf16.msra.mxu0 %v3461_v7  ;;  %3125 = vmatprep.subr.bf16.mxu1 %v3462_v8  ;;  %v367_v23 = vrot.slane %v365_v16, 4  ;;  %v370_v24 = vrot.slane %v368_v17, 5  ;;  %v381_v25 = vrot.slane %v379_v19, 4  ;;  %v376_v31 = vrot.slane %v374_v18, 5  ;;  %v2807_v34 = vld [vmem:[%s3667_s28 + $0x8] sm:$0xe] }
  0x16   : > { %3245 = vmatprep.subr.bf16.mxu0 %v3463_v9  ;;  %v384_v27 = vrot.slane %v382_v20, 5  ;;  %v390_v32 = vrot.slane %v388_v21, 5  ;;  %v2808_v35 = vld [vmem:[%s3667_s28 + $0x10] sm:$0xe]  ;;  %v2815_v38 = vrot.slane %v2807_v34, 9  ;;  %v1451_v39 = vrot.slane %v2764_v28, 5 }
  0x17   : > { %v371_v30 = vor.u32 %v370_v24, %v367_v23  ;;  %v2816_v40 = vrot.slane %v2808_v35, 9  ;;  %v1455_v43 = vrot.slane %v2766_v29, 5  ;;  %v3724_v47 = vld [vmem:[%s3667_s28 + $0x10] sm:$0xf]  ;;  %v3727_v48 = vld [vmem:[%s3667_s28 + $0x18] sm:$0xf] }
  0x18   : > { %3126 = vmatpush3.bf16.msra.mxu1 %v3462_v8  ;;  %v385_v37 = vor.u32 %v384_v27, %v381_v25  ;;  %v1452_v46 = vsel %vm3703_vm4, %v2815_v38, %v1451_v39  ;;  %v3734_v51 = vld [vmem:[%s3667_s28 + $0x14] sm:$0x1]  ;;  %v3737_v52 = vld [vmem:[%s3667_s28 + $0x1c] sm:$0x1]  ;;  %v393_v53 = vshrl.u32 %v3724_v47, 16  ;;  %v396_v54 = vshll.u32 %v3724_v47, 16 }
  0x19   : > { %3246 = vmatpush3.bf16.msra.mxu0 %v3463_v9  ;;  %3127 = vmatprep.subr.bf16.mxu1 %v3464_v10  ;;  %v372_v42 = vrot.slane %v371_v30, 4  ;;  %v1456_v50 = vsel %vm3703_vm4, %v2816_v40, %v1455_v43  ;;  %v402_v57 = vshll.u32 %v3734_v51, 16  ;;  %v407_v58 = vshrl.u32 %v3727_v48, 16  ;;  %v2768_v59 = vld [vmem:[%s3667_s28 + $0x1c] sm:$0x1]  ;;  %v3473_v24 = vld [vmem:[%s4270_s1 + $0x188] sm:$0xff]  }
  0x1a   : > { %3247 = vmatprep.subr.bf16.mxu0 %v3465_v14  ;;  %v386_v45 = vrot.slane %v385_v37, 4  ;;  %v2839_v56 = vcombine.low %v1452_v46, %v1456_v50  ;;  %v395_v62 = vrot.slane %v393_v53, 4  ;;  %v398_v63 = vrot.slane %v396_v54, 5  ;;  %v2809_v1 = vld [vmem:[%s3667_s28 + $0x18] sm:$0xe]  ;;  %v3472_v29 = vld [vmem:[%s4270_s1 + $0x8] sm:$0xff]  }
  0x1b   : > { %v377_v49 = vsel %vm3711_vm5, %v372_v42, %v376_v31  ;;  %v410_v0 = vshll.u32 %v3727_v48, 16  ;;  %v409_v3 = vrot.slane %v407_v58, 4  ;;  %v416_v4 = vshll.u32 %v3737_v52, 16  ;;  %v2810_v5 = vld [vmem:[%s3667_s28 + $0x20] sm:$0xe]  ;;  %v3474_v30 = vld [vmem:[%s4270_s1 + $0x10] sm:$0xff]  }
  0x1c   : > { %3128 = vmatpush3.bf16.msra.mxu1 %v3464_v10  ;;  %v391_v55 = vsel %vm3711_vm5, %v386_v45, %v390_v32  ;;  %3253 = vmatprep.mubr.bf16.mxu0 %v2839_v56  ;;  %v399_v6 = vor.u32 %v398_v63, %v395_v62  ;;  %v404_v7 = vrot.slane %v402_v57, 5  ;;  %v2770_v9 = vld [vmem:[%s3667_s28 + $0x24] sm:$0x1]  ;;  %v2817_v10 = vrot.slane %v2809_v1, 9  ;;  %v3475_v31 = vld [vmem:[%s4270_s1 + $0x190] sm:$0xff]   ;;  %v3476_v42 = vld [vmem:[%s4270_s1 + $0x18] sm:$0xff]  }
  0x1d   : > { %3248 = vmatpush3.bf16.msra.mxu0 %v3465_v14  ;;  %3129 = vmatprep.subr.bf16.mxu1 %v3466_v22  ;;  %v2667_v60 = vcombine.low %v377_v49, %v391_v55  ;;  %v412_v8 = vrot.slane %v410_v0, 5  ;;  %v1459_v14 = vrot.slane %v2768_v59, 5  ;;  %v418_v18 = vrot.slane %v416_v4, 5  ;;  %v3778_v32 = vld [vmem:[%s3667_s28 + $0x20] sm:$0xf]  ;;  %v3477_v45 = vld [vmem:[%s4270_s1 + $0x198] sm:$0xff]  }
  0x1e   : > { %3249 = vmatprep.subr.bf16.mxu0 %v3467_v26  ;;  %v400_v16 = vrot.slane %v399_v6, 4  ;;  %v2818_v19 = vrot.slane %v2810_v5, 9  ;;  %v1463_v21 = vrot.slane %v2770_v9, 5  ;;  %v3781_v34 = vld [vmem:[%s3667_s28 + $0x28] sm:$0xf]  ;;  %v421_v38 = vshrl.u32 %v3778_v32, 16 }
  0x1f   : > { %3133 = vmatprep.mubr.bf16.mxu1 %v2667_v60  ;;  %v413_v17 = vor.u32 %v412_v8, %v409_v3  ;;  %v1460_v20 = vsel %vm3703_vm4, %v2817_v10, %v1459_v14  ;;  %v3784_v35 = vld [vmem:[%s3667_s28 + $0x24] sm:$0x1]  ;;  %v3787_v37 = vld [vmem:[%s3667_s28 + $0x2c] sm:$0x1]  ;;  %v424_v39 = vshll.u32 %v3778_v32, 16  ;;  %v438_v43 = vshll.u32 %v3781_v34, 16 }
  0x20   : > { %3130 = vmatpush3.bf16.msra.mxu1 %v3466_v22  ;;  %v405_v22 = vsel %vm3711_vm5, %v400_v16, %v404_v7  ;;  %v1464_v25 = vsel %vm3703_vm4, %v2818_v19, %v1463_v21  ;;  %v430_v40 = vshll.u32 %v3784_v35, 16  ;;  %v423_v46 = vrot.slane %v421_v38, 4  ;;  %v2772_v53 = vld [vmem:[%s3667_s28 + $0x2c] sm:$0x1]  ;;  %v2774_v56 = vld [vmem:[%s3667_s28 + $0x34] sm:$0x1] }
  0x21   : > { %3250 = vmatpush3.bf16.msra.mxu0 %v3467_v26  ;;  %3131 = vmatprep.subr.bf16.mxu1 %v3468_v41  ;;  %v414_v23 = vrot.slane %v413_v17, 4  ;;  %v2840_v27 = vcombine.low %v1460_v20, %v1464_v25  ;;  %v426_v49 = vrot.slane %v424_v39, 5  ;;  %v440_v55 = vrot.slane %v438_v43, 5  ;;  %v2811_v57 = vld [vmem:[%s3667_s28 + $0x28] sm:$0xe]  ;;  %v3478_v63 = vld [vmem:[%s4270_s1 + $0x20] sm:$0xff]  }
  0x22   : > { %3251 = vmatprep.subr.bf16.mxu0 %v3469_v44  ;;  %v432_v54 = vrot.slane %v430_v40, 5  ;;  %v2812_v59 = vld [vmem:[%s3667_s28 + $0x30] sm:$0xe]  ;;  %v2819_v60 = vrot.slane %v2811_v57, 9  ;;  %v1471_v62 = vrot.slane %v2774_v56, 5  ;;  %v3479_v3 = vld [vmem:[%s4270_s1 + $0x1a0] sm:$0xff]  }
  0x23   : > { %v419_v26 = vsel %vm3711_vm5, %v414_v23, %v418_v18  ;;  %v427_v58 = vor.u32 %v426_v49, %v423_v46  ;;  %v3814_v6 = vld [vmem:[%s3667_s28 + $0x30] sm:$0xf]  ;;  %v3817_v7 = vld [vmem:[%s3667_s28 + $0x38] sm:$0xf]  ;;  %v3822_v10 = vld [vmem:[%s3667_s28 + $0x34] sm:$0x1] }
  0x24   : > { %3132 = vmatpush3.bf16.msra.mxu1 %v3468_v41  ;;  %v2668_v28 = vcombine.low %v405_v22, %v419_v26  ;;  %v435_v41 = vshrl.u32 %v3781_v34, 16  ;;  %v3825_v14 = vld [vmem:[%s3667_s28 + $0x3c] sm:$0x1]  ;;  %v449_v16 = vshrl.u32 %v3814_v6, 16  ;;  %v452_v19 = vshll.u32 %v3814_v6, 16  ;;  %v3480_v23 = vld [vmem:[%s4270_s1 + $0x28] sm:$0xff]  }
  0x25   : > { %3252 = vmatpush3.bf16.msra.mxu0 %v3469_v44  ;;  %3141 = vmatprep.subr.bf16.mxu1 %v3470_v61  ;;  %v444_v44 = vshll.u32 %v3787_v37, 16  ;;  %v428_v4 = vrot.slane %v427_v58, 4  ;;  %v458_v20 = vshll.u32 %v3822_v10, 16  ;;  %v2776_v21 = vld [vmem:[%s3667_s28 + $0x3c] sm:$0x1]  ;;  %v463_v26 = vshrl.u32 %v3817_v7, 16 }
  0x26   : > { %3261 = vmatprep.subr.bf16.mxu0 %v3471_v2  ;;  %v437_v50 = vrot.slane %v435_v41, 4  ;;  %v2778_v22 = vld [vmem:[%s3667_s28 + $0x44] sm:$0x1]  ;;  %v451_v25 = vrot.slane %v449_v16, 4  ;;  %v472_v39 = vshll.u32 %v3825_v14, 16  ;;  %v3482_v58 = vld [vmem:[%s4270_s1 + $0x30] sm:$0xff]   ;;  %v2681_v16 = vcombine.low %v3778_v32, %v3781_v34 }
  0x27   : > { %3134 = vmatmul.mubr.bf16.vlgmr.msra.gmra.mrb[0].mxu1 %v2668_v28  ;;  %v446_v1 = vrot.slane %v444_v44, 5  ;;  %v433_v17 = vsel %vm3711_vm5, %v428_v4, %v432_v54  ;;  %v2813_v28 = vld [vmem:[%s3667_s28 + $0x38] sm:$0xe]  ;;  %v460_v38 = vrot.slane %v458_v20, 5  ;;  %v2814_v40 = vld [vmem:[%s3667_s28 + $0x40] sm:$0xe] }
  0x28   : > { %3254 = vmatmul.mubr.bf16.vlgmr.msra.gmra.mrb[0].mxu0 %v2840_v27  ;;  %3142 = vmatpush3.bf16.msra.mxu1 %v3470_v61  ;;  %v1467_v61 = vrot.slane %v2772_v53, 5  ;;  %v441_v0 = vor.u32 %v440_v55, %v437_v50  ;;  %v466_v27 = vshll.u32 %v3817_v7, 16  ;;  %v465_v41 = vrot.slane %v463_v26, 4  ;;  %v3483_v55 = vld [vmem:[%s4270_s1 + $0x1b0] sm:$0xff]   ;;  %v3489_v4 = vld [vmem:[%s4270_s1 + $0x1c0] sm:$0xff]   ;;  %v3496_v20 = vld [vmem:[%s4270_s1 + $0x98] sm:$0xff]  }
  0x29   : > { %3262 = vmatpush3.bf16.msra.mxu0 %v3471_v2  ;;  %3143 = vmatprep.subr.bf16.mxu1 %v3472_v29  ;;  %v2820_v2 = vrot.slane %v2812_v59, 9  ;;  %v2821_v44 = vrot.slane %v2813_v28, 9  ;;  %v2822_v49 = vrot.slane %v2814_v40, 9  ;;  %v1479_v50 = vrot.slane %v2778_v22, 5  ;;  %v3494_v32 = vld [vmem:[%s4270_s1 + $0x90] sm:$0xff]   ;;  %v3498_v40 = vld [vmem:[%s4270_s1 + $0xa0] sm:$0xff]  }
  0x2a   : > { %3263 = vmatprep.subr.bf16.mxu0 %v3473_v24  ;;  %v1468_v5 = vsel %vm3703_vm4, %v2819_v60, %v1467_v61  ;;  %v442_v8 = vrot.slane %v441_v0, 4  ;;  %v468_v43 = vrot.slane %v466_v27, 5  ;;  %v3488_v61 = vld [vmem:[%s3667_s28 + $0x10] ss:$8 sps:$4 sm:$0xff]   ;;  %v759_v34 = vld [vmem:[%s3667_s28] sm:$0xe] }
  0x2b   : > { %v1472_v9 = vsel %vm3703_vm4, %v2820_v2, %v1471_v62  ;;  %v1480_v57 = vsel %vm3703_vm4, %v2822_v49, %v1479_v50  ;;  %v3484_v0 = vld [vmem:[%s4270_s1 + $0x38] sm:$0xff]   ;;  %v2679_v2 = vcombine.low %v3673_v11, %v3676_v12  ;;  %v3487_v11 = vld [vmem:[%s4270_s1 + $0x80] sm:$0xff]   ;;  %v3911_v26 = vld [vmem:[%s3667_s28 + $0x14] sm:$0x1] }
  0x2c   : > { %3144 = vmatpush3.bf16.msra.mxu1 %v3472_v29  ;;  %v2841_v18 = vcombine.low %v1468_v5, %v1472_v9  ;;  %v3481_v29 = vld [vmem:[%s4270_s1 + $0x1a8] sm:$0xff]   ;;  %v469_v53 = vor.u32 %v468_v43, %v465_v41  ;;  %v2680_v5 = vcombine.low %v3724_v47, %v3727_v48  ;;  %v788_v47 = vrot.slane %v3679_v13, 5  ;;  %v3919_v28 = vld [vmem:[%s3667_s28 + $0x1c] sm:$0x1]  ;;  %v761_v50 = vld [vmem:[%s3667_s28 + $0x10] sm:$0xe] }
  0x2d   : > { %3264 = vmatpush3.bf16.msra.mxu0 %v3473_v24  ;;  %3145 = vmatprep.subr.bf16.mxu1 %v3474_v30  ;;  %v447_v24 = vsel %vm3711_vm5, %v442_v8, %v446_v1  ;;  %v3485_v1 = vld [vmem:[%s4270_s1 + $0x1b8] sm:$0xff]   ;;  %v3491_v12 = vld [vmem:[%s3667_s28 + $0x20] ss:$8 sps:$4 sm:$0xff]   ;;  %v792_v48 = vrot.slane %v3685_v15, 5 }
  0x2e   : > { %3265 = vmatprep.subr.bf16.mxu0 %v3475_v31  ;;  %3257 = vmatprep.mubr.bf16.mxu0 %v2841_v18  ;;  %v470_v59 = vrot.slane %v469_v53, 4  ;;  %v3493_v8 = vld [vmem:[%s4270_s1 + $0x1c8] sm:$0xff]   ;;  %v3495_v18 = vld [vmem:[%s4270_s1 + $0x1d0] sm:$0xff]  }
  0x2f   : > { %v3492_v9 = vld [vmem:[%s4270_s1 + $0x88] sm:$0xff]  }
  0x30   : > { %3146 = vmatpush3.bf16.msra.mxu1 %v3474_v30  ;;  %v2669_v30 = vcombine.low %v433_v17, %v447_v24  ;;  %v3504_v17 = vld [vmem:[%s3667_s28 + $0x30] ss:$8 sps:$4 sm:$0xff]   ;;  %v3507_v13 = vld [vmem:[%s3667_s28 + $0x40] ss:$8 sps:$4 sm:$0xff]  }
  0x31   : > { %3266 = vmatpush3.bf16.msra.mxu0 %v3475_v31  ;;  %3147 = vmatprep.subr.bf16.mxu1 %v3476_v42  ;;  %v454_v31 = vrot.slane %v452_v19, 5  ;;  %v796_v19 = vrot.slane %v3734_v51, 5  ;;  %v760_v15 = vld [vmem:[%s3667_s28 + $0x8] sm:$0xe]  ;;  %v2682_v51 = vcombine.low %v3814_v6, %v3817_v7  ;;  %v3497_v24 = vld [vmem:[%s4270_s1 + $0x1d8] sm:$0xff]  }
  0x32   : > { %3267 = vmatprep.subr.bf16.mxu0 %v3477_v45  ;;  %3137 = vmatprep.mubr.bf16.mxu1 %v2669_v30  ;;  %v2692_v22 = vrot.slane %v760_v15, 9  ;;  %v2889_v7 = vld [vmem:[%s3667_s28 + $0x18] sm:$0xf] }
  0x33   : > { %v455_v46 = vor.u32 %v454_v31, %v451_v25  ;;  %v2887_v25 = vld [vmem:[%s3667_s28 + $0x10] sm:$0xf]  ;;  %v1832_v31 = vshll.u32 %v3911_v26, 16 }
  0x34   : > { %3148 = vmatpush3.bf16.msra.mxu1 %v3476_v42  ;;  %v474_v42 = vrot.slane %v472_v39, 5  ;;  %v793_v6 = vsel %vm3703_vm4, %v2692_v22, %v792_v48  ;;  %v1840_v39 = vshll.u32 %v2889_v7, 16  ;;  %v3505_v48 = vld [vmem:[%s4270_s1 + $0x1f0] sm:$0xff]  }
  0x35   : > { %3268 = vmatpush3.bf16.msra.mxu0 %v3477_v45  ;;  %3149 = vmatprep.subr.bf16.mxu1 %v3478_v63  ;;  %v1475_v45 = vrot.slane %v2776_v21, 5  ;;  %v456_v56 = vrot.slane %v455_v46, 4  ;;  %v2691_v21 = vrot.slane %v759_v34, 9  ;;  %v1834_v46 = vrot.slane %v1832_v31, 5  ;;  %v3503_v34 = vld [vmem:[%s4270_s1 + $0xb0] sm:$0xff]  }
  0x36   : > { %3269 = vmatprep.subr.bf16.mxu0 %v3479_v3  ;;  %v1842_v49 = vrot.slane %v1840_v39, 5  ;;  %v764_v31 = vld [vmem:[%s3667_s28 + $0x28] sm:$0xe]  ;;  %v812_v39 = vrot.slane %v3822_v10, 5 }
  0x37   : > { %v1476_v54 = vsel %vm3703_vm4, %v2821_v44, %v1475_v45  ;;  %v461_v62 = vsel %vm3711_vm5, %v456_v56, %v460_v38  ;;  %v789_v27 = vsel %vm3703_vm4, %v2691_v21, %v788_v47  ;;  %v1837_v38 = vshrl.u32 %v2889_v7, 16  ;;  %v3499_v45 = vld [vmem:[%s4270_s1 + $0x1e0] sm:$0xff]  }
  0x38   : > { %3150 = vmatpush3.bf16.msra.mxu1 %v3478_v63  ;;  %v2842_v60 = vcombine.low %v1476_v54, %v1480_v57  ;;  %v475_v63 = vsel %vm3711_vm5, %v470_v59, %v474_v42  ;;  %v2715_v30 = vcombine.low %v789_v27, %v793_v6  ;;  %v1846_v44 = vshll.u32 %v3919_v28, 16  ;;  %v2891_v57 = vld [vmem:[%s3667_s28 + $0x20] sm:$0xf]  ;;  %v3508_v6 = vld [vmem:[%s4270_s1 + $0xb8] sm:$0xff]  }
  0x39   : > { %3270 = vmatpush3.bf16.msra.mxu0 %v3479_v3  ;;  %3151 = vmatprep.subr.bf16.mxu1 %v3480_v23  ;;  %v2670_v3 = vcombine.low %v461_v62, %v475_v63  ;;  %v1839_v42 = vrot.slane %v1837_v38, 4  ;;  %v2693_v56 = vrot.slane %v761_v50, 9  ;;  %v1851_v62 = vshrl.u32 %v2891_v57, 16 }
  0x3a   : > { %3271 = vmatprep.subr.bf16.mxu0 %v3481_v29  ;;  %3258 = vmatmul.mubr.bf16.gmra.mrb[4].mxu0 %v2842_v60  ;;  %v1848_v54 = vrot.slane %v1846_v44, 5  ;;  %v3933_v60 = vld [vmem:[%s3667_s28 + $0x24] sm:$0x1]  ;;  %v804_v7 = vrot.slane %v3784_v35, 5  ;;  %v808_v38 = vrot.slane %v3787_v37, 5  ;;  %v816_v37 = vrot.slane %v3825_v14, 5 }
  0x3b   : > { %3138 = vmatmul.mubr.bf16.gmra.mrb[4].mxu1 %v2670_v3  ;;  %3277 = vmatprep.mubr.bf16.mxu0 %v3488_v61  ;;  %v2893_v61 = vld [vmem:[%s3667_s28 + $0x28] sm:$0xf]  ;;  %v1860_v3 = vshll.u32 %v3933_v60, 16  ;;  %v2895_v44 = vld [vmem:[%s3667_s28 + $0x30] sm:$0xf] }
  0x3c   : > { %3152 = vmatpush3.bf16.msra.mxu1 %v3480_v23  ;;  %3157 = vmatprep.mubr.bf16.mxu1 %v2679_v2  ;;  %v800_v23 = vrot.slane %v3737_v52, 5  ;;  %v1823_v52 = vshrl.u32 %v2887_v25, 16  ;;  %v1854_v2 = vshll.u32 %v2891_v57, 16  ;;  %v1879_v50 = vshrl.u32 %v2895_v44, 16  ;;  %v3512_v14 = vld [vmem:[%s4270_s1 + $0xc8] sm:$0xff]  }
  0x3d   : > { %3272 = vmatpush3.bf16.msra.mxu0 %v3481_v29  ;;  %3153 = vmatprep.subr.bf16.mxu1 %v3482_v58  ;;  %v1826_v29 = vshll.u32 %v2887_v25, 16  ;;  %v3509_v25 = vld [vmem:[%s4270_s1 + $0x1f8] sm:$0xff]  }
  0x3e   : > { %3273 = vmatprep.subr.bf16.mxu0 %v3483_v55  ;;  %v1825_v41 = vrot.slane %v1823_v52, 4  ;;  %v1856_v47 = vrot.slane %v1854_v2, 5 }
  0x3f   : > { %v1828_v43 = vrot.slane %v1826_v29, 5 }
  0x40   : > { %3154 = vmatpush3.bf16.msra.mxu1 %v3482_v58  ;;  %v1843_v58 = vor.u32 %v1842_v49, %v1839_v42  ;;  %v2897_v42 = vld [vmem:[%s3667_s28 + $0x38] sm:$0xf]  ;;  %v3997_v49 = vld [vmem:[%s3667_s28 + $0x3c] sm:$0x1] }
  0x41   : > { %3274 = vmatpush3.bf16.msra.mxu0 %v3483_v55  ;;  %3155 = vmatprep.subr.bf16.mxu1 %v3484_v0  ;;  %v1829_v53 = vor.u32 %v1828_v43, %v1825_v41  ;;  %v762_v55 = vld [vmem:[%s3667_s28 + $0x18] sm:$0xe]  ;;  %v2696_v41 = vrot.slane %v764_v31, 9  ;;  %v3511_v43 = vld [vmem:[%s4270_s1 + $0x200] sm:$0xff]   ;;  %v1896_v57 = vshll.u32 %v2897_v42, 16 }
  0x42   : > { %3275 = vmatprep.subr.bf16.mxu0 %v3485_v1  ;;  %v2694_v59 = vrot.slane %v762_v55, 9 }
  0x43   : > { %v1830_v63 = vrot.slane %v1829_v53, 4  ;;  %v1882_v53 = vshll.u32 %v2895_v44, 16 }
  0x44   : > { %3156 = vmatpush3.bf16.msra.mxu1 %v3484_v0  ;;  %v3938_v0 = vsel %vm3703_vm4, %v2693_v56, %v796_v19  ;;  %v1893_v56 = vshrl.u32 %v2897_v42, 16  ;;  %v2932_v42 = vld [vmem:[%s3667_s28 + $0x18] sm:$0xe] }
  0x45   : > { %3276 = vmatpush3.bf16.msra.mxu0 %v3485_v1  ;;  %3165 = vmatprep.subr.bf16.mxu1 %v3487_v11  ;;  %v3941_v1 = vld [vmem:[%s3667_s28 + $0x2c] sm:$0x1] }
  0x46   : > { %3285 = vmatprep.subr.bf16.mxu0 %v3489_v4  ;;  %v1895_v2 = vrot.slane %v1893_v56, 4 }
  0x47   : > { %3158 = vmatmul.mubr.bf16.vlgmr.msra.gmra.mrb[0].mxu1 %v2680_v5  ;;  %v1853_v5 = vrot.slane %v1851_v62, 4  ;;  %v1902_v62 = vshll.u32 %v3997_v49, 16 }
  0x48   : > { %3278 = vmatmul.mubr.bf16.vlgmr.msra.gmra.mrb[0].mxu0 %v3491_v12  ;;  %3166 = vmatpush3.bf16.msra.mxu1 %v3487_v11  ;;  %v1844_v11 = vrot.slane %v1843_v58, 4  ;;  %v3949_v12 = vsel %vm3703_vm4, %v2694_v59, %v800_v23  ;;  %v3513_v58 = vld [vmem:[%s4270_s1 + $0x208] sm:$0xff]   ;;  %v1881_v59 = vrot.slane %v1879_v50, 4 }
  0x49   : > { %3286 = vmatpush3.bf16.msra.mxu0 %v3489_v4  ;;  %3167 = vmatprep.subr.bf16.mxu1 %v3492_v9  ;;  %v3501_v4 = vld [vmem:[%s4270_s1 + $0x1e8] sm:$0xff]  }
  0x4a   : > { %3287 = vmatprep.subr.bf16.mxu0 %v3493_v8  ;;  %3161 = vmatprep.mubr.bf16.mxu1 %v2681_v16  ;;  %v1835_v16 = vsel %vm3711_vm5, %v1830_v63, %v1834_v46 }
  0x4b   : > { %3281 = vmatprep.mubr.bf16.mxu0 %v3504_v17  ;;  %v2716_v17 = vcombine.low %v3938_v0, %v3949_v12  ;;  %v3515_v0 = vld [vmem:[%s4270_s1 + $0x210] sm:$0xff]  }
  0x4c   : > { %3168 = vmatpush3.bf16.msra.mxu1 %v3492_v9  ;;  %v3500_v9 = vld [vmem:[%s4270_s1 + $0xa8] sm:$0xff]  }
  0x4d   : > { %3288 = vmatpush3.bf16.msra.mxu0 %v3493_v8  ;;  %3169 = vmatprep.subr.bf16.mxu1 %v3494_v32  ;;  %v1865_v8 = vshrl.u32 %v2893_v61, 16 }
  0x4e   : > { %3289 = vmatprep.subr.bf16.mxu0 %v3495_v18 }
  0x4f   : > { %3162 = vmatmul.mubr.bf16.gmra.mrb[4].mxu1 %v2682_v51  ;;  %v1867_v19 = vrot.slane %v1865_v8, 4  ;;  %v1862_v51 = vrot.slane %v1860_v3, 5  ;;  %v1898_v3 = vrot.slane %v1896_v57, 5  ;;  %v3519_v57 = vld [vmem:[%s4270_s1 + $0x220] sm:$0xff]  }
  0x50   : > { %3282 = vmatmul.mubr.bf16.gmra.mrb[4].mxu0 %v3507_v13  ;;  %3170 = vmatpush3.bf16.msra.mxu1 %v3494_v32  ;;  %v1868_v32 = vshll.u32 %v2893_v61, 16  ;;  %v1874_v13 = vshll.u32 %v3941_v1, 16  ;;  %v1884_v61 = vrot.slane %v1882_v53, 5 }
  0x51   : > { %3290 = vmatpush3.bf16.msra.mxu0 %v3495_v18  ;;  %3171 = vmatprep.subr.bf16.mxu1 %v3496_v20  ;;  %v1849_v18 = vsel %vm3711_vm5, %v1844_v11, %v1848_v54  ;;  %v809_v54 = vsel %vm3703_vm4, %v2696_v41, %v808_v38  ;;  %v2114_v11 = vrot.slane %v3911_v26, 5  ;;  %v3526_v41 = vld [vmem:[%s3667_s28 + $0x8] ss:$8 sps:$4 sm:$0xff]  }
  0x52   : > { %3291 = vmatprep.subr.bf16.mxu0 %v3497_v24  ;;  %3181 = vmatprep.mubr.bf16.mxu1 %v2715_v30  ;;  %v2919_v15 = vcombine.low %v1835_v16, %v1849_v18  ;;  %v1870_v21 = vrot.slane %v1868_v32, 5  ;;  %v1876_v23 = vrot.slane %v1874_v13, 5  ;;  %v763_v30 = vld [vmem:[%s3667_s28 + $0x20] sm:$0xe]  ;;  %v1885_v8 = vor.u32 %v1884_v61, %v1881_v59  ;;  %v766_v16 = vld [vmem:[%s3667_s28 + $0x38] sm:$0xe] }
  0x53   : > { %v2695_v35 = vrot.slane %v763_v30, 9  ;;  %v1899_v18 = vor.u32 %v1898_v3, %v1895_v2  ;;  %v4014_v32 = vld [vmem:[%s3667_s28 + $0x44] sm:$0x1]  ;;  %v2901_v13 = vld [vmem:[%s3667_s28 + $0x48] sm:$0xf] }
  0x54   : > { %3172 = vmatpush3.bf16.msra.mxu1 %v3496_v20  ;;  %v1857_v20 = vor.u32 %v1856_v47, %v1853_v5  ;;  %3301 = vmatprep.mubr.bf16.mxu0 %v2919_v15  ;;  %v3514_v15 = vld [vmem:[%s4270_s1 + $0xd0] sm:$0xff]   ;;  %v1924_v31 = vshll.u32 %v2901_v13, 16  ;;  %v3518_v2 = vld [vmem:[%s4270_s1 + $0xe0] sm:$0xff]  }
  0x55   : > { %3292 = vmatpush3.bf16.msra.mxu0 %v3497_v24  ;;  %3173 = vmatprep.subr.bf16.mxu1 %v3498_v40  ;;  %v1871_v24 = vor.u32 %v1870_v21, %v1867_v19  ;;  %v805_v46 = vsel %vm3703_vm4, %v2695_v35, %v804_v7  ;;  %v2698_v19 = vrot.slane %v766_v16, 9  ;;  %v4026_v21 = vld [vmem:[%s3667_s28 + $0x4c] sm:$0x1]  ;;  %v1900_v12 = vrot.slane %v1899_v18, 4  ;;  %v3548_v16 = vld [vmem:[%s3667_s28 + $0x1c] sm:$0x1] }
  0x56   : > { %3293 = vmatprep.subr.bf16.mxu0 %v3499_v45  ;;  %v1858_v22 = vrot.slane %v1857_v20, 4  ;;  %v2717_v5 = vcombine.low %v805_v46, %v809_v54  ;;  %v1886_v20 = vrot.slane %v1885_v8, 4  ;;  %v2118_v7 = vrot.slane %v3919_v28, 5  ;;  %v2931_v46 = vld [vmem:[%s3667_s28 + $0x10] sm:$0xe] }
  0x57   : > { %v1872_v27 = vrot.slane %v1871_v24, 4  ;;  %v1930_v38 = vshll.u32 %v4026_v21, 16  ;;  %v1926_v44 = vrot.slane %v1924_v31, 5  ;;  %v2939_v53 = vrot.slane %v2931_v46, 9  ;;  %v2933_v18 = vld [vmem:[%s3667_s28 + $0x20] sm:$0xe] }
  0x58   : > { %3174 = vmatpush3.bf16.msra.mxu1 %v3498_v40  ;;  %v1863_v52 = vsel %vm3711_vm5, %v1858_v22, %v1862_v51  ;;  %v3510_v40 = vld [vmem:[%s4270_s1 + $0xc0] sm:$0xff]   ;;  %v2940_v54 = vrot.slane %v2932_v42, 9 }
  0x59   : > { %3294 = vmatpush3.bf16.msra.mxu0 %v3499_v45  ;;  %3175 = vmatprep.subr.bf16.mxu1 %v3500_v9  ;;  %v1877_v29 = vsel %vm3711_vm5, %v1872_v27, %v1876_v23  ;;  %v3990_v45 = vld [vmem:[%s3667_s28 + $0x34] sm:$0x1]  ;;  %v1916_v23 = vshll.u32 %v4014_v32, 16  ;;  %v2115_v59 = vsel %vm3703_vm4, %v2939_v53, %v2114_v11  ;;  %v4111_v31 = vld [vmem:[%s3667_s28 + $0x24] sm:$0x1] }
  0x5a   : > { %3295 = vmatprep.subr.bf16.mxu0 %v3501_v4  ;;  %v2920_v10 = vcombine.low %v1863_v52, %v1877_v29  ;;  %v1888_v55 = vshll.u32 %v3990_v45, 16  ;;  %v3517_v52 = vld [vmem:[%s4270_s1 + $0x218] sm:$0xff]   ;;  %v2119_v61 = vsel %vm3703_vm4, %v2940_v54, %v2118_v7  ;;  %v4141_v53 = vld [vmem:[%s4272_s3] ss:$0 sm:$0xff] }
  0x5c   : > { %3176 = vmatpush3.bf16.msra.mxu1 %v3500_v9  ;;  %v1890_v63 = vrot.slane %v1888_v55, 5  ;;  %v1904_v9 = vrot.slane %v1902_v62, 5  ;;  %v3546_v55 = vld [vmem:[%s3667_s28 + $0xc] sm:$0x1]  ;;  %v3547_v62 = vld [vmem:[%s3667_s28 + $0x14] sm:$0x1] }
  0x5d   : > { %3296 = vmatpush3.bf16.msra.mxu0 %v3501_v4  ;;  %3177 = vmatprep.subr.bf16.mxu1 %v3503_v34  ;;  %v765_v4 = vld [vmem:[%s3667_s28 + $0x30] sm:$0xe]  ;;  %v1169_v56 = vshll.u32 %v3546_v55, 16 }
  0x5e   : > { %3297 = vmatprep.subr.bf16.mxu0 %v3505_v48  ;;  %v2697_v47 = vrot.slane %v765_v4, 9  ;;  %v1891_v27 = vsel %vm3711_vm5, %v1886_v20, %v1890_v63  ;;  %v1905_v29 = vsel %vm3711_vm5, %v1900_v12, %v1904_v9  ;;  %v1183_v63 = vshll.u32 %v3547_v62, 16  ;;  %v3520_v9 = vld [vmem:[%s4270_s1 + $0xe8] sm:$0xff]   ;;  %v2936_v12 = vld [vmem:[%s3667_s28 + $0x38] sm:$0xe] }
  0x5f   : > { %v2963_v4 = vcombine.low %v2115_v59, %v2119_v61  ;;  %v4067_v11 = vrot.slane %v1169_v56, 5  ;;  %v2126_v20 = vrot.slane %v3941_v1, 5  ;;  %v2299_v59 = vld [vmem:[%s4126_s30 + $0x8] sm:$0xff] }
  0x60   : > { %3178 = vmatpush3.bf16.msra.mxu1 %v3503_v34  ;;  %v813_v51 = vsel %vm3703_vm4, %v2697_v47, %v812_v39  ;;  %v3516_v39 = vld [vmem:[%s4270_s1 + $0xd8] sm:$0xff]   ;;  %v4072_v8 = vrot.slane %v1183_v63, 5  ;;  %v1197_v47 = vshll.u32 %v3548_v16, 16  ;;  %v2313_v33 = vmul.f32 %v4141_v53, %v2299_v59  ;;  %v3536_v59 = vld [vmem:[%s4270_s1 + $0x120] sm:$0xff]  }
  0x61   : > { %3298 = vmatpush3.bf16.msra.mxu0 %v3505_v48  ;;  %3179 = vmatprep.subr.bf16.mxu1 %v3508_v6  ;;  %v2899_v48 = vld [vmem:[%s3667_s28 + $0x40] sm:$0xf] }
  0x62   : > { %3299 = vmatprep.subr.bf16.mxu0 %v3509_v25  ;;  %v1907_v34 = vshrl.u32 %v2899_v48, 16  ;;  %v1910_v22 = vshll.u32 %v2899_v48, 16  ;;  %v3523_v48 = vld [vmem:[%s4270_s1 + $0x230] sm:$0xff]   ;;  %v4143_v54 = vrot.slane %v1197_v47, 5 }
  0x64   : > { %3180 = vmatpush3.bf16.msra.mxu1 %v3508_v6  ;;  %v1909_v24 = vrot.slane %v1907_v34, 4  ;;  %v1912_v6 = vrot.slane %v1910_v22, 5  ;;  %v2122_v34 = vrot.slane %v3933_v60, 5  ;;  %v2941_v22 = vrot.slane %v2933_v18, 9 }
  0x65   : > { %3300 = vmatpush3.bf16.msra.mxu0 %v3509_v25  ;;  %3189 = vmatprep.subr.bf16.mxu1 %v3510_v40  ;;  %v1921_v25 = vshrl.u32 %v2901_v13, 16  ;;  %v3522_v13 = vld [vmem:[%s4270_s1 + $0xf0] sm:$0xff]   ;;  %v2130_v60 = vrot.slane %v3990_v45, 5 }
  0x66   : > { %3309 = vmatprep.subr.bf16.mxu0 %v3511_v43  ;;  %v1913_v35 = vor.u32 %v1912_v6, %v1909_v24  ;;  %v2944_v24 = vrot.slane %v2936_v12, 9  ;;  %v2938_v6 = vld [vmem:[%s3667_s28 + $0x48] sm:$0xe]  ;;  %v2123_v7 = vsel %vm3703_vm4, %v2941_v22, %v2122_v34 }
  0x67   : > { %3182 = vmatmul.mubr.bf16.vlgmr.msra.gmra.mrb[0].mxu1 %v2716_v17  ;;  %v817_v17 = vsel %vm3703_vm4, %v2698_v19, %v816_v37  ;;  %v1923_v30 = vrot.slane %v1921_v25, 4  ;;  %v2934_v19 = vld [vmem:[%s3667_s28 + $0x28] sm:$0xe]  ;;  %v3528_v25 = vld [vmem:[%s4274_s5] sm:$0xff]  }
  0x68   : > { %3302 = vmatmul.mubr.bf16.vlgmr.msra.gmra.mrb[0].mxu0 %v2920_v10  ;;  %3190 = vmatpush3.bf16.msra.mxu1 %v3510_v40  ;;  %v2921_v40 = vcombine.low %v1891_v27, %v1905_v29  ;;  %v2718_v28 = vcombine.low %v813_v51, %v817_v17  ;;  %v1914_v37 = vrot.slane %v1913_v35, 4  ;;  %v1932_v10 = vrot.slane %v1930_v38, 5  ;;  %v3524_v51 = vld [vmem:[%s4270_s1 + $0xf8] sm:$0xff]   ;;  %v2937_v27 = vld [vmem:[%s3667_s28 + $0x40] sm:$0xe]  ;;  %v3531_v35 = vld [vmem:[%s4274_s5 + $0x8] sm:$0xff]  }
  0x69   : > { %3310 = vmatpush3.bf16.msra.mxu0 %v3511_v43  ;;  %3191 = vmatprep.subr.bf16.mxu1 %v3512_v14  ;;  %v1918_v43 = vrot.slane %v1916_v23, 5  ;;  %v1927_v50 = vor.u32 %v1926_v44, %v1923_v30  ;;  %v2942_v23 = vrot.slane %v2934_v19, 9  ;;  %v2134_v17 = vrot.slane %v3997_v49, 5  ;;  %v3530_v44 = vld [vmem:[%s4270_s1 + $0x108] sm:$0xff]   ;;  %v3533_v19 = vld [vmem:[%s4274_s5 + $0x10] sm:$0xff]  }
  0x6a   : > { %3311 = vmatprep.subr.bf16.mxu0 %v3513_v58  ;;  %3185 = vmatprep.mubr.bf16.mxu1 %v2717_v5  ;;  %v3521_v5 = vld [vmem:[%s4270_s1 + $0x228] sm:$0xff]   ;;  %v2138_v49 = vrot.slane %v4014_v32, 5  ;;  %v2945_v29 = vrot.slane %v2937_v27, 9  ;;  %v2946_v30 = vrot.slane %v2938_v6, 9  ;;  %v1211_v38 = vshll.u32 %v4111_v31, 16 }
  0x6b   : > { %3305 = vmatprep.mubr.bf16.mxu0 %v2921_v40  ;;  %v2127_v45 = vsel %vm3703_vm4, %v2942_v23, %v2126_v20  ;;  %v3529_v40 = vld [vmem:[%s3667_s28 + $0x18] ss:$8 sps:$4 sm:$0xff]  }
  0x6c   : > { %3192 = vmatpush3.bf16.msra.mxu1 %v3512_v14  ;;  %v1919_v14 = vsel %vm3711_vm5, %v1914_v37, %v1918_v43  ;;  %v2765_v43 = vld [vmem:[%s3667_s28 + $0x10] sm:$0xf]  ;;  %v4147_v56 = vsel %vm3703_vm4, %v2945_v29, %v2138_v49  ;;  %v1213_v27 = vrot.slane %v1211_v38, 5  ;;  %v3541_v6 = vld [vmem:[%s3667_s28 + $0x38] ss:$8 sps:$4 sm:$0xff]  }
  0x6d   : > { %3312 = vmatpush3.bf16.msra.mxu0 %v3513_v58  ;;  %3193 = vmatprep.subr.bf16.mxu1 %v3514_v15  ;;  %v1928_v58 = vrot.slane %v1927_v50, 4  ;;  %v3540_v37 = vld [vmem:[%s3667_s28 + $0x28] ss:$8 sps:$4 sm:$0xff]   ;;  %v1174_v42 = vshrl.u32 %v2765_v43, 16  ;;  %v1177_v50 = vshll.u32 %v2765_v43, 16  ;;  %v3535_v29 = vld [vmem:[%s4274_s5 + $0x18] sm:$0xff]  }
  0x6e   : > { %3313 = vmatprep.subr.bf16.mxu0 %v3515_v0  ;;  %v3550_v38 = vld [vmem:[%s3667_s28 + $0x2c] sm:$0x1] }
  0x6f   : > { %3186 = vmatmul.mubr.bf16.gmra.mrb[4].mxu1 %v2718_v28  ;;  %v1933_v3 = vsel %vm3711_vm5, %v1928_v58, %v1932_v10  ;;  %v2964_v28 = vcombine.low %v2123_v7, %v2127_v45  ;;  %v2298_v58 = vld [vmem:[%s4126_s30] sm:$0xff]  ;;  %v1176_v63 = vrot.slane %v1174_v42, 4 }
  0x70   : > { %3194 = vmatpush3.bf16.msra.mxu1 %v3514_v15  ;;  %3205 = vmatprep.mubr.bf16.mxu1 %v3526_v41  ;;  %v2922_v26 = vcombine.low %v1919_v14, %v1933_v3  ;;  %v3525_v15 = vld [vmem:[%s4270_s1 + $0x238] sm:$0xff]   ;;  %v2763_v41 = vld [vmem:[%s3667_s28 + $0x8] sm:$0xf]  ;;  %v4156_v14 = vld [vmem:[%s4273_s4] ss:$0 sm:$0xff] }
  0x71   : > { %3314 = vmatpush3.bf16.msra.mxu0 %v3515_v0  ;;  %3195 = vmatprep.subr.bf16.mxu1 %v3516_v39  ;;  %v2935_v0 = vld [vmem:[%s3667_s28 + $0x30] sm:$0xe]  ;;  %v1160_v10 = vshrl.u32 %v2763_v41, 16  ;;  %v1163_v46 = vshll.u32 %v2763_v41, 16  ;;  %v2767_v3 = vld [vmem:[%s3667_s28 + $0x18] sm:$0xf]  ;;  %v2327_v34 = vadd.f32 %v4156_v14, %v2313_v33 }
  0x72   : > { %3315 = vmatprep.subr.bf16.mxu0 %v3517_v52  ;;  %3306 = vmatmul.mubr.bf16.gmra.mrb[4].mxu0 %v2922_v26  ;;  %v2943_v1 = vrot.slane %v2935_v0, 9  ;;  %v2769_v26 = vld [vmem:[%s3667_s28 + $0x20] sm:$0xf] }
  0x73   : > { %3325 = vmatprep.mubr.bf16.mxu0 %v2963_v4  ;;  %v1162_v61 = vrot.slane %v1160_v10, 4  ;;  %v1165_v62 = vrot.slane %v1163_v46, 5  ;;  %v2312_v4 = vmul.f32 %v4141_v53, %v2298_v58  ;;  %v1205_v18 = vshll.u32 %v2769_v26, 16 }
  0x74   : > { %3196 = vmatpush3.bf16.msra.mxu1 %v3516_v39  ;;  %v3527_v39 = vld [vmem:[%s4270_s1 + $0x100] sm:$0xff]   ;;  %v2131_v32 = vsel %vm3703_vm4, %v2943_v1, %v2130_v60  ;;  %v2335_v1 = vmax.f32 %v2327_v34, 0.0 }
  0x75   : > { %3316 = vmatpush3.bf16.msra.mxu0 %v3517_v52  ;;  %3197 = vmatprep.subr.bf16.mxu1 %v3518_v2  ;;  %v2142_v52 = vrot.slane %v4026_v21, 5  ;;  %v2135_v21 = vsel %vm3703_vm4, %v2944_v24, %v2134_v17  ;;  %v1166_v16 = vor.u32 %v1165_v62, %v1162_v61  ;;  %v1207_v12 = vrot.slane %v1205_v18, 5 }
  0x76   : > { %3317 = vmatprep.subr.bf16.mxu0 %v3519_v57  ;;  %v2965_v55 = vcombine.low %v2131_v32, %v2135_v21 }
  0x77   : > { %v1167_v22 = vrot.slane %v1166_v16, 4  ;;  %v2300_v16 = vld [vmem:[%s4126_s30 + $0x10] sm:$0xff] }
  0x78   : > { %3198 = vmatpush3.bf16.msra.mxu1 %v3518_v2  ;;  %v1179_v2 = vrot.slane %v1177_v50, 5  ;;  %v2777_v50 = vld [vmem:[%s3667_s28 + $0x40] sm:$0xf] }
  0x79   : > { %3318 = vmatpush3.bf16.msra.mxu0 %v3519_v57  ;;  %3199 = vmatprep.subr.bf16.mxu1 %v3520_v9  ;;  %v4151_v57 = vsel %vm3703_vm4, %v2946_v30, %v2142_v52  ;;  %v1172_v7 = vsel %vm3711_vm5, %v1167_v22, %v4067_v11  ;;  %v2773_v52 = vld [vmem:[%s3667_s28 + $0x30] sm:$0xf]  ;;  %v3534_v11 = vld [vmem:[%s4270_s1 + $0x118] sm:$0xff]  }
  0x7a   : > { %3319 = vmatprep.subr.bf16.mxu0 %v3521_v5  ;;  %v1180_v47 = vor.u32 %v1179_v2, %v1176_v63  ;;  %v2966_v60 = vcombine.low %v4147_v56, %v4151_v57  ;;  %v1230_v43 = vshrl.u32 %v2773_v52, 16  ;;  %v3552_v63 = vld [vmem:[%s3667_s28 + $0x3c] sm:$0x1] }
  0x7b   : > { %v1253_v2 = vshll.u32 %v3552_v63, 16 }
  0x7c   : > { %3200 = vmatpush3.bf16.msra.mxu1 %v3520_v9  ;;  %v1191_v9 = vshll.u32 %v2767_v3, 16  ;;  %v1181_v23 = vrot.slane %v1180_v47, 4  ;;  %v1232_v57 = vrot.slane %v1230_v43, 4  ;;  %v2301_v47 = vld [vmem:[%s4126_s30 + $0x18] sm:$0xff] }
  0x7d   : > { %3320 = vmatpush3.bf16.msra.mxu0 %v3521_v5  ;;  %3201 = vmatprep.subr.bf16.mxu1 %v3522_v13  ;;  %v1188_v5 = vshrl.u32 %v2767_v3, 16  ;;  %v3553_v3 = vld [vmem:[%s3667_s28 + $0x44] sm:$0x1]  ;;  %v3544_v43 = vld [vmem:[%s4270_s1 + $0x138] sm:$0xff]  }
  0x7e   : > { %3321 = vmatprep.subr.bf16.mxu0 %v3523_v48  ;;  %v1193_v20 = vrot.slane %v1191_v9, 5  ;;  %v1186_v45 = vsel %vm3711_vm5, %v1181_v23, %v4072_v8  ;;  %v1258_v9 = vshrl.u32 %v2777_v50, 16  ;;  %v3538_v23 = vld [vmem:[%s4270_s1 + $0x128] sm:$0xff]  }
  0x7f   : > { %v2795_v30 = vcombine.low %v1172_v7, %v1186_v45 }
  0x80   : > { %3202 = vmatpush3.bf16.msra.mxu1 %v3522_v13  ;;  %v2326_v13 = vadd.f32 %v4156_v14, %v2312_v4  ;;  %v1267_v4 = vshll.u32 %v3553_v3, 16  ;;  %v1260_v22 = vrot.slane %v1258_v9, 4 }
  0x81   : > { %3322 = vmatpush3.bf16.msra.mxu0 %v3523_v48  ;;  %3203 = vmatprep.subr.bf16.mxu1 %v3524_v51  ;;  %v1202_v48 = vshrl.u32 %v2769_v26, 16 }
  0x82   : > { %3323 = vmatprep.subr.bf16.mxu0 %v3525_v15  ;;  %v2334_v17 = vmax.f32 %v2326_v13, 0.0  ;;  %v3539_v13 = vld [vmem:[%s4274_s5 + $0x28] sm:$0xff]  }
  0x83   : > { %v1204_v0 = vrot.slane %v1202_v48, 4 }
  0x84   : > { %3204 = vmatpush3.bf16.msra.mxu1 %v3524_v51  ;;  %v3532_v51 = vld [vmem:[%s4270_s1 + $0x110] sm:$0xff]  }
  0x85   : > { %3324 = vmatpush3.bf16.msra.mxu0 %v3525_v15  ;;  %3213 = vmatprep.subr.bf16.mxu1 %v3527_v39  ;;  %v1190_v15 = vrot.slane %v1188_v5, 4  ;;  %v1208_v49 = vor.u32 %v1207_v12, %v1204_v0  ;;  %v1255_v12 = vrot.slane %v1253_v2, 5 }
  0x86   : > { %3333 = vmatprep.subr.bf16.mxu0 %v3528_v25 }
  0x87   : > { %3206 = vmatmul.mubr.bf16.vlgmr.msra.gmra.mrb[0].mxu1 %v3529_v40  ;;  %v1194_v24 = vor.u32 %v1193_v20, %v1190_v15  ;;  %v1209_v32 = vrot.slane %v1208_v49, 4  ;;  %v3551_v40 = vld [vmem:[%s3667_s28 + $0x34] sm:$0x1]  ;;  %v2302_v15 = vld [vmem:[%s4126_s30 + $0x20] sm:$0xff]  ;;  %v2303_v20 = vld [vmem:[%s4126_s30 + $0x28] sm:$0xff] }
  0x88   : > { %3326 = vmatmul.mubr.bf16.vlgmr.msra.gmra.mrb[0].mxu0 %v2964_v28  ;;  %3214 = vmatpush3.bf16.msra.mxu1 %v3527_v39  ;;  %v1225_v39 = vshll.u32 %v3550_v38, 16  ;;  %v1239_v28 = vshll.u32 %v3551_v40, 16  ;;  %v2316_v7 = vmul.f32 %v4141_v53, %v2302_v15  ;;  %v2317_v45 = vmul.f32 %v4141_v53, %v2303_v20  ;;  %v2304_v40 = vld [vmem:[%s4126_s30 + $0x30] sm:$0xff] }
  0x89   : > { %3334 = vmatpush3.bf16.msra.mxu0 %v3528_v25  ;;  %3215 = vmatprep.subr.bf16.mxu1 %v3530_v44  ;;  %v2771_v25 = vld [vmem:[%s3667_s28 + $0x28] sm:$0xf]  ;;  %v1195_v31 = vrot.slane %v1194_v24, 4  ;;  %v1214_v10 = vsel %vm3711_vm5, %v1209_v32, %v1213_v27  ;;  %v2315_v24 = vmul.f32 %v4141_v53, %v2301_v47 }
  0x8a   : > { %3335 = vmatprep.subr.bf16.mxu0 %v3531_v35  ;;  %3209 = vmatprep.mubr.bf16.mxu1 %v3540_v37  ;;  %v1216_v8 = vshrl.u32 %v2771_v25, 16  ;;  %v1219_v21 = vshll.u32 %v2771_v25, 16  ;;  %v2775_v37 = vld [vmem:[%s3667_s28 + $0x38] sm:$0xf]  ;;  %v1227_v56 = vrot.slane %v1225_v39, 5  ;;  %v1241_v26 = vrot.slane %v1239_v28, 5 }
  0x8b   : > { %3329 = vmatprep.mubr.bf16.mxu0 %v2965_v55  ;;  %v1200_v41 = vsel %vm3711_vm5, %v1195_v31, %v4143_v54  ;;  %v3537_v55 = vld [vmem:[%s4274_s5 + $0x20] sm:$0xff]   ;;  %v1244_v62 = vshrl.u32 %v2775_v37, 16  ;;  %v1247_v5 = vshll.u32 %v2775_v37, 16  ;;  %v2329_v39 = vadd.f32 %v4156_v14, %v2315_v24  ;;  %v2305_v28 = vld [vmem:[%s4126_s30 + $0x38] sm:$0xff] }
  0x8c   : > { %3216 = vmatpush3.bf16.msra.mxu1 %v3530_v44  ;;  %v1233_v44 = vshll.u32 %v2773_v52, 16  ;;  %v1218_v46 = vrot.slane %v1216_v8, 4  ;;  %v1221_v42 = vrot.slane %v1219_v21, 5  ;;  %v4203_v54 = vcombine.low %v1200_v41, %v1214_v10  ;;  %v3543_v52 = vld [vmem:[%s4274_s5 + $0x30] sm:$0xff]  }
  0x8d   : > { %3336 = vmatpush3.bf16.msra.mxu0 %v3531_v35  ;;  %3217 = vmatprep.subr.bf16.mxu1 %v3532_v51  ;;  %v2993_v35 = vpack.c.bf16 %v2335_v1, %v2334_v17  ;;  %v1246_v18 = vrot.slane %v1244_v62, 4  ;;  %v1269_v17 = vrot.slane %v1267_v4, 5  ;;  %v2314_v1 = vmul.f32 %v4141_v53, %v2300_v16 }
  0x8e   : > { %3337 = vmatprep.subr.bf16.mxu0 %v3533_v19  ;;  %v1235_v58 = vrot.slane %v1233_v44, 5  ;;  %v1222_v61 = vor.u32 %v1221_v42, %v1218_v46  ;;  %v2330_v32 = vadd.f32 %v4156_v14, %v2316_v7  ;;  %v2331_v8 = vadd.f32 %v4156_v14, %v2317_v45 }
  0x8f   : > { %3210 = vmatmul.mubr.bf16.gmra.mrb[4].mxu1 %v3541_v6  ;;  %v2328_v38 = vadd.f32 %v4156_v14, %v2314_v1  ;;  %v2337_v37 = vmax.f32 %v2329_v39, 0.0  ;;  %v2318_v10 = vmul.f32 %v4141_v53, %v2304_v40  ;;  %v2319_v36 = vmul.f32 %v4141_v53, %v2305_v28 }
  0x90   : > { %3330 = vmatmul.mubr.bf16.gmra.mrb[4].mxu0 %v2966_v60  ;;  %3218 = vmatpush3.bf16.msra.mxu1 %v3532_v51  ;;  %v1236_v33 = vor.u32 %v1235_v58, %v1232_v57  ;;  %v1223_v48 = vrot.slane %v1222_v61, 4  ;;  %v1249_v51 = vrot.slane %v1247_v5, 5  ;;  %v2338_v46 = vmax.f32 %v2330_v32, 0.0 }
  0x91   : > { %3338 = vmatpush3.bf16.msra.mxu0 %v3533_v19  ;;  %3219 = vmatprep.subr.bf16.mxu1 %v3534_v11  ;;  %v1261_v19 = vshll.u32 %v2777_v50, 16  ;;  %v2336_v44 = vmax.f32 %v2328_v38, 0.0  ;;  %v2339_v42 = vmax.f32 %v2331_v8, 0.0 }
  0x92   : > { %3339 = vmatprep.subr.bf16.mxu0 %v3535_v29  ;;  %3229 = vmatprep.mubr.bf16.mxu1 %v2795_v30  ;;  %v1237_v34 = vrot.slane %v1236_v33, 4  ;;  %v1228_v0 = vsel %vm3711_vm5, %v1223_v48, %v1227_v56  ;;  %v1250_v27 = vor.u32 %v1249_v51, %v1246_v18  ;;  %v3542_v30 = vld [vmem:[%s4270_s1 + $0x130] sm:$0xff]   ;;  %v2333_v56 = vadd.f32 %v4156_v14, %v2319_v36 }
  0x93   : > { %3349 = vmatprep.mubr.bf16.mxu0 %v2993_v35  ;;  %v1263_v60 = vrot.slane %v1261_v19, 5  ;;  %v3545_v35 = vld [vmem:[%s4274_s5 + $0x38] sm:$0xff]   ;;  %v2994_v50 = vpack.c.bf16 %v2337_v37, %v2336_v44  ;;  %v2995_v57 = vpack.c.bf16 %v2339_v42, %v2338_v46 }
  0x94   : > { %3220 = vmatpush3.bf16.msra.mxu1 %v3534_v11  ;;  %v1242_v25 = vsel %vm3711_vm5, %v1237_v34, %v1241_v26 }
  0x95   : > { %3340 = vmatpush3.bf16.msra.mxu0 %v3535_v29  ;;  %3221 = vmatprep.subr.bf16.mxu1 %v3536_v59  ;;  %v2797_v6 = vcombine.low %v1228_v0, %v1242_v25  ;;  %v1264_v49 = vor.u32 %v1263_v60, %v1260_v22  ;;  %v1251_v29 = vrot.slane %v1250_v27, 4 }
  0x96   : > { %3341 = vmatprep.subr.bf16.mxu0 %v3537_v55 }
  0x97   : > { %v1265_v31 = vrot.slane %v1264_v49, 4  ;;  %v1256_v11 = vsel %vm3711_vm5, %v1251_v29, %v1255_v12 }
  0x98   : > { %3222 = vmatpush3.bf16.msra.mxu1 %v3536_v59  ;;  %v2341_v59 = vmax.f32 %v2333_v56, 0.0 }
  0x99   : > { %3342 = vmatpush3.bf16.msra.mxu0 %v3537_v55  ;;  %3223 = vmatprep.subr.bf16.mxu1 %v3538_v23  ;;  %v1270_v21 = vsel %vm3711_vm5, %v1265_v31, %v1269_v17  ;;  %v2332_v55 = vadd.f32 %v4156_v14, %v2318_v10 }
  0x9a   : > { %3343 = vmatprep.subr.bf16.mxu0 %v3539_v13  ;;  %v2798_v41 = vcombine.low %v1256_v11, %v1270_v21 }
  0x9b   : > { %v2340_v58 = vmax.f32 %v2332_v55, 0.0 }
  0x9c   : > { %3224 = vmatpush3.bf16.msra.mxu1 %v3538_v23 }
  0x9d   : > { %3344 = vmatpush3.bf16.msra.mxu0 %v3539_v13  ;;  %3225 = vmatprep.subr.bf16.mxu1 %v3542_v30  ;;  %v2996_v53 = vpack.c.bf16 %v2341_v59, %v2340_v58 }
  0x9e   : > { %3345 = vmatprep.subr.bf16.mxu0 %v3543_v52 }
  0xa0   : > { %3226 = vmatpush3.bf16.msra.mxu1 %v3542_v30 }
  0xa1   : > { %3346 = vmatpush3.bf16.msra.mxu0 %v3543_v52  ;;  %3227 = vmatprep.subr.bf16.mxu1 %v3544_v43 }
  0xa2   : > { %3347 = vmatprep.subr.bf16.mxu0 %v3545_v35 }
  0xa4   : > { %3228 = vmatpush3.bf16.msra.mxu1 %v3544_v43 }
  0xa5   : > { %3348 = vmatpush3.bf16.msra.mxu0 %v3545_v35 }
  0xa7   : > { %3230 = vmatmul.mubr.bf16.vlgmr.msra.gmra.mrb[0].mxu1 %v4203_v54 }
  0xa8   : > { %3350 = vmatmul.mubr.bf16.vlgmr.msra.gmra.mrb[0].mxu0 %v2994_v50  ;;  %3233 = vmatprep.mubr.bf16.mxu1 %v2797_v6 }
  0xa9   : > { %3353 = vmatprep.mubr.bf16.mxu0 %v2995_v57 }
  0xaf   : > { %3234 = vmatmul.mubr.bf16.gmra.mrb[4].mxu1 %v2798_v41 }
  0xb0   : > { %3354 = vmatmul.mubr.bf16.gmra.mrb[4].mxu0 %v2996_v53 }
 0x17a   : > { %v3231_v62 = vpop.f32.mrb[0].mxu1 }
 0x17b   : > { %v3351_v61 = vpop.f32.mrb[0].mxu0  ;;  %v1386_v2 = vpop.f32.mrb[1].mxu1 }
 0x17c   : > { %v2472_v14 = vpop.f32.mrb[1].mxu0  ;;  %v3357_v63 = vadd.f32 %v3351_v61, %v3231_v62  ;;  %v3232_v33 = vpop.f32.mrb[2].mxu1 }
 0x17d   : > { %v3352_v3 = vpop.f32.mrb[2].mxu0  ;;  %v3358_v4 = vadd.f32 %v2472_v14, %v1386_v2  ;;  %v1389_v5 = vpop.f32.mrb[3].mxu1 }
 0x17e   : > { %v2475_v26 = vpop.f32.mrb[3].mxu0  ;;  %2513 = vst [vmem:[%s325_s27 + $0x10] sm:$0xff] %v3357_v63  ;;  %v3359_v54 = vadd.f32 %v3352_v3, %v3232_v33 }
 0x17f   : > { %2511 = vst [vmem:[%s325_s27] sm:$0xff] %v3358_v4  ;;  %v3360_v9 = vadd.f32 %v2475_v26, %v1389_v5 }
 0x180   : > { %2514 = vst [vmem:[%s325_s27 + $0x18] sm:$0xff] %v3359_v54 }
 0x181   : > { %2512 = vst [vmem:[%s325_s27 + $0x8] sm:$0xff] %v3360_v9 }
 0x182   : > { %v3235_v47 = vpop.f32.mrb[4].mxu1 }
 0x183   : > { %v3355_v16 = vpop.f32.mrb[4].mxu0  ;;  %v1402_v19 = vpop.f32.mrb[5].mxu1 }
 0x184   : > { %v2488_v48 = vpop.f32.mrb[5].mxu0  ;;  %v3361_v18 = vadd.f32 %v3355_v16, %v3235_v47  ;;  %v3236_v15 = vpop.f32.mrb[6].mxu1 }
 0x185   : > { %v3356_v13 = vpop.f32.mrb[6].mxu0  ;;  %v3362_v34 = vadd.f32 %v2488_v48, %v1402_v19  ;;  %v1405_v22 = vpop.f32.mrb[7].mxu1 }
 0x186   : > { %v2491_v20 = vpop.f32.mrb[7].mxu0  ;;  %2517 = vst [vmem:[%s325_s27 + $0x30] sm:$0xff] %v3361_v18  ;;  %v3363_v51 = vadd.f32 %v3356_v13, %v3236_v15 }
 0x187   : > { %2515 = vst [vmem:[%s325_s27 + $0x20] sm:$0xff] %v3362_v34  ;;  %v3364_v23 = vadd.f32 %v2491_v20, %v1405_v22 }
 0x188   : > { %2518 = vst [vmem:[%s325_s27 + $0x38] sm:$0xff] %v3363_v51 }
 0x189   : > { %2516 = vst [vmem:[%s325_s27 + $0x28] sm:$0xff] %v3364_v23 }
 0x18a PF: > { %s16_s23 = sadd.s32 1, %s3576_s23   ;;  %s4280_s21 = smov %s3572_s22 }
 0x18b   : > { %p13_p5 = scmp.ge.s32.totalorder %s16_s23, 4   ;;  %s4281_s22 = smov %s4283_s24 }
 0x18d   :  { %15 = sbr.rel (!%p13_p5) target bundleno = 2 (0x2), region = 93 }

// kernel: basic_block_forward.2
= control target key start
LH: loop header
LB: loop body
LE: loop exit
PB: predicated region body
PF: predicated region fallthrough
CT: control target
= control target key end

     0   :  { %s4439_s21 = smov 0   ;;  %s4441_s22 = smov 0   ;;  %s5207_s0 = inlined_call_operand.vmem [shape: f32[8,9,9,128], index: 0, kind: input, shape index: {}]   ;;  %s5208_s1 = inlined_call_operand.vmem [shape: f32[1,128], index: 1, kind: input, shape index: {}]   ;;  %s5209_s2 = inlined_call_operand.vmem [shape: f32[1,128], index: 2, kind: input, shape index: {}]   ;;  %s5210_s3 = inlined_call_operand.vmem [shape: bf16[9,128,128], index: 3, kind: input, shape index: {}]   ;;  %s5211_s4 = inlined_call_operand.vmem [shape: f32[1,128], index: 4, kind: input, shape index: {}]   ;;  %s5212_s5 = inlined_call_operand.vmem [shape: f32[1,128], index: 5, kind: input, shape index: {}]   ;;  %s5213_s6 = inlined_call_operand.vmem [shape: bf16[2,10,10,128], index: 6, kind: output, shape index: {}]  }
   0x1   :  { %s4443_s23 = smov 0  }
   0x2 LB: > { %s28_s24 = sadd.s32 1, %s4397_s22  ;;  %p3340_p0 = scmp.ge.s32.totalorder %s4401_s23, 1  ;;  %s4401_s23 = sphi %s4443_s23, %s16_s23   ;;  %s4397_s22 = sphi %s4441_s22, %s5221_s22   ;;  %s4393_s21 = sphi %s4439_s21, %s5220_s21  }
   0x3   : > { %p30_p1 = scmp.ge.s32.totalorder %s28_s24, 2  ;;  %p253_p2 = scmp.lt.s32.totalorder %s4401_s23, 3 }
   0x5   : > { %s5223_s24 = smov (%p30_p1, %s28_s24), 0  ;;  %p254_p3 = pnand %p3340_p0, %p253_p2 }
   0x6   : > { %v4279_v0 = vld [vmem:[%s5210_s3 + $0x40] sm:$0xff] (!%p254_p3)   ;;  %s3341_s27 = sshll.u32 (!%p254_p3), %s4393_s21, 2  ;;  %v4281_v2 = vld [vmem:[%s5210_s3 + $0x48] sm:$0xff] (!%p254_p3)   ;;  %v4283_v4 = vld [vmem:[%s5210_s3 + $0x50] sm:$0xff] (!%p254_p3)   ;;  %vm359_vm0 = vsmask.f32 (!%p254_p3), 256 }
   0x7   : > { %257 = sbr.rel (%p254_p3) target bundleno = 441 (0x1b9), region = 44  ;;  %v4280_v1 = vld [vmem:[%s5210_s3 + $0x100] sm:$0xff] (!%p254_p3)   ;;  %p298_p4 = scmp.lt.s32.totalorder (!%p254_p3), %s3341_s27, 7  ;;  %3956 = vmatprep.subr.bf16.mxu1 (!%p254_p3), %v4279_v0  ;;  %v4282_v3 = vld [vmem:[%s5210_s3 + $0x108] sm:$0xff] (!%p254_p3)   ;;  %v4284_v5 = vld [vmem:[%s5210_s3 + $0x110] sm:$0xff] (!%p254_p3)   ;;  %vm358_vm1 = vcmask (!%p254_p3), 1040384  }
   0x8   : > { %4052 = vmatprep.subr.bf16.mxu0 (!%p254_p3), %v4280_v1  ;;  %3957 = vmatpush3.bf16.msra.mxu1 (!%p254_p3), %v4279_v0  ;;  %v4285_v6 = vld [vmem:[%s5210_s3 + $0x58] sm:$0xff] (!%p254_p3)   ;;  %v4287_v8 = vld [vmem:[%s5210_s3 + $0x60] sm:$0xff] (!%p254_p3)   ;;  %v4289_v10 = vld [vmem:[%s5210_s3 + $0x68] sm:$0xff] (!%p254_p3)   ;;  %vm1496_vm3 = vsmask.f32 (!%p254_p3), 3328  ;;  %p314_p5 = scmp.lt.s32.totalorder (!%p254_p3), %s4393_s21, 1 }
   0x9   : > { %4053 = vmatpush3.bf16.msra.mxu0 (!%p254_p3), %v4280_v1  ;;  %3958 = vmatprep.subr.bf16.mxu1 (!%p254_p3), %v4281_v2  ;;  %v4286_v7 = vld [vmem:[%s5210_s3 + $0x118] sm:$0xff] (!%p254_p3)   ;;  %v4288_v9 = vld [vmem:[%s5210_s3 + $0x120] sm:$0xff] (!%p254_p3)   ;;  %v4290_v11 = vld [vmem:[%s5210_s3 + $0x128] sm:$0xff] (!%p254_p3)   ;;  %vm1497_vm4 = vsmask.f32 (!%p254_p3), 7440  ;;  %vm3162_vm6 = vcmask (!%p254_p3), 1043456  }
   0xa   : > { %4054 = vmatprep.subr.bf16.mxu0 (!%p254_p3), %v4282_v3  ;;  %v4504_v12 = vld [vmem:[%s5208_s1] ss:$0 sm:$0xff] (!%p254_p3)  ;;  %v4291_v21 = vld [vmem:[%s5210_s3 + $0x70] sm:$0xff] (!%p254_p3)   ;;  %v4293_v38 = vld [vmem:[%s5210_s3 + $0x78] sm:$0xff] (!%p254_p3)   ;;  %vm3163_vm7 = vsmask.f32 (!%p254_p3), 7938 }
   0xb   : > { %v4509_v13 = vld [vmem:[%s5209_s2] ss:$0 sm:$0xff] (!%p254_p3)  ;;  %v4292_v24 = vld [vmem:[%s5210_s3 + $0x130] sm:$0xff] (!%p254_p3)   ;;  %v4294_v40 = vld [vmem:[%s5210_s3 + $0x138] sm:$0xff] (!%p254_p3)  }
   0xc   : > { %3959 = vmatpush3.bf16.msra.mxu1 (!%p254_p3), %v4281_v2  ;;  %v4296_v51 = vld [vmem:[%s5210_s3] sm:$0xff] (!%p254_p3)   ;;  %vm4649_vm2 = vmand (!%p254_p3), %vm358_vm1, %vm359_vm0 }
   0xd   : > { %4055 = vmatpush3.bf16.msra.mxu0 (!%p254_p3), %v4282_v3  ;;  %3960 = vmatprep.subr.bf16.mxu1 (!%p254_p3), %v4283_v4  ;;  %v4553_v54 = vld [vmem:[%s5210_s3 + $0x140] sm:$0xff] (!%p254_p3)   ;;  %vm4788_vm5 = vmor (!%p254_p3), %vm1496_vm3, %vm1497_vm4 }
   0xe   : > { %s5225_s27 = smov (!%p298_p4, %s3341_s27), 7  ;;  %4056 = vmatprep.subr.bf16.mxu0 %v4284_v5  ;;  %s5227_s21 = smov (!%p314_p5, %s4393_s21), 1  ;;  %vm5133_vm8 = vmand %vm3162_vm6, %vm3163_vm7 }
   0xf   : > { %s4252_s18 = smul.u32 144, %s5225_s27 }
  0x10   : > { %3961 = vmatpush3.bf16.msra.mxu1 %v4283_v4  ;;  %s4253_s27 = smul.u32 80, %s5227_s21 }
  0x11   : > { %4057 = vmatpush3.bf16.msra.mxu0 %v4284_v5  ;;  %3962 = vmatprep.subr.bf16.mxu1 %v4285_v6  ;;  %s4493_s30 = scalar_lea.vmem %s5207_s0, %s4252_s18 }
  0x12   : > { %4058 = vmatprep.subr.bf16.mxu0 %v4286_v7  ;;  %v3380_v14 = vld [vmem:[%s4493_s30 + $0x90] sm:$0xff]  ;;  %v3384_v16 = vld [vmem:[%s4493_s30 + $0xa0] sm:$0xff]  ;;  %s5094_s11 = scalar_lea.vmem %s5213_s6, %s4253_s27 }
  0x13   : > { %v543_v15 = vmul.f32 %v3380_v14, %v4504_v12  ;;  %v565_v17 = vmul.f32 %v3384_v16, %v4504_v12  ;;  %v3452_v19 = vld [vmem:[%s4493_s30 + $0x1b0] sm:$0xff]  ;;  %v3456_v20 = vld [vmem:[%s4493_s30 + $0x1c0] sm:$0xff] }
  0x14   : > { %3963 = vmatpush3.bf16.msra.mxu1 %v4285_v6  ;;  %v3388_v23 = vld [vmem:[%s4493_s30 + $0xb0] sm:$0xff]  ;;  %v939_v26 = vmul.f32 %v3452_v19, %v4504_v12  ;;  %v961_v27 = vmul.f32 %v3456_v20, %v4504_v12  ;;  %v3392_v29 = vld [vmem:[%s4493_s30 + $0xc0] sm:$0xff] }
  0x15   : > { %4059 = vmatpush3.bf16.msra.mxu0 %v4286_v7  ;;  %3964 = vmatprep.subr.bf16.mxu1 %v4287_v8  ;;  %v545_v18 = vadd.f32 %v4509_v13, %v543_v15  ;;  %v567_v22 = vadd.f32 %v4509_v13, %v565_v17  ;;  %v587_v28 = vmul.f32 %v3388_v23, %v4504_v12  ;;  %v3460_v30 = vld [vmem:[%s4493_s30 + $0x1d0] sm:$0xff]  ;;  %v3464_v33 = vld [vmem:[%s4493_s30 + $0x1e0] sm:$0xff]  ;;  %v4302_v15 = vld [vmem:[%s5210_s3 + $0x148] sm:$0xff]  }
  0x16   : > { %4060 = vmatprep.subr.bf16.mxu0 %v4288_v9  ;;  %v609_v32 = vmul.f32 %v3392_v29, %v4504_v12  ;;  %v941_v35 = vadd.f32 %v4509_v13, %v939_v26  ;;  %v963_v36 = vadd.f32 %v4509_v13, %v961_v27  ;;  %v983_v45 = vmul.f32 %v3460_v30, %v4504_v12  ;;  %v3396_v61 = vld [vmem:[%s4493_s30 + $0xd0] sm:$0xff]  ;;  %v3400_v63 = vld [vmem:[%s4493_s30 + $0xe0] sm:$0xff] }
  0x17   : > { %v547_v25 = vmax.f32 %v545_v18, 0.0  ;;  %v569_v31 = vmax.f32 %v567_v22, 0.0  ;;  %v589_v37 = vadd.f32 %v4509_v13, %v587_v28  ;;  %v1005_v46 = vmul.f32 %v3464_v33, %v4504_v12  ;;  %v3468_v1 = vld [vmem:[%s4493_s30 + $0x1f0] sm:$0xff]  ;;  %v3472_v2 = vld [vmem:[%s4493_s30 + $0x200] sm:$0xff] }
  0x18   : > { %3965 = vmatpush3.bf16.msra.mxu1 %v4287_v8  ;;  %v943_v41 = vmax.f32 %v941_v35, 0.0  ;;  %v965_v42 = vmax.f32 %v963_v36, 0.0  ;;  %v611_v44 = vadd.f32 %v4509_v13, %v609_v32  ;;  %v985_v52 = vadd.f32 %v4509_v13, %v983_v45  ;;  %v3404_v17 = vld [vmem:[%s4493_s30 + $0xf0] sm:$0xff]  ;;  %v3408_v18 = vld [vmem:[%s4493_s30 + $0x100] sm:$0xff] }
  0x19   : > { %4061 = vmatpush3.bf16.msra.mxu0 %v4288_v9  ;;  %3966 = vmatprep.subr.bf16.mxu1 %v4289_v10  ;;  %v3786_v34 = vpack.c.bf16 %v547_v25, %v547_v25  ;;  %v3788_v39 = vpack.c.bf16 %v569_v31, %v569_v31  ;;  %v591_v43 = vmax.f32 %v589_v37, 0.0  ;;  %v1007_v53 = vadd.f32 %v4509_v13, %v1005_v46  ;;  %v4301_v9 = vld [vmem:[%s5210_s3 + $0x8] sm:$0xff]   ;;  %v3476_v19 = vld [vmem:[%s4493_s30 + $0x210] sm:$0xff]  ;;  %v3480_v25 = vld [vmem:[%s4493_s30 + $0x220] sm:$0xff] }
  0x1a   : > { %4062 = vmatprep.subr.bf16.mxu0 %v4290_v11  ;;  %v3822_v47 = vpack.c.bf16 %v943_v41, %v943_v41  ;;  %v3824_v48 = vpack.c.bf16 %v965_v42, %v965_v42  ;;  %v613_v50 = vmax.f32 %v611_v44, 0.0  ;;  %v987_v56 = vmax.f32 %v985_v52, 0.0  ;;  %v4303_v20 = vld [vmem:[%s5210_s3 + $0x10] sm:$0xff]   ;;  %v329_v37 = vld [vmem:[%s4493_s30] sm:$0xff]  ;;  %v3381_v46 = vld [vmem:[%s4493_s30 + $0x98] sm:$0x1] }
  0x1b   : > { %558 = vst [vmem:[#allocation2 + $0x48] sm:$0xf] %v3786_v34  ;;  %580 = vst [vmem:[#allocation2 + $0x50] sm:$0xf] %v3788_v39  ;;  %v3790_v49 = vpack.c.bf16 %v591_v43, %v591_v43  ;;  %v1009_v57 = vmax.f32 %v1007_v53, 0.0  ;;  %v631_v62 = vmul.f32 %v3396_v61, %v4504_v12  ;;  %v653_v0 = vmul.f32 %v3400_v63, %v4504_v12  ;;  %v4304_v42 = vld [vmem:[%s5210_s3 + $0x150] sm:$0xff]  }
  0x1c   : > { %3967 = vmatpush3.bf16.msra.mxu1 %v4289_v10  ;;  %954 = vst [vmem:[#allocation2 + $0xd8] sm:$0xf] %v3822_v47  ;;  %976 = vst [vmem:[#allocation2 + $0xe0] sm:$0xf] %v3824_v48  ;;  %v3792_v55 = vpack.c.bf16 %v613_v50, %v613_v50  ;;  %v3826_v58 = vpack.c.bf16 %v987_v56, %v987_v56  ;;  %v1027_v5 = vmul.f32 %v3468_v1, %v4504_v12  ;;  %v4305_v47 = vld [vmem:[%s5210_s3 + $0x18] sm:$0xff]  }
  0x1d   : > { %4063 = vmatpush3.bf16.msra.mxu0 %v4290_v11  ;;  %3968 = vmatprep.subr.bf16.mxu1 %v4291_v21  ;;  %602 = vst [vmem:[#allocation2 + $0x58] sm:$0xf] %v3790_v49  ;;  %v3828_v59 = vpack.c.bf16 %v1009_v57, %v1009_v57  ;;  %v633_v4 = vadd.f32 %v4509_v13, %v631_v62  ;;  %v3385_v52 = vld [vmem:[%s4493_s30 + $0xa8] sm:$0x1]  ;;  %v4608_v53 = vld [vmem:[%s5210_s3 + $0x158] sm:$0xff]  }
  0x1e   : > { %4064 = vmatprep.subr.bf16.mxu0 %v4292_v24  ;;  %624 = vst [vmem:[#allocation2 + $0x60] sm:$0xf] %v3792_v55  ;;  %998 = vst [vmem:[#allocation2 + $0xe8] sm:$0xf] %v3826_v58  ;;  %v1049_v6 = vmul.f32 %v3472_v2, %v4504_v12  ;;  %v655_v7 = vadd.f32 %v4509_v13, %v653_v0  ;;  %v1029_v11 = vadd.f32 %v4509_v13, %v1027_v5  ;;  %v3389_v58 = vld [vmem:[%s4493_s30 + $0xb8] sm:$0x1] }
  0x1f   : > { %1020 = vst [vmem:[#allocation2 + $0xf0] sm:$0xf] %v3828_v59  ;;  %v635_v10 = vmax.f32 %v633_v4, 0.0  ;;  %v697_v28 = vmul.f32 %v3408_v18, %v4504_v12  ;;  %v1071_v29 = vmul.f32 %v3476_v19, %v4504_v12  ;;  %v1093_v30 = vmul.f32 %v3480_v25, %v4504_v12  ;;  %v3393_v59 = vld [vmem:[%s4493_s30 + $0xc8] sm:$0x1]  ;;  %v3416_v2 = vld [vmem:[%s4493_s30 + $0x120] sm:$0xff] }
  0x20   : > { %3969 = vmatpush3.bf16.msra.mxu1 %v4291_v21  ;;  %v1051_v14 = vadd.f32 %v4509_v13, %v1049_v6  ;;  %v657_v16 = vmax.f32 %v655_v7, 0.0  ;;  %v1031_v22 = vmax.f32 %v1029_v11, 0.0  ;;  %v566_v57 = vmul.f32 %v3385_v52, %v4504_v12  ;;  %v3397_v1 = vld [vmem:[%s4493_s30 + $0xd8] sm:$0x1]  ;;  %v3401_v7 = vld [vmem:[%s4493_s30 + $0xe8] sm:$0x1] }
  0x21   : > { %4065 = vmatpush3.bf16.msra.mxu0 %v4292_v24  ;;  %3970 = vmatprep.subr.bf16.mxu1 %v4293_v38  ;;  %v3794_v21 = vpack.c.bf16 %v635_v10, %v635_v10  ;;  %v675_v24 = vmul.f32 %v3404_v17, %v4504_v12  ;;  %v699_v34 = vadd.f32 %v4509_v13, %v697_v28  ;;  %v581_v18 = vld [vmem:[#allocation2 + $0x54] sm:$0x1]  ;;  %v3405_v28 = vld [vmem:[%s4493_s30 + $0xf8] sm:$0x1] }
  0x22   : > { %4066 = vmatprep.subr.bf16.mxu0 %v4294_v40  ;;  %v4295_v60 = vld [vmem:[#allocation2 + $0x48] ss:$8 sps:$4 sm:$0xff]   ;;  %v1053_v23 = vmax.f32 %v1051_v14, 0.0  ;;  %v3796_v27 = vpack.c.bf16 %v657_v16, %v657_v16  ;;  %v3830_v31 = vpack.c.bf16 %v1031_v22, %v1031_v22  ;;  %v1073_v35 = vadd.f32 %v4509_v13, %v1071_v29  ;;  %v4631_v16 = vld [vmem:[%s5210_s3 + $0x160] sm:$0xff]  }
  0x23   : > { %3972 = vmatprep.mubr.bf16.mxu1 %v4295_v60  ;;  %v4297_v3 = vld [vmem:[#allocation2 + $0xd8] ss:$8 sps:$4 sm:$0xff]   ;;  %646 = vst [vmem:[#allocation2 + $0x68] sm:$0xf] %v3794_v21  ;;  %v677_v33 = vadd.f32 %v4509_v13, %v675_v24  ;;  %v1095_v36 = vadd.f32 %v4509_v13, %v1093_v30  ;;  %v701_v43 = vmax.f32 %v699_v34, 0.0  ;;  %v588_v0 = vmul.f32 %v3389_v58, %v4504_v12 }
  0x24   : > { %3971 = vmatpush3.bf16.msra.mxu1 %v4293_v38  ;;  %4068 = vmatprep.mubr.bf16.mxu0 %v4297_v3  ;;  %v3832_v32 = vpack.c.bf16 %v1053_v23, %v1053_v23  ;;  %668 = vst [vmem:[#allocation2 + $0x70] sm:$0xf] %v3796_v27  ;;  %v3348_v38 = vld [vmem:[%s4493_s30 + $0x10] sm:$0xff]  ;;  %1042 = vst [vmem:[#allocation2 + $0xf8] sm:$0xf] %v3830_v31  ;;  %v1075_v44 = vmax.f32 %v1073_v35, 0.0  ;;  %v568_v4 = vadd.f32 %v4509_v13, %v566_v57 }
  0x25   : > { %4067 = vmatpush3.bf16.msra.mxu0 %v4294_v40  ;;  %3980 = vmatprep.subr.bf16.mxu1 %v4296_v51  ;;  %v4299_v8 = vld [vmem:[#allocation2 + $0x58] ss:$8 sps:$4 sm:$0xff]   ;;  %v679_v39 = vmax.f32 %v677_v33, 0.0  ;;  %v337_v40 = vmul.f32 %v4504_v12, %v329_v37  ;;  %v367_v41 = vmul.f32 %v3348_v38, %v4504_v12  ;;  %v1097_v45 = vmax.f32 %v1095_v36, 0.0  ;;  %v559_v3 = vld [vmem:[#allocation2 + $0x4c] sm:$0x1] }
  0x26   : > { %4076 = vmatprep.subr.bf16.mxu0 %v4553_v54  ;;  %v4300_v26 = vld [vmem:[#allocation2 + $0xe8] ss:$8 sps:$4 sm:$0xff]   ;;  %1064 = vst [vmem:[#allocation2 + $0x100] sm:$0xf] %v3832_v32  ;;  %v3834_v55 = vpack.c.bf16 %v1075_v44, %v1075_v44  ;;  %v4616_v60 = vld [vmem:[%s5210_s3 + $0x20] sm:$0xff]   ;;  %v610_v5 = vmul.f32 %v3393_v59, %v4504_v12  ;;  %v632_v6 = vmul.f32 %v3397_v1, %v4504_v12  ;;  %v570_v25 = vmax.f32 %v568_v4, 0.0 }
  0x27   : > { %3973 = vmatmul.mubr.bf16.vlgmr.msra.gmra.mrb[0].mxu1 %v4299_v8  ;;  %v3798_v48 = vpack.c.bf16 %v679_v39, %v679_v39  ;;  %v345_v49 = vadd.f32 %v4509_v13, %v337_v40  ;;  %v369_v50 = vadd.f32 %v4509_v13, %v367_v41  ;;  %v3836_v56 = vpack.c.bf16 %v1097_v45, %v1097_v45  ;;  %v4642_v23 = vld [vmem:[%s5210_s3 + $0x28] sm:$0xff]   ;;  %v603_v27 = vld [vmem:[#allocation2 + $0x5c] sm:$0x1]  ;;  %v625_v32 = vld [vmem:[#allocation2 + $0x64] sm:$0x1] }
  0x28   : > { %3981 = vmatpush3.bf16.msra.mxu1 %v4296_v51  ;;  %4069 = vmatmul.mubr.bf16.vlgmr.msra.gmra.mrb[0].mxu0 %v4300_v26  ;;  %v544_v51 = vmul.f32 %v3381_v46, %v4504_v12  ;;  %1086 = vst [vmem:[#allocation2 + $0x108] sm:$0xf] %v3834_v55  ;;  %v590_v14 = vadd.f32 %v4509_v13, %v588_v0  ;;  %v3409_v36 = vld [vmem:[%s4493_s30 + $0x108] sm:$0x1]  ;;  %v647_v40 = vld [vmem:[#allocation2 + $0x6c] sm:$0x1] }
  0x29   : > { %3982 = vmatprep.subr.bf16.mxu1 %v4301_v9  ;;  %4077 = vmatpush3.bf16.msra.mxu0 %v4553_v54  ;;  %v3800_v54 = vpack.c.bf16 %v701_v43, %v701_v43  ;;  %690 = vst [vmem:[#allocation2 + $0x78] sm:$0xf] %v3798_v48  ;;  %v347_v61 = vmax.f32 %v345_v49, 0.0  ;;  %v371_v62 = vmax.f32 %v369_v50, 0.0  ;;  %1108 = vst [vmem:[#allocation2 + $0x110] sm:$0xf] %v3836_v56 }
  0x2a   : > { %4078 = vmatprep.subr.bf16.mxu0 %v4302_v15  ;;  %v546_v63 = vadd.f32 %v4509_v13, %v544_v51  ;;  %v612_v19 = vadd.f32 %v4509_v13, %v610_v5  ;;  %v654_v21 = vmul.f32 %v3401_v7, %v4504_v12  ;;  %v4637_v22 = vmul.f32 %v3416_v2, %v4504_v12  ;;  %v669_v41 = vld [vmem:[#allocation2 + $0x74] sm:$0x1]  ;;  %v3421_v0 = vld [vmem:[%s4493_s30 + $0x138] sm:$0x1]  ;;  %v713_v7 = vld [vmem:[#allocation2 + $0x84] sm:$0x1] }
  0x2b   : > { %712 = vst [vmem:[#allocation2 + $0x80] sm:$0xf] %v3800_v54  ;;  %v4311_v8 = vld [vmem:[#allocation2 + $0x68] ss:$8 sps:$4 sm:$0xff]   ;;  %v3770_v10 = vpack.c.bf16 %v371_v62, %v371_v62  ;;  %v592_v26 = vmax.f32 %v590_v14, 0.0  ;;  %v676_v35 = vmul.f32 %v3405_v28, %v4504_v12  ;;  %v3789_v38 = vpack.c.bf16 %v570_v25, %v570_v25 }
  0x2c   : > { %3983 = vmatpush3.bf16.msra.mxu1 %v4301_v9  ;;  %v3768_v9 = vpack.c.bf16 %v347_v61, %v347_v61  ;;  %v548_v11 = vmax.f32 %v546_v63, 0.0  ;;  %3976 = vmatprep.mubr.bf16.mxu1 %v4311_v8  ;;  %v614_v31 = vmax.f32 %v612_v19, 0.0  ;;  %v656_v34 = vadd.f32 %v4509_v13, %v654_v21  ;;  %v4310_v54 = vld [vmem:[%s5210_s3 + $0x168] sm:$0xff]   ;;  %v4312_v59 = vld [vmem:[%s5210_s3 + $0x30] sm:$0xff]   ;;  %v4317_v21 = vld [vmem:[%s5210_s3 + $0x38] sm:$0xff]  }
  0x2d   : > { %3984 = vmatprep.subr.bf16.mxu1 %v4303_v20  ;;  %4079 = vmatpush3.bf16.msra.mxu0 %v4302_v15  ;;  %v3420_v15 = vld [vmem:[%s4493_s30 + $0x130] sm:$0xff]  ;;  %v4313_v17 = vld [vmem:[#allocation2 + $0xf8] ss:$8 sps:$4 sm:$0xff]   ;;  %382 = vst [vmem:[#allocation2 + $0x8] sm:$0xf] %v3770_v10  ;;  %v3791_v39 = vpack.c.bf16 %v592_v26, %v592_v26  ;;  %v678_v46 = vadd.f32 %v4509_v13, %v676_v35 }
  0x2e   : > { %4080 = vmatprep.subr.bf16.mxu0 %v4304_v42  ;;  %357 = vst [vmem:[#allocation2] sm:$0xf] %v3768_v9  ;;  %v3787_v24 = vpack.c.bf16 %v548_v11, %v548_v11  ;;  %v763_v29 = vmul.f32 %v3420_v15, %v4504_v12  ;;  %4072 = vmatprep.mubr.bf16.mxu0 %v4313_v17  ;;  %v658_v45 = vmax.f32 %v656_v34, 0.0  ;;  %v3449_v11 = vld [vmem:[%s4493_s30 + $0x1a8] sm:$0x1]  ;;  %v4314_v14 = vld [vmem:[%s5210_s3 + $0x170] sm:$0xff]  }
  0x2f   : > { %v3793_v43 = vpack.c.bf16 %v614_v31, %v614_v31  ;;  %v582_v49 = vsel %vm4649_vm2, %v3789_v38, %v581_v18  ;;  %v604_v50 = vsel %vm4649_vm2, %v3791_v39, %v603_v27  ;;  %v698_v51 = vmul.f32 %v3409_v36, %v4504_v12  ;;  %v3457_v26 = vld [vmem:[%s4493_s30 + $0x1c8] sm:$0x1]  ;;  %v757_v28 = vld [vmem:[#allocation2 + $0x94] sm:$0x1]  ;;  %v779_v38 = vld [vmem:[#allocation2 + $0x9c] sm:$0x1] }
  0x30   : > { %3985 = vmatpush3.bf16.msra.mxu1 %v4303_v20  ;;  %v634_v20 = vadd.f32 %v4509_v13, %v632_v6  ;;  %v560_v37 = vsel %vm4649_vm2, %v3787_v24, %v559_v3  ;;  %583 = vst [vmem:[#allocation2 + $0x54] sm:$0x1] %v582_v49  ;;  %605 = vst [vmem:[#allocation2 + $0x5c] sm:$0x1] %v604_v50  ;;  %v3797_v57 = vpack.c.bf16 %v658_v45, %v658_v45  ;;  %v3465_v39 = vld [vmem:[%s4493_s30 + $0x1e8] sm:$0x1] }
  0x31   : > { %3986 = vmatprep.subr.bf16.mxu1 %v4305_v47  ;;  %4081 = vmatpush3.bf16.msra.mxu0 %v4304_v42  ;;  %v3413_v42 = vld [vmem:[%s4493_s30 + $0x118] sm:$0x1]  ;;  %561 = vst [vmem:[#allocation2 + $0x4c] sm:$0x1] %v560_v37  ;;  %v626_v55 = vsel %vm4649_vm2, %v3793_v43, %v625_v32  ;;  %v680_v58 = vmax.f32 %v678_v46, 0.0  ;;  %v700_v61 = vadd.f32 %v4509_v13, %v698_v51 }
  0x32   : > { %4082 = vmatprep.subr.bf16.mxu0 %v4608_v53  ;;  %v636_v33 = vmax.f32 %v634_v20, 0.0  ;;  %v4315_v48 = vld [vmem:[#allocation2 + $0x78] ss:$8 sps:$4 sm:$0xff]   ;;  %v720_v52 = vmul.f32 %v3413_v42, %v4504_v12  ;;  %627 = vst [vmem:[#allocation2 + $0x64] sm:$0x1] %v626_v55  ;;  %v670_v2 = vsel %vm4649_vm2, %v3797_v57, %v669_v41  ;;  %v743_v4 = vadd.f32 %v4509_v13, %v4637_v22 }
  0x33   : > { %3977 = vmatmul.mubr.bf16.gmra.mrb[4].mxu1 %v4315_v48  ;;  %v3799_v3 = vpack.c.bf16 %v680_v58, %v680_v58  ;;  %v764_v5 = vmul.f32 %v3421_v0, %v4504_v12  ;;  %671 = vst [vmem:[#allocation2 + $0x74] sm:$0x1] %v670_v2  ;;  %v702_v6 = vmax.f32 %v700_v61, 0.0  ;;  %v765_v10 = vadd.f32 %v4509_v13, %v763_v29  ;;  %v3453_v20 = vld [vmem:[%s4493_s30 + $0x1b8] sm:$0x1] }
  0x34   : > { %3987 = vmatpush3.bf16.msra.mxu1 %v4305_v47  ;;  %v3795_v44 = vpack.c.bf16 %v636_v33, %v636_v33  ;;  %v3417_v47 = vld [vmem:[%s4493_s30 + $0x128] sm:$0x1]  ;;  %v722_v62 = vadd.f32 %v4509_v13, %v720_v52  ;;  %v745_v17 = vmax.f32 %v743_v4, 0.0  ;;  %v918_v19 = vmul.f32 %v3449_v11, %v4504_v12  ;;  %v3461_v33 = vld [vmem:[%s4493_s30 + $0x1d8] sm:$0x1] }
  0x35   : > { %3988 = vmatprep.subr.bf16.mxu1 %v4616_v60  ;;  %4083 = vmatpush3.bf16.msra.mxu0 %v4608_v53  ;;  %v4316_v53 = vld [vmem:[#allocation2 + $0x108] ss:$8 sps:$4 sm:$0xff]   ;;  %v742_v63 = vmul.f32 %v3417_v47, %v4504_v12  ;;  %v766_v18 = vadd.f32 %v4509_v13, %v764_v5  ;;  %v3801_v22 = vpack.c.bf16 %v702_v6, %v702_v6  ;;  %v767_v25 = vmax.f32 %v765_v10, 0.0  ;;  %v4318_v41 = vld [vmem:[%s5210_s3 + $0x178] sm:$0xff]   ;;  %v4726_v47 = vld [vmem:[%s5210_s3 + $0x80] sm:$0xff]  }
  0x36   : > { %4084 = vmatprep.subr.bf16.mxu0 %v4631_v16  ;;  %v648_v56 = vsel %vm4649_vm2, %v3795_v44, %v647_v40  ;;  %4073 = vmatmul.mubr.bf16.gmra.mrb[4].mxu0 %v4316_v53  ;;  %v4319_v1 = vld [vmem:[#allocation2] ss:$8 sps:$4 sm:$0xff]   ;;  %v724_v8 = vmax.f32 %v722_v62, 0.0  ;;  %v3804_v27 = vpack.c.bf16 %v745_v17, %v745_v17  ;;  %v920_v31 = vadd.f32 %v4509_v13, %v918_v19  ;;  %v3469_v40 = vld [vmem:[%s4493_s30 + $0x1f8] sm:$0x1] }
  0x37   : > { %649 = vst [vmem:[#allocation2 + $0x6c] sm:$0x1] %v648_v56  ;;  %v744_v9 = vadd.f32 %v4509_v13, %v742_v63  ;;  %3996 = vmatprep.mubr.bf16.mxu1 %v4319_v1  ;;  %v768_v29 = vmax.f32 %v766_v18, 0.0  ;;  %v940_v32 = vmul.f32 %v3453_v20, %v4504_v12  ;;  %v714_v34 = vsel %vm4649_vm2, %v3801_v22, %v713_v7  ;;  %v3473_v46 = vld [vmem:[%s4493_s30 + $0x208] sm:$0x1]  ;;  %v4748_v7 = vld [vmem:[%s5210_s3 + $0x180] sm:$0xff]  }
  0x38   : > { %3989 = vmatpush3.bf16.msra.mxu1 %v4616_v60  ;;  %v691_v60 = vld [vmem:[#allocation2 + $0x7c] sm:$0x1]  ;;  %v3806_v37 = vpack.c.bf16 %v767_v25, %v767_v25  ;;  %715 = vst [vmem:[#allocation2 + $0x84] sm:$0x1] %v714_v34  ;;  %756 = vst [vmem:[#allocation2 + $0x90] sm:$0xf] %v3804_v27  ;;  %v962_v45 = vmul.f32 %v3457_v26, %v4504_v12  ;;  %v984_v50 = vmul.f32 %v3461_v33, %v4504_v12 }
  0x39   : > { %3990 = vmatprep.subr.bf16.mxu1 %v4642_v23  ;;  %4085 = vmatpush3.bf16.msra.mxu0 %v4631_v16  ;;  %v692_v15 = vsel %vm4649_vm2, %v3799_v3, %v691_v60  ;;  %v735_v16 = vld [vmem:[#allocation2 + $0x8c] sm:$0x1]  ;;  %v746_v24 = vmax.f32 %v744_v9, 0.0  ;;  %v3807_v42 = vpack.c.bf16 %v768_v29, %v768_v29  ;;  %v922_v43 = vmax.f32 %v920_v31, 0.0  ;;  %v933_v49 = vld [vmem:[#allocation2 + $0xd4] sm:$0x1] }
  0x3a   : > { %4086 = vmatprep.subr.bf16.mxu0 %v4310_v54  ;;  %693 = vst [vmem:[#allocation2 + $0x7c] sm:$0x1] %v692_v15  ;;  %v942_v44 = vadd.f32 %v4509_v13, %v940_v32  ;;  %778 = vst [vmem:[#allocation2 + $0x98] sm:$0xf] %v3806_v37  ;;  %v1006_v51 = vmul.f32 %v3465_v39, %v4504_v12  ;;  %v1028_v52 = vmul.f32 %v3469_v40, %v4504_v12  ;;  %v955_v57 = vld [vmem:[#allocation2 + $0xdc] sm:$0x1] }
  0x3b   : > { %v3805_v36 = vpack.c.bf16 %v746_v24, %v746_v24  ;;  %v780_v53 = vsel %vm4649_vm2, %v3807_v42, %v779_v38  ;;  %v3821_v55 = vpack.c.bf16 %v922_v43, %v922_v43  ;;  %v964_v58 = vadd.f32 %v4509_v13, %v962_v45  ;;  %v3481_v0 = vld [vmem:[%s4493_s30 + $0x228] sm:$0x1]  ;;  %v999_v4 = vld [vmem:[#allocation2 + $0xec] sm:$0x1]  ;;  %v1021_v5 = vld [vmem:[#allocation2 + $0xf4] sm:$0x1] }
  0x3c   : > { %3991 = vmatpush3.bf16.msra.mxu1 %v4642_v23  ;;  %v3803_v23 = vpack.c.bf16 %v724_v8, %v724_v8  ;;  %v944_v56 = vmax.f32 %v942_v44, 0.0  ;;  %781 = vst [vmem:[#allocation2 + $0x9c] sm:$0x1] %v780_v53  ;;  %v986_v60 = vadd.f32 %v4509_v13, %v984_v50  ;;  %v1008_v61 = vadd.f32 %v4509_v13, %v1006_v51  ;;  %v1043_v17 = vld [vmem:[#allocation2 + $0xfc] sm:$0x1]  ;;  %v3352_v39 = vld [vmem:[%s4493_s30 + $0x20] sm:$0xff] }
  0x3d   : > { %3992 = vmatprep.subr.bf16.mxu1 %v4312_v59  ;;  %4087 = vmatpush3.bf16.msra.mxu0 %v4310_v54  ;;  %v758_v48 = vsel %vm4649_vm2, %v3805_v36, %v757_v28  ;;  %v3477_v54 = vld [vmem:[%s4493_s30 + $0x218] sm:$0x1]  ;;  %v1030_v62 = vadd.f32 %v4509_v13, %v1028_v52  ;;  %v1050_v63 = vmul.f32 %v3473_v46, %v4504_v12  ;;  %v966_v3 = vmax.f32 %v964_v58, 0.0  ;;  %v1065_v18 = vld [vmem:[#allocation2 + $0x104] sm:$0x1]  ;;  %v3356_v45 = vld [vmem:[%s4493_s30 + $0x30] sm:$0xff] }
  0x3e   : > { %v736_v35 = vsel %vm4649_vm2, %v3803_v23, %v735_v16  ;;  %4088 = vmatprep.subr.bf16.mxu0 %v4314_v14  ;;  %759 = vst [vmem:[#allocation2 + $0x94] sm:$0x1] %v758_v48  ;;  %v934_v1 = vsel %vm4649_vm2, %v3821_v55, %v933_v49  ;;  %v3823_v2 = vpack.c.bf16 %v944_v56, %v944_v56  ;;  %v988_v8 = vmax.f32 %v986_v60, 0.0  ;;  %v1087_v25 = vld [vmem:[#allocation2 + $0x10c] sm:$0x1]  ;;  %v3424_v52 = vld [vmem:[%s4493_s30 + $0x140] sm:$0xff] }
  0x3f   : > { %737 = vst [vmem:[#allocation2 + $0x8c] sm:$0x1] %v736_v35  ;;  %v1072_v6 = vmul.f32 %v3477_v54, %v4504_v12  ;;  %935 = vst [vmem:[#allocation2 + $0xd4] sm:$0x1] %v934_v1  ;;  %v1010_v9 = vmax.f32 %v1008_v61, 0.0  ;;  %v1032_v10 = vmax.f32 %v1030_v62, 0.0  ;;  %v1052_v11 = vadd.f32 %v4509_v13, %v1050_v63 }
  0x40   : > { %3993 = vmatpush3.bf16.msra.mxu1 %v4312_v59  ;;  %v977_v59 = vld [vmem:[#allocation2 + $0xe4] sm:$0x1]  ;;  %v956_v15 = vsel %vm4649_vm2, %v3823_v2, %v955_v57  ;;  %v3825_v16 = vpack.c.bf16 %v966_v3, %v966_v3  ;;  %v1094_v20 = vmul.f32 %v3481_v0, %v4504_v12  ;;  %v2107_v26 = vld [vmem:[#allocation2 + $0x90] sm:$0xf]  ;;  %v1109_v37 = vld [vmem:[#allocation2 + $0x114] sm:$0x1]  ;;  %v389_v2 = vmul.f32 %v3352_v39, %v4504_v12 }
  0x41   : > { %3994 = vmatprep.subr.bf16.mxu1 %v4317_v21  ;;  %4089 = vmatpush3.bf16.msra.mxu0 %v4314_v14  ;;  %v3485_v14 = vld [vmem:[%s4493_s30 + $0x238] sm:$0x1]  ;;  %v1074_v19 = vadd.f32 %v4509_v13, %v1072_v6  ;;  %957 = vst [vmem:[#allocation2 + $0xdc] sm:$0x1] %v956_v15  ;;  %v3829_v22 = vpack.c.bf16 %v1010_v9, %v1010_v9  ;;  %v1054_v24 = vmax.f32 %v1052_v11, 0.0  ;;  %v2124_v44 = vshrl.u32 %v2107_v26, 16 }
  0x42   : > { %4090 = vmatprep.subr.bf16.mxu0 %v4318_v41  ;;  %v3831_v23 = vpack.c.bf16 %v1032_v10, %v1032_v10  ;;  %v978_v27 = vsel %vm4649_vm2, %v3825_v16, %v977_v59  ;;  %v1096_v29 = vadd.f32 %v4509_v13, %v1094_v20  ;;  %v1116_v31 = vmul.f32 %v3485_v14, %v4504_v12  ;;  %v2109_v32 = vld [vmem:[#allocation2 + $0x98] sm:$0xf]  ;;  %v1131_v48 = vld [vmem:[#allocation2 + $0x11c] sm:$0x1]  ;;  %v3425_v54 = vld [vmem:[%s4493_s30 + $0x148] sm:$0x1] }
  0x43   : > { %v1076_v28 = vmax.f32 %v1074_v19, 0.0  ;;  %979 = vst [vmem:[#allocation2 + $0xe4] sm:$0x1] %v978_v27  ;;  %v1022_v34 = vsel %vm4649_vm2, %v3829_v22, %v1021_v5  ;;  %v3833_v36 = vpack.c.bf16 %v1054_v24, %v1054_v24  ;;  %v2110_v43 = vld [vmem:[#allocation2 + $0x9c] sm:$0x1]  ;;  %v2127_v49 = vshll.u32 %v2107_v26, 16 }
  0x44   : > { %3995 = vmatpush3.bf16.msra.mxu1 %v4317_v21  ;;  %v3827_v21 = vpack.c.bf16 %v988_v8, %v988_v8  ;;  %v1044_v35 = vsel %vm4649_vm2, %v3831_v23, %v1043_v17  ;;  %1023 = vst [vmem:[#allocation2 + $0xf4] sm:$0x1] %v1022_v34  ;;  %v1118_v42 = vadd.f32 %v4509_v13, %v1116_v31  ;;  %v2138_v51 = vshrl.u32 %v2109_v32, 16  ;;  %v3429_v62 = vld [vmem:[%s4493_s30 + $0x158] sm:$0x1]  ;;  %v3428_v8 = vld [vmem:[%s4493_s30 + $0x150] sm:$0xff] }
  0x45   : > { %4004 = vmatprep.subr.bf16.mxu1 %v4726_v47  ;;  %4091 = vmatpush3.bf16.msra.mxu0 %v4318_v41  ;;  %v2108_v38 = vld [vmem:[#allocation2 + $0x94] sm:$0x1]  ;;  %1045 = vst [vmem:[#allocation2 + $0xfc] sm:$0x1] %v1044_v35  ;;  %v3835_v40 = vpack.c.bf16 %v1076_v28, %v1076_v28  ;;  %v1098_v41 = vmax.f32 %v1096_v29, 0.0  ;;  %v1066_v46 = vsel %vm4649_vm2, %v3833_v36, %v1065_v18  ;;  %v2126_v57 = vrot.slane %v2124_v44, 4 }
  0x46   : > { %4100 = vmatprep.subr.bf16.mxu0 %v4748_v7  ;;  %v1000_v33 = vsel %vm4649_vm2, %v3827_v21, %v999_v4  ;;  %v2133_v50 = vshll.u32 %v2108_v38, 16  ;;  %1067 = vst [vmem:[#allocation2 + $0x104] sm:$0x1] %v1066_v46  ;;  %v1120_v56 = vmax.f32 %v1118_v42, 0.0  ;;  %v2129_v58 = vrot.slane %v2127_v49, 5  ;;  %v3360_v24 = vld [vmem:[%s4493_s30 + $0x40] sm:$0xff] }
  0x47   : > { %1001 = vst [vmem:[#allocation2 + $0xec] sm:$0x1] %v1000_v33  ;;  %v1088_v53 = vsel %vm4649_vm2, %v3835_v40, %v1087_v25  ;;  %v3837_v55 = vpack.c.bf16 %v1098_v41, %v1098_v41  ;;  %v2140_v60 = vrot.slane %v2138_v51, 4  ;;  %v2141_v61 = vshll.u32 %v2109_v32, 16  ;;  %v4805_v32 = vld [vmem:[%s5209_s2] ss:$0 sm:$0xff] }
  0x48   : > { %1089 = vst [vmem:[#allocation2 + $0x10c] sm:$0x1] %v1088_v53  ;;  %v2135_v59 = vrot.slane %v2133_v50, 5  ;;  %v3839_v0 = vpack.c.bf16 %v1120_v56, %v1120_v56  ;;  %v2147_v1 = vshll.u32 %v2110_v43, 16  ;;  %v2130_v3 = vor.u32 %v2129_v58, %v2126_v57  ;;  %v3364_v33 = vld [vmem:[%s4493_s30 + $0x50] sm:$0xff]  ;;  %v3432_v34 = vld [vmem:[%s4493_s30 + $0x160] sm:$0xff] }
  0x49   : > { %v1110_v63 = vsel %vm4649_vm2, %v3837_v55, %v1109_v37  ;;  %v2143_v4 = vrot.slane %v2141_v61, 5  ;;  %v411_v5 = vmul.f32 %v3356_v45, %v4504_v12  ;;  %v785_v6 = vmul.f32 %v3424_v52, %v4504_v12  ;;  %v801_v38 = vld [vmem:[#allocation2 + $0xa4] sm:$0x1]  ;;  %v4816_v39 = vld [vmem:[%s5208_s1] ss:$0 sm:$0xff]  ;;  %v3436_v42 = vld [vmem:[%s4493_s30 + $0x170] sm:$0xff] }
  0x4a   : > { %1111 = vst [vmem:[#allocation2 + $0x114] sm:$0x1] %v1110_v63  ;;  %v1132_v9 = vsel %vm4649_vm2, %v3839_v0, %v1131_v48  ;;  %v2149_v11 = vrot.slane %v2147_v1, 5  ;;  %v391_v14 = vadd.f32 %v4509_v13, %v389_v2  ;;  %v786_v15 = vmul.f32 %v3425_v54, %v4504_v12  ;;  %v3433_v41 = vld [vmem:[%s4493_s30 + $0x168] sm:$0x1]  ;;  %v3368_v58 = vld [vmem:[%s4493_s30 + $0x60] sm:$0xff] }
  0x4b   : > { %1133 = vst [vmem:[#allocation2 + $0x11c] sm:$0x1] %v1132_v9  ;;  %v2131_v16 = vrot.slane %v2130_v3, 4  ;;  %v2144_v17 = vor.u32 %v2143_v4, %v2140_v60  ;;  %v413_v18 = vadd.f32 %v4509_v13, %v411_v5  ;;  %v787_v19 = vadd.f32 %v4509_v13, %v785_v6  ;;  %v823_v48 = vld [vmem:[#allocation2 + $0xac] sm:$0x1]  ;;  %v3372_v63 = vld [vmem:[%s4493_s30 + $0x70] sm:$0xff] }
  0x4c   : > { %v393_v20 = vmax.f32 %v391_v14, 0.0  ;;  %v788_v21 = vadd.f32 %v4509_v13, %v786_v15  ;;  %v807_v22 = vmul.f32 %v3428_v8, %v4504_v12  ;;  %v808_v23 = vmul.f32 %v3429_v62, %v4504_v12  ;;  %v3437_v54 = vld [vmem:[%s4493_s30 + $0x178] sm:$0x1]  ;;  %v845_v1 = vld [vmem:[#allocation2 + $0xb4] sm:$0x1]  ;;  %v3440_v5 = vld [vmem:[%s4493_s30 + $0x180] sm:$0xff] }
  0x4d   : > { %v2136_v25 = vsel %vm4788_vm5, %v2131_v16, %v2135_v59  ;;  %v2145_v26 = vrot.slane %v2144_v17, 4  ;;  %v415_v27 = vmax.f32 %v413_v18, 0.0  ;;  %v789_v28 = vmax.f32 %v787_v19, 0.0  ;;  %v3441_v6 = vld [vmem:[%s4493_s30 + $0x188] sm:$0x1]  ;;  %v3444_v15 = vld [vmem:[%s4493_s30 + $0x190] sm:$0xff] }
  0x4e   : > { %v3772_v29 = vpack.c.bf16 %v393_v20, %v393_v20  ;;  %v790_v31 = vmax.f32 %v788_v21, 0.0  ;;  %v809_v13 = vadd.f32 %v4805_v32, %v807_v22  ;;  %v810_v12 = vadd.f32 %v4805_v32, %v808_v23  ;;  %v4323_v20 = vld [vmem:[%s5210_s3 + $0x88] sm:$0xff]  }
  0x4f   : > { %v2150_v35 = vsel %vm4788_vm5, %v2145_v26, %v2149_v11  ;;  %v3774_v36 = vpack.c.bf16 %v415_v27, %v415_v27  ;;  %v3808_v37 = vpack.c.bf16 %v789_v28, %v789_v28  ;;  %v433_v40 = vmul.f32 %v4816_v39, %v3360_v24 }
  0x50   : > { %v3628_v43 = vcombine.low %v2136_v25, %v2150_v35  ;;  %404 = vst [vmem:[#allocation2 + $0x10] sm:$0xf] %v3772_v29  ;;  %v3809_v44 = vpack.c.bf16 %v790_v31, %v790_v31  ;;  %v811_v45 = vmax.f32 %v809_v13, 0.0  ;;  %v812_v46 = vmax.f32 %v810_v12, 0.0 }
  0x51   : > { %426 = vst [vmem:[#allocation2 + $0x18] sm:$0xf] %v3774_v36  ;;  %800 = vst [vmem:[#allocation2 + $0xa0] sm:$0xf] %v3808_v37  ;;  %v435_v49 = vadd.f32 %v4805_v32, %v433_v40  ;;  %v455_v50 = vmul.f32 %v4816_v39, %v3364_v33  ;;  %v829_v51 = vmul.f32 %v4816_v39, %v3432_v34  ;;  %v867_v36 = vld [vmem:[#allocation2 + $0xbc] sm:$0x1] }
  0x52   : > { %v830_v52 = vmul.f32 %v4816_v39, %v3433_v41  ;;  %4092 = vmatprep.mubr.bf16.mxu0 %v3628_v43  ;;  %v802_v53 = vsel %vm4649_vm2, %v3809_v44, %v801_v38  ;;  %v3810_v55 = vpack.c.bf16 %v811_v45, %v811_v45  ;;  %v3811_v56 = vpack.c.bf16 %v812_v46, %v812_v46  ;;  %v4325_v46 = vld [vmem:[%s5210_s3 + $0x90] sm:$0xff]  }
  0x53   : > { %v851_v57 = vmul.f32 %v4816_v39, %v3436_v42  ;;  %803 = vst [vmem:[#allocation2 + $0xa4] sm:$0x1] %v802_v53  ;;  %v437_v59 = vmax.f32 %v435_v49, 0.0  ;;  %v457_v60 = vadd.f32 %v4805_v32, %v455_v50  ;;  %v831_v61 = vadd.f32 %v4805_v32, %v829_v51  ;;  %v3445_v53 = vld [vmem:[%s4493_s30 + $0x198] sm:$0x1] }
  0x54   : > { %v832_v62 = vadd.f32 %v4805_v32, %v830_v52  ;;  %822 = vst [vmem:[#allocation2 + $0xa8] sm:$0xf] %v3810_v55  ;;  %v824_v0 = vsel %vm4649_vm2, %v3811_v56, %v823_v48  ;;  %v852_v2 = vmul.f32 %v4816_v39, %v3437_v54  ;;  %v477_v4 = vmul.f32 %v4816_v39, %v3368_v58  ;;  %v330_v58 = vld [vmem:[%s4493_s30 + $0x8] sm:$0x1] }
  0x55   : > { %v853_v3 = vadd.f32 %v4805_v32, %v851_v57  ;;  %825 = vst [vmem:[#allocation2 + $0xac] sm:$0x1] %v824_v0  ;;  %v3776_v8 = vpack.c.bf16 %v437_v59, %v437_v59  ;;  %v459_v9 = vmax.f32 %v457_v60, 0.0  ;;  %v833_v11 = vmax.f32 %v831_v61, 0.0  ;;  %v4327_v61 = vld [vmem:[%s5210_s3 + $0x98] sm:$0xff]  }
  0x56   : > { %v834_v14 = vmax.f32 %v832_v62, 0.0  ;;  %v854_v16 = vadd.f32 %v4805_v32, %v852_v2  ;;  %v479_v18 = vadd.f32 %v4805_v32, %v477_v4  ;;  %v499_v19 = vmul.f32 %v4816_v39, %v3372_v63  ;;  %v889_v0 = vld [vmem:[#allocation2 + $0xc4] sm:$0x1] }
  0x57   : > { %v855_v17 = vmax.f32 %v853_v3, 0.0  ;;  %448 = vst [vmem:[#allocation2 + $0x20] sm:$0xf] %v3776_v8  ;;  %v3778_v21 = vpack.c.bf16 %v459_v9, %v459_v9  ;;  %v3812_v22 = vpack.c.bf16 %v833_v11, %v833_v11  ;;  %v873_v24 = vmul.f32 %v4816_v39, %v3440_v5 }
  0x58   : > { %v3813_v23 = vpack.c.bf16 %v834_v14, %v834_v14  ;;  %v4322_v25 = vld [vmem:[#allocation2 + $0x10] ss:$8 sps:$4 sm:$0xff]   ;;  %v2111_v26 = vld [vmem:[#allocation2 + $0xa0] sm:$0xf]  ;;  %v501_v28 = vadd.f32 %v4805_v32, %v499_v19  ;;  %v874_v29 = vmul.f32 %v4816_v39, %v3441_v6  ;;  %v895_v31 = vmul.f32 %v4816_v39, %v3444_v15 }
  0x59   : > { %v3814_v27 = vpack.c.bf16 %v855_v17, %v855_v17  ;;  %v2152_v13 = vshrl.u32 %v2111_v26, 16  ;;  %v2155_v12 = vshll.u32 %v2111_v26, 16  ;;  %470 = vst [vmem:[#allocation2 + $0x28] sm:$0xf] %v3778_v21  ;;  %844 = vst [vmem:[#allocation2 + $0xb0] sm:$0xf] %v3812_v22  ;;  %3997 = vmatmul.mubr.bf16.vlgmr.msra.gmra.mrb[0].mxu1 %v4322_v25  ;;  %v875_v40 = vadd.f32 %v4805_v32, %v873_v24 }
  0x5a   : > { %v846_v33 = vsel %vm4649_vm2, %v3813_v23, %v845_v1  ;;  %v856_v34 = vmax.f32 %v854_v16, 0.0  ;;  %v2112_v35 = vld [vmem:[#allocation2 + $0xa4] sm:$0x1]  ;;  %v481_v37 = vmax.f32 %v479_v18, 0.0  ;;  %v503_v38 = vmax.f32 %v501_v28, 0.0  ;;  %4005 = vmatpush3.bf16.msra.mxu1 %v4726_v47  ;;  %v4877_v26 = vld [vmem:[%s5210_s3 + $0x188] sm:$0xff]  }
  0x5b   : > { %847 = vst [vmem:[#allocation2 + $0xb4] sm:$0x1] %v846_v33  ;;  %866 = vst [vmem:[#allocation2 + $0xb8] sm:$0xf] %v3814_v27  ;;  %v876_v41 = vadd.f32 %v4805_v32, %v874_v29  ;;  %v2113_v42 = vld [vmem:[#allocation2 + $0xa8] sm:$0xf]  ;;  %4006 = vmatprep.subr.bf16.mxu1 %v4323_v20  ;;  %v896_v3 = vmul.f32 %v4816_v39, %v3445_v53  ;;  %v897_v4 = vadd.f32 %v4805_v32, %v895_v31 }
  0x5c   : > { %v2154_v43 = vrot.slane %v2152_v13, 4  ;;  %v2157_v44 = vrot.slane %v2155_v12, 5  ;;  %v2161_v45 = vshll.u32 %v2112_v35, 16  ;;  %v3815_v48 = vpack.c.bf16 %v856_v34, %v856_v34  ;;  %v2114_v49 = vld [vmem:[#allocation2 + $0xac] sm:$0x1]  ;;  %v4329_v33 = vld [vmem:[%s5210_s3 + $0xa0] sm:$0xff]  }
  0x5d   : > { %v2166_v50 = vshrl.u32 %v2113_v42, 16  ;;  %v2169_v51 = vshll.u32 %v2113_v42, 16  ;;  %v3780_v52 = vpack.c.bf16 %v481_v37, %v481_v37  ;;  %v3782_v54 = vpack.c.bf16 %v503_v38, %v503_v38  ;;  %v3349_v21 = vld [vmem:[%s4493_s30 + $0x18] sm:$0x1]  ;;  %v1480_v13 = vld [vmem:[#allocation2] sm:$0xf] }
  0x5e   : > { %v2158_v55 = vor.u32 %v2157_v44, %v2154_v43  ;;  %v2163_v56 = vrot.slane %v2161_v45, 5  ;;  %v2175_v47 = vshll.u32 %v2114_v49, 16  ;;  %v868_v57 = vsel %vm4649_vm2, %v3815_v48, %v867_v36  ;;  %4007 = vmatpush3.bf16.msra.mxu1 %v4323_v20  ;;  %v4326_v53 = vld [vmem:[%s5210_s3 + $0x190] sm:$0xff]  }
  0x5f   : > { %v2168_v59 = vrot.slane %v2166_v50, 4  ;;  %v2171_v60 = vrot.slane %v2169_v51, 5  ;;  %869 = vst [vmem:[#allocation2 + $0xbc] sm:$0x1] %v868_v57  ;;  %492 = vst [vmem:[#allocation2 + $0x30] sm:$0xf] %v3780_v52  ;;  %4008 = vmatprep.subr.bf16.mxu1 %v4325_v46  ;;  %v338_v14 = vmul.f32 %v4816_v39, %v330_v58  ;;  %v898_v20 = vadd.f32 %v4805_v32, %v896_v3 }
  0x60   : > { %514 = vst [vmem:[#allocation2 + $0x38] sm:$0xf] %v3782_v54  ;;  %v877_v62 = vmax.f32 %v875_v40, 0.0  ;;  %v878_v63 = vmax.f32 %v876_v41, 0.0  ;;  %v2159_v1 = vrot.slane %v2158_v55, 4  ;;  %v2177_v2 = vrot.slane %v2175_v47, 5 }
  0x61   : > { %v2172_v5 = vor.u32 %v2171_v60, %v2168_v59  ;;  %v4333_v6 = vld [vmem:[#allocation2 + $0x20] ss:$8 sps:$4 sm:$0xff]   ;;  %v2115_v8 = vld [vmem:[#allocation2 + $0xb0] sm:$0xf]  ;;  %v899_v31 = vmax.f32 %v897_v4, 0.0  ;;  %v346_v42 = vadd.f32 %v4805_v32, %v338_v14  ;;  %v368_v48 = vmul.f32 %v4816_v39, %v3349_v21  ;;  %v4328_v21 = vld [vmem:[%s5210_s3 + $0x198] sm:$0xff]  }
  0x62   : > { %v3816_v9 = vpack.c.bf16 %v877_v62, %v877_v62  ;;  %v3817_v11 = vpack.c.bf16 %v878_v63, %v878_v63  ;;  %v2164_v15 = vsel %vm4788_vm5, %v2159_v1, %v2163_v56  ;;  %v2116_v16 = vld [vmem:[#allocation2 + $0xb4] sm:$0x1]  ;;  %v2117_v17 = vld [vmem:[#allocation2 + $0xb8] sm:$0xf]  ;;  %v2180_v18 = vshrl.u32 %v2115_v8, 16  ;;  %4000 = vmatprep.mubr.bf16.mxu1 %v4333_v6  ;;  %4009 = vmatpush3.bf16.msra.mxu1 %v4325_v46  ;;  %v4331_v55 = vld [vmem:[%s5210_s3 + $0xa8] sm:$0xff]  }
  0x63   : > { %v2183_v19 = vshll.u32 %v2115_v8, 16  ;;  %v2173_v22 = vrot.slane %v2172_v5, 4  ;;  %v2189_v23 = vshll.u32 %v2116_v16, 16  ;;  %v2194_v24 = vshrl.u32 %v2117_v17, 16  ;;  %4010 = vmatprep.subr.bf16.mxu1 %v4327_v61  ;;  %v911_v50 = vld [vmem:[#allocation2 + $0xcc] sm:$0x1] }
  0x64   : > { %v2197_v25 = vshll.u32 %v2117_v17, 16  ;;  %888 = vst [vmem:[#allocation2 + $0xc0] sm:$0xf] %v3816_v9  ;;  %v2182_v27 = vrot.slane %v2180_v18, 4  ;;  %v890_v29 = vsel %vm4649_vm2, %v3817_v11, %v889_v0  ;;  %v3818_v41 = vpack.c.bf16 %v899_v31, %v899_v31  ;;  %v361_v58 = vld [vmem:[#allocation2 + $0x4] sm:$0x1] }
  0x65   : > { %v2185_v28 = vrot.slane %v2183_v19, 5  ;;  %v2178_v12 = vsel %vm4788_vm5, %v2173_v22, %v2177_v2  ;;  %v2191_v34 = vrot.slane %v2189_v23, 5  ;;  %v2196_v35 = vrot.slane %v2194_v24, 4  ;;  %891 = vst [vmem:[#allocation2 + $0xc4] sm:$0x1] %v890_v29  ;;  %v4334_v9 = vld [vmem:[%s5210_s3 + $0xb0] sm:$0xff]  }
  0x66   : > { %v2199_v36 = vrot.slane %v2197_v25, 5  ;;  %v3629_v37 = vcombine.low %v2164_v15, %v2178_v12  ;;  %v2118_v38 = vld [vmem:[#allocation2 + $0xbc] sm:$0x1]  ;;  %v900_v46 = vmax.f32 %v898_v20, 0.0  ;;  %4011 = vmatpush3.bf16.msra.mxu1 %v4327_v61  ;;  %910 = vst [vmem:[#allocation2 + $0xc8] sm:$0xf] %v3818_v41  ;;  %v370_v59 = vadd.f32 %v4805_v32, %v368_v48 }
  0x67   : > { %v2186_v40 = vor.u32 %v2185_v28, %v2182_v27  ;;  %v2203_v44 = vshll.u32 %v2118_v38, 16  ;;  %v4336_v45 = vld [vmem:[#allocation2 + $0x30] ss:$8 sps:$4 sm:$0xff]   ;;  %v348_v51 = vmax.f32 %v346_v42, 0.0  ;;  %v1500_v52 = vshrl.u32 %v1480_v13, 16  ;;  %4012 = vmatprep.subr.bf16.mxu1 %v4329_v33  ;;  %v4330_v42 = vld [vmem:[%s5210_s3 + $0x1a0] sm:$0xff]  }
  0x68   : > { %v2200_v43 = vor.u32 %v2199_v36, %v2196_v35  ;;  %4093 = vmatmul.mubr.bf16.vlgmr.msra.gmra.mrb[0].mxu0 %v3629_v37  ;;  %v1503_v54 = vshll.u32 %v1480_v13, 16  ;;  %v3819_v57 = vpack.c.bf16 %v900_v46, %v900_v46  ;;  %4001 = vmatmul.mubr.bf16.gmra.mrb[4].mxu1 %v4336_v45  ;;  %v1482_v62 = vld [vmem:[#allocation2 + $0x8] sm:$0xf]  ;;  %v383_v5 = vld [vmem:[#allocation2 + $0xc] sm:$0x1]  ;;  %v372_v16 = vmax.f32 %v370_v59, 0.0 }
  0x69   : > { %v2187_v49 = vrot.slane %v2186_v40, 4  ;;  %4101 = vmatpush3.bf16.msra.mxu0 %v4748_v7  ;;  %v2205_v47 = vrot.slane %v2203_v44, 5  ;;  %v3769_v61 = vpack.c.bf16 %v348_v51, %v348_v51  ;;  %v1502_v63 = vrot.slane %v1500_v52, 4  ;;  %v3353_v6 = vld [vmem:[%s4493_s30 + $0x28] sm:$0x1]  ;;  %v4337_v38 = vld [vmem:[%s5210_s3 + $0xb8] sm:$0xff]  }
  0x6a   : > { %v2201_v56 = vrot.slane %v2200_v43, 4  ;;  %4102 = vmatprep.subr.bf16.mxu0 %v4877_v26  ;;  %v1505_v0 = vrot.slane %v1503_v54, 5  ;;  %v912_v2 = vsel %vm4649_vm2, %v3819_v57, %v911_v50  ;;  %v3357_v8 = vld [vmem:[%s4493_s30 + $0x38] sm:$0x1]  ;;  %4013 = vmatpush3.bf16.msra.mxu1 %v4329_v33  ;;  %v1514_v20 = vshrl.u32 %v1482_v62, 16  ;;  %v4332_v54 = vld [vmem:[%s5210_s3 + $0x1a8] sm:$0xff]  }
  0x6b   : > { %v2192_v7 = vsel %vm4788_vm5, %v2187_v49, %v2191_v34  ;;  %v2119_v60 = vld [vmem:[#allocation2 + $0xc0] sm:$0xf]  ;;  %913 = vst [vmem:[#allocation2 + $0xcc] sm:$0x1] %v912_v2  ;;  %v362_v15 = vsel %vm4649_vm2, %v3769_v61, %v361_v58  ;;  %4014 = vmatprep.subr.bf16.mxu1 %v4331_v55  ;;  %v3771_v22 = vpack.c.bf16 %v372_v16, %v372_v16  ;;  %v1517_v24 = vshll.u32 %v1482_v62, 16 }
  0x6c   : > { %v2206_v1 = vsel %vm4788_vm5, %v2201_v56, %v2205_v47  ;;  %v2208_v3 = vshrl.u32 %v2119_v60, 16  ;;  %v2211_v4 = vshll.u32 %v2119_v60, 16  ;;  %v2120_v14 = vld [vmem:[#allocation2 + $0xc4] sm:$0x1]  ;;  %363 = vst [vmem:[#allocation2 + $0x4] sm:$0x1] %v362_v15  ;;  %v1506_v23 = vor.u32 %v1505_v0, %v1502_v63 }
  0x6d   : > { %v3630_v11 = vcombine.low %v2192_v7, %v2206_v1  ;;  %4103 = vmatpush3.bf16.msra.mxu0 %v4877_v26  ;;  %v2217_v19 = vshll.u32 %v2120_v14, 16  ;;  %v390_v25 = vmul.f32 %v4816_v39, %v3353_v6  ;;  %v1484_v27 = vld [vmem:[#allocation2 + $0x10] sm:$0xf]  ;;  %v2121_v28 = vld [vmem:[#allocation2 + $0xc8] sm:$0xf]  ;;  %v1516_v31 = vrot.slane %v1514_v20, 4 }
  0x6e   : > { %v2210_v17 = vrot.slane %v2208_v3, 4  ;;  %v2213_v18 = vrot.slane %v2211_v4, 5  ;;  %4104 = vmatprep.subr.bf16.mxu0 %v4326_v53  ;;  %v412_v13 = vmul.f32 %v4816_v39, %v3357_v8  ;;  %4015 = vmatpush3.bf16.msra.mxu1 %v4331_v55  ;;  %v2222_v12 = vshrl.u32 %v2121_v28, 16  ;;  %v1486_v36 = vld [vmem:[#allocation2 + $0x18] sm:$0xf]  ;;  %v4934_v58 = vld [vmem:[%s5210_s3 + $0xc0] sm:$0xff]  }
  0x6f   : > { %4096 = vmatprep.mubr.bf16.mxu0 %v3630_v11  ;;  %v2219_v29 = vrot.slane %v2217_v19, 5  ;;  %v2225_v33 = vshll.u32 %v2121_v28, 16  ;;  %v384_v34 = vsel %vm4649_vm2, %v3771_v22, %v383_v5  ;;  %v1519_v35 = vrot.slane %v1517_v24, 5  ;;  %4016 = vmatprep.subr.bf16.mxu1 %v4334_v9  ;;  %v405_v45 = vld [vmem:[#allocation2 + $0x14] sm:$0x1] }
  0x70   : > { %v2214_v26 = vor.u32 %v2213_v18, %v2210_v17  ;;  %385 = vst [vmem:[#allocation2 + $0xc] sm:$0x1] %v384_v34  ;;  %v392_v40 = vadd.f32 %v4805_v32, %v390_v25  ;;  %v414_v41 = vadd.f32 %v4805_v32, %v412_v13  ;;  %v2224_v43 = vrot.slane %v2222_v12, 4  ;;  %v427_v59 = vld [vmem:[#allocation2 + $0x1c] sm:$0x1] }
  0x71   : > { %4105 = vmatpush3.bf16.msra.mxu0 %v4326_v53  ;;  %v2227_v44 = vrot.slane %v2225_v33, 5  ;;  %v1528_v46 = vshrl.u32 %v1484_v27, 16  ;;  %v1507_v49 = vrot.slane %v1506_v23, 4  ;;  %v1531_v52 = vshll.u32 %v1484_v27, 16  ;;  %v4340_v1 = vld [vmem:[#allocation2 + $0x8] ss:$8 sps:$4 sm:$0xff]  }
  0x72   : > { %v2215_v37 = vrot.slane %v2214_v26, 4  ;;  %4106 = vmatprep.subr.bf16.mxu0 %v4328_v21  ;;  %v2122_v48 = vld [vmem:[#allocation2 + $0xcc] sm:$0x1]  ;;  %v394_v50 = vmax.f32 %v392_v40, 0.0  ;;  %v416_v51 = vmax.f32 %v414_v41, 0.0  ;;  %4017 = vmatpush3.bf16.msra.mxu1 %v4334_v9  ;;  %v1520_v57 = vor.u32 %v1519_v35, %v1516_v31  ;;  %v4335_v9 = vld [vmem:[%s5210_s3 + $0x1b0] sm:$0xff]  }
  0x73   : > { %v2228_v55 = vor.u32 %v2227_v44, %v2224_v43  ;;  %v2231_v56 = vshll.u32 %v2122_v48, 16  ;;  %v1481_v47 = vld [vmem:[#allocation2 + $0x4] sm:$0x1]  ;;  %4018 = vmatprep.subr.bf16.mxu1 %v4337_v38  ;;  %v1542_v62 = vshrl.u32 %v1486_v36, 16  ;;  %v1530_v2 = vrot.slane %v1528_v46, 4  ;;  %v4338_v25 = vld [vmem:[%s5210_s3 + $0x1b8] sm:$0xff]  }
  0x74   : > { %v2220_v53 = vsel %vm4788_vm5, %v2215_v37, %v2219_v29  ;;  %v1509_v7 = vshll.u32 %v1481_v47, 16  ;;  %v3773_v60 = vpack.c.bf16 %v394_v50, %v394_v50  ;;  %v3775_v61 = vpack.c.bf16 %v416_v51, %v416_v51  ;;  %v3361_v24 = vld [vmem:[%s4493_s30 + $0x48] sm:$0x1]  ;;  %v3365_v26 = vld [vmem:[%s4493_s30 + $0x58] sm:$0x1]  ;;  %v4341_v48 = vld [vmem:[%s5210_s3 + $0x1c0] sm:$0xff]  }
  0x75   : > { %4107 = vmatpush3.bf16.msra.mxu0 %v4328_v21  ;;  %v2229_v63 = vrot.slane %v2228_v55, 4  ;;  %v2233_v0 = vrot.slane %v2231_v56, 5  ;;  %v1545_v3 = vshll.u32 %v1486_v36, 16  ;;  %v1533_v8 = vrot.slane %v1531_v52, 5  ;;  %v1488_v13 = vld [vmem:[#allocation2 + $0x20] sm:$0xf] }
  0x76   : > { %4108 = vmatprep.subr.bf16.mxu0 %v4330_v42  ;;  %v1511_v4 = vrot.slane %v1509_v7, 5  ;;  %v406_v5 = vsel %vm4649_vm2, %v3773_v60, %v405_v45  ;;  %v428_v6 = vsel %vm4649_vm2, %v3775_v61, %v427_v59  ;;  %4019 = vmatpush3.bf16.msra.mxu1 %v4337_v38  ;;  %v1544_v15 = vrot.slane %v1542_v62, 4  ;;  %v1490_v12 = vld [vmem:[#allocation2 + $0x28] sm:$0xf]  ;;  %v449_v44 = vld [vmem:[#allocation2 + $0x24] sm:$0x1] }
  0x77   : > { %v2234_v11 = vsel %vm4788_vm5, %v2229_v63, %v2233_v0  ;;  %v1483_v14 = vld [vmem:[#allocation2 + $0xc] sm:$0x1]  ;;  %407 = vst [vmem:[#allocation2 + $0x14] sm:$0x1] %v406_v5  ;;  %429 = vst [vmem:[#allocation2 + $0x1c] sm:$0x1] %v428_v6  ;;  %4028 = vmatprep.subr.bf16.mxu1 %v4934_v58  ;;  %v1534_v22 = vor.u32 %v1533_v8, %v1530_v2  ;;  %v434_v28 = vmul.f32 %v4816_v39, %v3361_v24 }
  0x78   : > { %v1547_v16 = vrot.slane %v1545_v3, 5  ;;  %v3631_v17 = vcombine.low %v2220_v53, %v2234_v11  ;;  %v1521_v18 = vrot.slane %v1520_v57, 4  ;;  %v1523_v19 = vshll.u32 %v1483_v14, 16  ;;  %v4342_v51 = vld [vmem:[#allocation2 + $0x18] ss:$8 sps:$4 sm:$0xff]   ;;  %v4343_v53 = vld [vmem:[%s5210_s3 + $0xc8] sm:$0xff]  }
  0x79   : > { %4109 = vmatpush3.bf16.msra.mxu0 %v4330_v42  ;;  %v1512_v20 = vsel %vm4788_vm5, %v1507_v49, %v1511_v4  ;;  %v456_v31 = vmul.f32 %v4816_v39, %v3365_v26  ;;  %v1535_v35 = vrot.slane %v1534_v22, 4  ;;  %v436_v36 = vadd.f32 %v4805_v32, %v434_v28  ;;  %v471_v56 = vld [vmem:[#allocation2 + $0x2c] sm:$0x1]  ;;  %v3373_v7 = vld [vmem:[%s4493_s30 + $0x78] sm:$0x1]  ;;  %v3376_v3 = vld [vmem:[%s4493_s30 + $0x80] sm:$0xff] }
  0x7a   : > { %4110 = vmatprep.subr.bf16.mxu0 %v4332_v54  ;;  %4097 = vmatmul.mubr.bf16.gmra.mrb[4].mxu0 %v3631_v17  ;;  %v1525_v21 = vrot.slane %v1523_v19, 5  ;;  %v1548_v23 = vor.u32 %v1547_v16, %v1544_v15  ;;  %v1556_v37 = vshrl.u32 %v1488_v13, 16  ;;  %v1559_v45 = vshll.u32 %v1488_v13, 16  ;;  %v4344_v62 = vld [vmem:[%s5210_s3 + $0x1c8] sm:$0xff]   ;;  %v1492_v2 = vld [vmem:[#allocation2 + $0x30] sm:$0xf] }
  0x7b   : > { %4116 = vmatprep.mubr.bf16.mxu0 %v4340_v1  ;;  %v458_v42 = vadd.f32 %v4805_v32, %v456_v31  ;;  %v438_v43 = vmax.f32 %v436_v36, 0.0  ;;  %v1570_v46 = vshrl.u32 %v1490_v12, 16  ;;  %v1573_v57 = vshll.u32 %v1490_v12, 16  ;;  %v4353_v0 = vld [vmem:[#allocation2 + $0x28] ss:$8 sps:$4 sm:$0xff]   ;;  %v4347_v13 = vld [vmem:[%s5210_s3 + $0xd8] sm:$0xff]  }
  0x7c   : > { %v1526_v27 = vsel %vm4788_vm5, %v1521_v18, %v1525_v21  ;;  %v1549_v40 = vrot.slane %v1548_v23, 4  ;;  %v4966_v47 = vrot.slane %v1556_v37, 4  ;;  %v500_v1 = vmul.f32 %v4816_v39, %v3373_v7  ;;  %v1494_v15 = vld [vmem:[#allocation2 + $0x38] sm:$0xf]  ;;  %v4345_v16 = vld [vmem:[%s5210_s3 + $0xd0] sm:$0xff]  }
  0x7d   : > { %4111 = vmatpush3.bf16.msra.mxu0 %v4332_v54  ;;  %v3544_v29 = vcombine.low %v1512_v20, %v1526_v27  ;;  %v460_v52 = vmax.f32 %v458_v42, 0.0  ;;  %v3369_v54 = vld [vmem:[%s4493_s30 + $0x68] sm:$0x1]  ;;  %v3777_v55 = vpack.c.bf16 %v438_v43, %v438_v43  ;;  %v1561_v6 = vrot.slane %v1559_v45, 5  ;;  %v493_v18 = vld [vmem:[#allocation2 + $0x34] sm:$0x1] }
  0x7e   : > { %4112 = vmatprep.subr.bf16.mxu0 %v4335_v9  ;;  %v1485_v33 = vld [vmem:[#allocation2 + $0x14] sm:$0x1]  ;;  %v1487_v34 = vld [vmem:[#allocation2 + $0x1c] sm:$0x1]  ;;  %v478_v59 = vmul.f32 %v4816_v39, %v3369_v54  ;;  %v1572_v8 = vrot.slane %v1570_v46, 4  ;;  %v502_v14 = vadd.f32 %v4805_v32, %v500_v1  ;;  %v1575_v17 = vrot.slane %v1573_v57, 5 }
  0x7f   : > { %4020 = vmatprep.mubr.bf16.mxu1 %v3544_v29  ;;  %v1537_v38 = vshll.u32 %v1485_v33, 16  ;;  %v1551_v41 = vshll.u32 %v1487_v34, 16  ;;  %v3779_v63 = vpack.c.bf16 %v460_v52, %v460_v52  ;;  %v450_v5 = vsel %vm4649_vm2, %v3777_v55, %v449_v44  ;;  %v4346_v20 = vld [vmem:[%s5210_s3 + $0x1d0] sm:$0xff]   ;;  %v515_v27 = vld [vmem:[#allocation2 + $0x3c] sm:$0x1]  ;;  %v4349_v54 = vld [vmem:[%s5210_s3 + $0xe0] sm:$0xff]  }
  0x80   : > { %451 = vst [vmem:[#allocation2 + $0x24] sm:$0x1] %v450_v5  ;;  %v480_v11 = vadd.f32 %v4805_v32, %v478_v59  ;;  %v1584_v19 = vshrl.u32 %v1492_v2, 16  ;;  %v504_v22 = vmax.f32 %v502_v14, 0.0  ;;  %v1587_v23 = vshll.u32 %v1492_v2, 16  ;;  %v4348_v34 = vld [vmem:[%s5210_s3 + $0x1d8] sm:$0xff]  }
  0x81   : > { %4113 = vmatpush3.bf16.msra.mxu0 %v4335_v9  ;;  %v1539_v49 = vrot.slane %v1537_v38, 5  ;;  %v1553_v50 = vrot.slane %v1551_v41, 5  ;;  %v472_v9 = vsel %vm4649_vm2, %v3779_v63, %v471_v56  ;;  %v521_v24 = vmul.f32 %v4816_v39, %v3376_v3  ;;  %v4351_v59 = vld [vmem:[%s5210_s3 + $0xe8] sm:$0xff]   ;;  %v4360_v5 = vld [vmem:[#allocation2 + $0x50] ss:$8 sps:$4 sm:$0xff]  }
  0x82   : > { %4114 = vmatprep.subr.bf16.mxu0 %v4338_v25  ;;  %473 = vst [vmem:[#allocation2 + $0x2c] sm:$0x1] %v472_v9  ;;  %v482_v21 = vmax.f32 %v480_v11, 0.0  ;;  %v1598_v28 = vshrl.u32 %v1494_v15, 16  ;;  %v1601_v26 = vshll.u32 %v1494_v15, 16  ;;  %v3783_v29 = vpack.c.bf16 %v504_v22, %v504_v22  ;;  %v4354_v11 = vld [vmem:[%s5210_s3 + $0xf0] sm:$0xff]  }
  0x83   : > { %v1540_v60 = vsel %vm4788_vm5, %v1535_v35, %v1539_v49  ;;  %v1554_v61 = vsel %vm4788_vm5, %v1549_v40, %v1553_v50  ;;  %v523_v31 = vadd.f32 %v4805_v32, %v521_v24  ;;  %v1576_v12 = vor.u32 %v1575_v17, %v1572_v8  ;;  %v3412_v40 = vld [vmem:[%s4493_s30 + $0x110] sm:$0xff]  ;;  %v2732_v22 = vld [vmem:[#allocation2 + $0xc] sm:$0x1] }
  0x84   : > { %v3545_v4 = vcombine.low %v1540_v60, %v1554_v61  ;;  %v1586_v33 = vrot.slane %v1584_v19, 4  ;;  %v516_v36 = vsel %vm4649_vm2, %v3783_v29, %v515_v27  ;;  %v1589_v37 = vrot.slane %v1587_v23, 5  ;;  %v4352_v61 = vld [vmem:[%s5210_s3 + $0x1e8] sm:$0xff]   ;;  %v4356_v17 = vld [vmem:[%s5210_s3 + $0x1f0] sm:$0xff]   ;;  %v4357_v19 = vld [vmem:[%s5210_s3 + $0xf8] sm:$0xff]  }
  0x85   : > { %4115 = vmatpush3.bf16.msra.mxu0 %v4338_v25  ;;  %v1562_v25 = vor.u32 %v1561_v6, %v4966_v47  ;;  %v525_v38 = vmax.f32 %v523_v31, 0.0  ;;  %517 = vst [vmem:[#allocation2 + $0x3c] sm:$0x1] %v516_v36  ;;  %v1600_v42 = vrot.slane %v1598_v28, 4  ;;  %v1603_v43 = vrot.slane %v1601_v26, 5 }
  0x86   : > { %4124 = vmatprep.subr.bf16.mxu0 %v4341_v48  ;;  %4021 = vmatmul.mubr.bf16.vlgmr.msra.gmra.mrb[0].mxu1 %v3545_v4  ;;  %v719_v44 = vmul.f32 %v4816_v39, %v3412_v40  ;;  %v1577_v50 = vrot.slane %v1576_v12, 4  ;;  %v1590_v56 = vor.u32 %v1589_v37, %v1586_v33  ;;  %v2733_v23 = vld [vmem:[#allocation2 + $0x10] sm:$0xf]  ;;  %v2734_v24 = vld [vmem:[#allocation2 + $0x14] sm:$0x1]  ;;  %v4403_v10 = vmov 0  }
  0x87   : > { %4029 = vmatpush3.bf16.msra.mxu1 %v4934_v58  ;;  %v3781_v58 = vpack.c.bf16 %v482_v21, %v482_v21  ;;  %v1489_v41 = vld [vmem:[#allocation2 + $0x24] sm:$0x1]  ;;  %v1563_v46 = vrot.slane %v1562_v25, 4  ;;  %v3784_v49 = vpack.c.bf16 %v525_v38, %v525_v38  ;;  %v1604_v47 = vor.u32 %v1603_v43, %v1600_v42  ;;  %v2731_v21 = vld [vmem:[#allocation2 + $0x8] sm:$0xf]  ;;  %1134 = vst [vmem:[%s5094_s11] sm:$0xf] %v4403_v10 }
  0x88   : > { %4117 = vmatmul.mubr.bf16.vlgmr.msra.gmra.mrb[0].mxu0 %v4342_v51  ;;  %4030 = vmatprep.subr.bf16.mxu1 %v4343_v53  ;;  %v721_v52 = vadd.f32 %v4805_v32, %v719_v44  ;;  %v1591_v1 = vrot.slane %v1590_v56, 4  ;;  %v2748_v25 = vshrl.u32 %v2731_v21, 16  ;;  %v2751_v27 = vshll.u32 %v2731_v21, 16  ;;  %v2739_v26 = vld [vmem:[#allocation2 + $0x28] sm:$0xf] }
  0x89   : > { %4125 = vmatpush3.bf16.msra.mxu0 %v4341_v48  ;;  %4120 = vmatprep.mubr.bf16.mxu0 %v4353_v0  ;;  %v494_v35 = vsel %vm4649_vm2, %v3781_v58, %v493_v18  ;;  %v1491_v45 = vld [vmem:[#allocation2 + $0x2c] sm:$0x1]  ;;  %v1565_v48 = vshll.u32 %v1489_v41, 16  ;;  %536 = vst [vmem:[#allocation2 + $0x40] sm:$0xf] %v3784_v49  ;;  %v1605_v3 = vrot.slane %v1604_v47, 4 }
  0x8a   : > { %4126 = vmatprep.subr.bf16.mxu0 %v4344_v62  ;;  %495 = vst [vmem:[#allocation2 + $0x34] sm:$0x1] %v494_v35  ;;  %v1579_v51 = vshll.u32 %v1491_v45, 16  ;;  %v723_v57 = vmax.f32 %v721_v52, 0.0  ;;  %v4359_v18 = vld [vmem:[#allocation2 + $0x90] ss:$8 sps:$4 sm:$0xff]  }
  0x8b   : > { %4031 = vmatpush3.bf16.msra.mxu1 %v4343_v53  ;;  %v4350_v53 = vld [vmem:[%s5210_s3 + $0x1e0] sm:$0xff]   ;;  %v1567_v55 = vrot.slane %v1565_v48, 5  ;;  %v2762_v28 = vshrl.u32 %v2733_v23, 16  ;;  %v2765_v29 = vshll.u32 %v2733_v23, 16  ;;  %v2740_v31 = vld [vmem:[#allocation2 + $0x2c] sm:$0x1] }
  0x8c   : > { %4032 = vmatprep.subr.bf16.mxu1 %v4345_v16  ;;  %v1581_v39 = vrot.slane %v1579_v51, 5  ;;  %v3802_v60 = vpack.c.bf16 %v723_v57, %v723_v57  ;;  %v1495_v0 = vld [vmem:[#allocation2 + $0x3c] sm:$0x1]  ;;  %v4363_v58 = vld [vmem:[%s5210_s3 + $0x200] sm:$0xff]   ;;  %v2750_v12 = vrot.slane %v2748_v25, 4  ;;  %v2753_v33 = vrot.slane %v2751_v27, 5 }
  0x8d   : > { %4127 = vmatpush3.bf16.msra.mxu0 %v4344_v62  ;;  %v1568_v32 = vsel %vm4788_vm5, %v1563_v46, %v1567_v55  ;;  %v1607_v4 = vshll.u32 %v1495_v0, 16  ;;  %v2764_v35 = vrot.slane %v2762_v28, 4  ;;  %v2767_v37 = vrot.slane %v2765_v29, 5  ;;  %v4361_v42 = vld [vmem:[#allocation2 + $0xa0] ss:$8 sps:$4 sm:$0xff]  }
  0x8e   : > { %4128 = vmatprep.subr.bf16.mxu0 %v4346_v20  ;;  %v1582_v7 = vsel %vm4788_vm5, %v1577_v50, %v1581_v39  ;;  %734 = vst [vmem:[#allocation2 + $0x88] sm:$0xf] %v3802_v60  ;;  %v2771_v38 = vshll.u32 %v2734_v24, 16  ;;  %v2804_v40 = vshrl.u32 %v2739_v26, 16  ;;  %v2807_v41 = vshll.u32 %v2739_v26, 16 }
  0x8f   : > { %4033 = vmatpush3.bf16.msra.mxu1 %v4345_v16  ;;  %v3546_v62 = vcombine.low %v1568_v32, %v1582_v7  ;;  %v1609_v8 = vrot.slane %v1607_v4, 5  ;;  %v2754_v43 = vor.u32 %v2753_v33, %v2750_v12  ;;  %v2813_v44 = vshll.u32 %v2740_v31, 16  ;;  %v4362_v48 = vld [vmem:[#allocation2 + $0x60] ss:$8 sps:$4 sm:$0xff]   ;;  %v4365_v39 = vld [vmem:[#allocation2 + $0xb0] ss:$8 sps:$4 sm:$0xff]  }
  0x90   : > { %4034 = vmatprep.subr.bf16.mxu1 %v4347_v13  ;;  %v4355_v9 = vld [vmem:[#allocation2 + $0x38] ss:$8 sps:$4 sm:$0xff]   ;;  %v2768_v49 = vor.u32 %v2767_v37, %v2764_v35  ;;  %v2806_v50 = vrot.slane %v2804_v40, 4  ;;  %v2809_v51 = vrot.slane %v2807_v41, 5  ;;  %v2773_v7 = vrot.slane %v2771_v38, 5 }
  0x91   : > { %4129 = vmatpush3.bf16.msra.mxu0 %v4346_v20  ;;  %v1493_v63 = vld [vmem:[#allocation2 + $0x34] sm:$0x1]  ;;  %4024 = vmatprep.mubr.bf16.mxu1 %v3546_v62  ;;  %v1610_v15 = vsel %vm4788_vm5, %v1605_v3, %v1609_v8  ;;  %v4358_v20 = vld [vmem:[%s5210_s3 + $0x1f8] sm:$0xff]   ;;  %v2755_v32 = vrot.slane %v2754_v43, 4  ;;  %v2815_v62 = vrot.slane %v2813_v44, 5  ;;  %v4371_v31 = vld [vmem:[%s5210_s3 + $0x220] sm:$0xff]  }
  0x92   : > { %4130 = vmatprep.subr.bf16.mxu0 %v4348_v34  ;;  %v1593_v2 = vshll.u32 %v1493_v63, 16  ;;  %4121 = vmatmul.mubr.bf16.gmra.mrb[4].mxu0 %v4355_v9  ;;  %v2742_v36 = vld [vmem:[#allocation2 + $0x34] sm:$0x1]  ;;  %v2810_v47 = vor.u32 %v2809_v51, %v2806_v50  ;;  %v4366_v57 = vld [vmem:[#allocation2 + $0x70] ss:$8 sps:$4 sm:$0xff]  }
  0x93   : > { %4035 = vmatpush3.bf16.msra.mxu1 %v4347_v13  ;;  %4140 = vmatprep.mubr.bf16.mxu0 %v4360_v5  ;;  %v2741_v13 = vld [vmem:[#allocation2 + $0x30] sm:$0xf]  ;;  %v2827_v52 = vshll.u32 %v2742_v36, 16  ;;  %v3377_v0 = vld [vmem:[%s4493_s30 + $0x88] sm:$0x1] }
  0x94   : > { %4036 = vmatprep.subr.bf16.mxu1 %v4349_v54  ;;  %v1595_v6 = vrot.slane %v1593_v2, 5  ;;  %v2818_v45 = vshrl.u32 %v2741_v13, 16  ;;  %v2821_v46 = vshll.u32 %v2741_v13, 16  ;;  %v4367_v3 = vld [vmem:[#allocation2 + $0xc0] ss:$8 sps:$4 sm:$0xff]  }
  0x95   : > { %4131 = vmatpush3.bf16.msra.mxu0 %v4348_v34  ;;  %v2757_v34 = vshll.u32 %v2732_v22, 16  ;;  %v2829_v63 = vrot.slane %v2827_v52, 5  ;;  %v4368_v9 = vld [vmem:[#allocation2 + $0x80] ss:$8 sps:$4 sm:$0xff]   ;;  %v537_v27 = vld [vmem:[#allocation2 + $0x44] sm:$0x1] }
  0x96   : > { %4132 = vmatprep.subr.bf16.mxu0 %v4350_v53  ;;  %v1596_v14 = vsel %vm4788_vm5, %v1591_v1, %v1595_v6  ;;  %v2823_v55 = vrot.slane %v2821_v46, 5  ;;  %v4369_v1 = vld [vmem:[%s5210_s3 + $0x210] sm:$0xff]   ;;  %v4377_v6 = vld [vmem:[%s5208_s1] ss:$0 sm:$0xff]  ;;  %v4372_v36 = vld [vmem:[%s5210_s3 + $0x228] sm:$0xff]  }
  0x97   : > { %4037 = vmatpush3.bf16.msra.mxu1 %v4349_v54  ;;  %v3547_v16 = vcombine.low %v1596_v14, %v1610_v15  ;;  %v4364_v54 = vld [vmem:[%s5210_s3 + $0x208] sm:$0xff]   ;;  %v2759_v56 = vrot.slane %v2757_v34, 5  ;;  %v522_v8 = vmul.f32 %v4377_v6, %v3377_v0  ;;  %v2735_v15 = vld [vmem:[#allocation2 + $0x18] sm:$0xf]  ;;  %v2737_v22 = vld [vmem:[#allocation2 + $0x20] sm:$0xf] }
  0x98   : > { %4038 = vmatprep.subr.bf16.mxu1 %v4351_v59  ;;  %v2776_v24 = vshrl.u32 %v2735_v15, 16  ;;  %v2779_v13 = vshll.u32 %v2735_v15, 16  ;;  %v2790_v12 = vshrl.u32 %v2737_v22, 16  ;;  %v2793_v33 = vshll.u32 %v2737_v22, 16  ;;  %v2744_v46 = vld [vmem:[#allocation2 + $0x3c] sm:$0x1] }
  0x99   : > { %4133 = vmatpush3.bf16.msra.mxu0 %v4350_v53  ;;  %4025 = vmatmul.mubr.bf16.gmra.mrb[4].mxu1 %v3547_v16  ;;  %v2820_v53 = vrot.slane %v2818_v45, 4  ;;  %v2760_v4 = vsel %vm4788_vm5, %v2755_v32, %v2759_v56  ;;  %v4370_v16 = vld [vmem:[%s5210_s3 + $0x218] sm:$0xff]   ;;  %v2841_v51 = vshll.u32 %v2744_v46, 16  ;;  %1135 = vst [vmem:[%s5094_s11 + $0x4] sm:$0x1] %v4403_v10 }
  0x9a   : > { %4134 = vmatprep.subr.bf16.mxu0 %v4352_v61  ;;  %4044 = vmatprep.mubr.bf16.mxu1 %v4359_v18  ;;  %v2781_v43 = vrot.slane %v2779_v13, 5  ;;  %v2792_v44 = vrot.slane %v2790_v12, 4  ;;  %v2795_v45 = vrot.slane %v2793_v33, 5  ;;  %1140 = vst [vmem:[%s5094_s11 + $0x18] sm:$0xf] %v4403_v10 }
  0x9b   : > { %4039 = vmatpush3.bf16.msra.mxu1 %v4351_v59  ;;  %v2769_v59 = vrot.slane %v2768_v49, 4  ;;  %v2824_v60 = vor.u32 %v2823_v55, %v2820_v53  ;;  %v2738_v49 = vld [vmem:[#allocation2 + $0x24] sm:$0x1]  ;;  %v2843_v32 = vrot.slane %v2841_v51, 5  ;;  %1141 = vst [vmem:[%s5094_s11 + $0x1c] sm:$0x1] %v4403_v10 }
  0x9c   : > { %4040 = vmatprep.subr.bf16.mxu1 %v4354_v11  ;;  %v2799_v56 = vshll.u32 %v2738_v49, 16  ;;  %1152 = vst [vmem:[%s5094_s11 + $0x48] sm:$0xf] %v4403_v10  ;;  %1153 = vst [vmem:[%s5094_s11 + $0x4c] sm:$0x1] %v4403_v10 }
  0x9d   : > { %4135 = vmatpush3.bf16.msra.mxu0 %v4352_v61  ;;  %v2811_v61 = vrot.slane %v2810_v47, 4  ;;  %v2825_v2 = vrot.slane %v2824_v60, 4  ;;  %v2774_v5 = vsel %vm4788_vm5, %v2769_v59, %v2773_v7  ;;  %v4374_v60 = vld [vmem:[%s5210_s3 + $0x238] sm:$0xff]   ;;  %1136 = vst [vmem:[%s5094_s11 + $0x8] sm:$0xf] %v4403_v10 }
  0x9e   : > { %4136 = vmatprep.subr.bf16.mxu0 %v4356_v17  ;;  %v3712_v21 = vcombine.low %v2760_v4, %v2774_v5  ;;  %v2801_v0 = vrot.slane %v2799_v56, 5  ;;  %1137 = vst [vmem:[%s5094_s11 + $0xc] sm:$0x1] %v4403_v10  ;;  %1138 = vst [vmem:[%s5094_s11 + $0x10] sm:$0xf] %v4403_v10 }
  0x9f   : > { %4041 = vmatpush3.bf16.msra.mxu1 %v4354_v11  ;;  %v2816_v11 = vsel %vm4788_vm5, %v2811_v61, %v2815_v62  ;;  %v2830_v14 = vsel %vm4788_vm5, %v2825_v2, %v2829_v63  ;;  %1139 = vst [vmem:[%s5094_s11 + $0x14] sm:$0x1] %v4403_v10  ;;  %1142 = vst [vmem:[%s5094_s11 + $0x20] sm:$0xf] %v4403_v10  ;;  %v3725_v12 = vld [vmem:[%s5212_s5] ss:$0 sm:$0xff] }
  0xa0   : > { %4042 = vmatprep.subr.bf16.mxu1 %v4357_v19  ;;  %v3714_v23 = vcombine.low %v2816_v11, %v2830_v14  ;;  %1143 = vst [vmem:[%s5094_s11 + $0x24] sm:$0x1] %v4403_v10  ;;  %1144 = vst [vmem:[%s5094_s11 + $0x28] sm:$0xf] %v4403_v10 }
  0xa1   : > { %4137 = vmatpush3.bf16.msra.mxu0 %v4356_v17  ;;  %v4378_v17 = vld [vmem:[%s5209_s2] ss:$0 sm:$0xff]  ;;  %1145 = vst [vmem:[%s5094_s11 + $0x2c] sm:$0x1] %v4403_v10  ;;  %1146 = vst [vmem:[%s5094_s11 + $0x30] sm:$0xf] %v4403_v10 }
  0xa2   : > { %4138 = vmatprep.subr.bf16.mxu0 %v4358_v20  ;;  %v524_v18 = vadd.f32 %v4378_v17, %v522_v8  ;;  %1147 = vst [vmem:[%s5094_s11 + $0x34] sm:$0x1] %v4403_v10  ;;  %1148 = vst [vmem:[%s5094_s11 + $0x38] sm:$0xf] %v4403_v10 }
  0xa3   : > { %4043 = vmatpush3.bf16.msra.mxu1 %v4357_v19  ;;  %v2743_v19 = vld [vmem:[#allocation2 + $0x38] sm:$0xf]  ;;  %1149 = vst [vmem:[%s5094_s11 + $0x3c] sm:$0x1] %v4403_v10  ;;  %1150 = vst [vmem:[%s5094_s11 + $0x40] sm:$0xf] %v4403_v10 }
  0xa4   : > { %4172 = vmatprep.subr.bf16.mxu1 %v4363_v58  ;;  %v526_v25 = vmax.f32 %v524_v18, 0.0  ;;  %v2832_v28 = vshrl.u32 %v2743_v19, 16  ;;  %v2835_v26 = vshll.u32 %v2743_v19, 16  ;;  %1151 = vst [vmem:[%s5094_s11 + $0x44] sm:$0x1] %v4403_v10 }
  0xa5   : > { %4139 = vmatpush3.bf16.msra.mxu0 %v4358_v20  ;;  %v2745_v20 = vld [vmem:[#allocation2 + $0x40] sm:$0xf] }
  0xa6   : > { %4148 = vmatprep.subr.bf16.mxu0 %v4363_v58  ;;  %4045 = vmatmul.mubr.bf16.vlgmr.msra.gmra.mrb[0].mxu1 %v4361_v42  ;;  %v2849_v29 = vshll.u32 %v2745_v20, 16  ;;  %v3785_v34 = vpack.c.bf16 %v526_v25, %v526_v25  ;;  %v2834_v37 = vrot.slane %v2832_v28, 4  ;;  %v2837_v38 = vrot.slane %v2835_v26, 5  ;;  %v3724_v26 = vld [vmem:[%s5211_s4] ss:$0 sm:$0xff] }
  0xa7   : > { %4180 = vmatpush3.bf16.msra.mxu1 %v4363_v58  ;;  %4048 = vmatprep.mubr.bf16.mxu1 %v4365_v39  ;;  %v2778_v42 = vrot.slane %v2776_v24, 4  ;;  %v2796_v39 = vor.u32 %v2795_v45, %v2792_v44 }
  0xa8   : > { %4141 = vmatmul.mubr.bf16.vlgmr.msra.gmra.mrb[0].mxu0 %v4362_v48  ;;  %4173 = vmatprep.subr.bf16.mxu1 %v4364_v54  ;;  %v538_v35 = vsel %vm4649_vm2, %v3785_v34, %v537_v27  ;;  %v2851_v41 = vrot.slane %v2849_v29, 5  ;;  %v2736_v48 = vld [vmem:[#allocation2 + $0x1c] sm:$0x1]  ;;  %v2838_v50 = vor.u32 %v2837_v38, %v2834_v37 }
  0xa9   : > { %4149 = vmatpush3.bf16.msra.mxu0 %v4363_v58  ;;  %4144 = vmatprep.mubr.bf16.mxu0 %v4366_v57  ;;  %v2846_v58 = vshrl.u32 %v2745_v20, 16  ;;  %539 = vst [vmem:[#allocation2 + $0x44] sm:$0x1] %v538_v35  ;;  %v2782_v53 = vor.u32 %v2781_v43, %v2778_v42  ;;  %v2785_v55 = vshll.u32 %v2736_v48, 16  ;;  %v2797_v63 = vrot.slane %v2796_v39, 4 }
  0xaa   : > { %4150 = vmatprep.subr.bf16.mxu0 %v4364_v54  ;;  %v2839_v57 = vrot.slane %v2838_v50, 4 }
  0xab   : > { %4181 = vmatpush3.bf16.msra.mxu1 %v4364_v54  ;;  %v2848_v40 = vrot.slane %v2846_v58, 4  ;;  %v2783_v61 = vrot.slane %v2782_v53, 4  ;;  %v2787_v62 = vrot.slane %v2785_v55, 5  ;;  %v2802_v5 = vsel %vm4788_vm5, %v2797_v63, %v2801_v0 }
  0xac   : > { %4174 = vmatprep.subr.bf16.mxu1 %v4369_v1  ;;  %v2844_v2 = vsel %vm4788_vm5, %v2839_v57, %v2843_v32 }
  0xad   : > { %4151 = vmatpush3.bf16.msra.mxu0 %v4364_v54  ;;  %v2852_v52 = vor.u32 %v2851_v41, %v2848_v40  ;;  %v4373_v54 = vld [vmem:[%s5210_s3 + $0x230] sm:$0xff]   ;;  %v2788_v4 = vsel %vm4788_vm5, %v2783_v61, %v2787_v62 }
  0xae   : > { %4152 = vmatprep.subr.bf16.mxu0 %v4369_v1  ;;  %4049 = vmatmul.mubr.bf16.gmra.mrb[4].mxu1 %v4367_v3  ;;  %v3713_v8 = vcombine.low %v2788_v4, %v2802_v5 }
  0xaf   : > { %4182 = vmatpush3.bf16.msra.mxu1 %v4369_v1  ;;  %4168 = vmatprep.mubr.bf16.mxu1 %v3714_v23  ;;  %v2853_v59 = vrot.slane %v2852_v52, 4 }
  0xb0   : > { %4145 = vmatmul.mubr.bf16.gmra.mrb[4].mxu0 %v4368_v9  ;;  %4175 = vmatprep.subr.bf16.mxu1 %v4370_v16  ;;  %v2746_v47 = vld [vmem:[#allocation2 + $0x44] sm:$0x1] }
  0xb1   : > { %4153 = vmatpush3.bf16.msra.mxu0 %v4369_v1  ;;  %4164 = vmatprep.mubr.bf16.mxu0 %v3712_v21  ;;  %v2855_v7 = vshll.u32 %v2746_v47, 16 }
  0xb2   : > { %4154 = vmatprep.subr.bf16.mxu0 %v4370_v16 }
  0xb3   : > { %4183 = vmatpush3.bf16.msra.mxu1 %v4370_v16  ;;  %v2857_v1 = vrot.slane %v2855_v7, 5 }
  0xb4   : > { %4176 = vmatprep.subr.bf16.mxu1 %v4371_v31 }
  0xb5   : > { %4155 = vmatpush3.bf16.msra.mxu0 %v4370_v16  ;;  %v2858_v3 = vsel %vm4788_vm5, %v2853_v59, %v2857_v1 }
  0xb6   : > { %4156 = vmatprep.subr.bf16.mxu0 %v4371_v31  ;;  %v3715_v6 = vcombine.low %v2844_v2, %v2858_v3 }
  0xb7   : > { %4184 = vmatpush3.bf16.msra.mxu1 %v4371_v31 }
  0xb8   : > { %4177 = vmatprep.subr.bf16.mxu1 %v4372_v36 }
  0xb9   : > { %4157 = vmatpush3.bf16.msra.mxu0 %v4371_v31 }
  0xba   : > { %4158 = vmatprep.subr.bf16.mxu0 %v4372_v36 }
  0xbb   : > { %4185 = vmatpush3.bf16.msra.mxu1 %v4372_v36 }
  0xbc   : > { %4178 = vmatprep.subr.bf16.mxu1 %v4373_v54 }
  0xbd   : > { %4159 = vmatpush3.bf16.msra.mxu0 %v4372_v36 }
  0xbe   : > { %4160 = vmatprep.subr.bf16.mxu0 %v4373_v54 }
  0xbf   : > { %4186 = vmatpush3.bf16.msra.mxu1 %v4373_v54 }
  0xc0   : > { %4179 = vmatprep.subr.bf16.mxu1 %v4374_v60 }
  0xc1   : > { %4161 = vmatpush3.bf16.msra.mxu0 %v4373_v54 }
  0xc2   : > { %4162 = vmatprep.subr.bf16.mxu0 %v4374_v60 }
  0xc3   : > { %4187 = vmatpush3.bf16.msra.mxu1 %v4374_v60 }
  0xc5   : > { %4163 = vmatpush3.bf16.msra.mxu0 %v4374_v60 }
  0xc6   : > { %4169 = vmatmul.mubr.bf16.vlgmr.msra.gmra.mrb[8].mxu1 %v3715_v6 }
  0xc8   : > { %4165 = vmatmul.mubr.bf16.vlgmr.msra.gmra.mrb[0].mxu0 %v3713_v8 }
 0x179   : > { %v4046_v9 = vpop.f32.mrb[0].mxu1 }
 0x17a   : > { %v1897_v11 = vpop.f32.mrb[1].mxu1 }
 0x17b   : > { %v4047_v14 = vpop.f32.mrb[2].mxu1 }
 0x17c   : > { %v1900_v15 = vpop.f32.mrb[3].mxu1 }
 0x181   : > { %v4050_v16 = vpop.f32.mrb[4].mxu1 }
 0x182   : > { %v1913_v18 = vpop.f32.mrb[5].mxu1 }
 0x183   : > { %v4146_v17 = vpop.f32.mrb[4].mxu0  ;;  %v4051_v21 = vpop.f32.mrb[6].mxu1 }
 0x184   : > { %v4192_v19 = vadd.f32 %v4146_v17, %v4050_v16  ;;  %v2708_v20 = vpop.f32.mrb[5].mxu0  ;;  %v1916_v24 = vpop.f32.mrb[7].mxu1  ;;  %v3742_v17 = vld [vmem:[%s5094_s11 + $0x18] sm:$0xf] }
 0x185   : > { %v4194_v22 = vadd.f32 %v2708_v20, %v1913_v18  ;;  %v4147_v23 = vpop.f32.mrb[6].mxu0  ;;  %v3744_v18 = vld [vmem:[%s5094_s11 + $0x1c] sm:$0x1] }
 0x186   : > { %v4196_v25 = vadd.f32 %v4147_v23, %v4051_v21  ;;  %v2711_v27 = vpop.f32.mrb[7].mxu0  ;;  %v3760_v20 = vld [vmem:[%s5094_s11 + $0x3c] sm:$0x1] }
 0x187   : > { %v4198_v28 = vadd.f32 %v2711_v27, %v1916_v24 }
 0x199   : > { %v4170_v58 = vpop.f32.mrb[8].mxu1 }
 0x19a   : > { %v4193_v31 = vadd.f32 %v4192_v19, %v4170_v58  ;;  %v2990_v13 = vpop.f32.mrb[9].mxu1 }
 0x19b   : > { %v4166_v29 = vpop.f32.mrb[0].mxu0  ;;  %v4195_v35 = vadd.f32 %v4194_v22, %v2990_v13  ;;  %v4171_v36 = vpop.f32.mrb[10].mxu1 }
 0x19c   : > { %v4188_v33 = vadd.f32 %v4166_v29, %v4046_v9  ;;  %v2974_v34 = vpop.f32.mrb[1].mxu0  ;;  %v3025_v37 = vmul.f32 %v4193_v31, %v3724_v26  ;;  %v4197_v41 = vadd.f32 %v4196_v25, %v4171_v36  ;;  %v2993_v42 = vpop.f32.mrb[11].mxu1  ;;  %v3734_v36 = vld [vmem:[%s5094_s11 + $0x8] sm:$0xf] }
 0x19d   : > { %v4189_v38 = vadd.f32 %v2974_v34, %v1897_v11  ;;  %v4167_v40 = vpop.f32.mrb[2].mxu0  ;;  %v3023_v44 = vmul.f32 %v4195_v35, %v3724_v26  ;;  %v4199_v48 = vadd.f32 %v4198_v28, %v2993_v42 }
 0x19e   : > { %v3021_v43 = vmul.f32 %v4188_v33, %v3724_v26  ;;  %v4190_v45 = vadd.f32 %v4167_v40, %v4047_v14  ;;  %v2977_v46 = vpop.f32.mrb[3].mxu0  ;;  %v3039_v49 = vadd.f32 %v3725_v12, %v3025_v37  ;;  %v3026_v51 = vmul.f32 %v4197_v41, %v3724_v26  ;;  %v3736_v37 = vld [vmem:[%s5094_s11 + $0xc] sm:$0x1] }
 0x19f   : > { %v3019_v50 = vmul.f32 %v4189_v38, %v3724_v26  ;;  %v4191_v52 = vadd.f32 %v2977_v46, %v1900_v15  ;;  %v3037_v53 = vadd.f32 %v3725_v12, %v3023_v44  ;;  %v3024_v39 = vmul.f32 %v4199_v48, %v3724_v26  ;;  %v3758_v15 = vld [vmem:[%s5094_s11 + $0x38] sm:$0xf] }
 0x1a0   : > { %v3035_v54 = vadd.f32 %v3725_v12, %v3021_v43  ;;  %v3022_v55 = vmul.f32 %v4190_v45, %v3724_v26  ;;  %v3047_v56 = vmax.f32 %v3039_v49, 0.0  ;;  %v3040_v57 = vadd.f32 %v3725_v12, %v3026_v51 }
 0x1a1   : > { %v3033_v47 = vadd.f32 %v3725_v12, %v3019_v50  ;;  %v3020_v32 = vmul.f32 %v4191_v52, %v3724_v26  ;;  %v3045_v7 = vmax.f32 %v3037_v53, 0.0  ;;  %v5122_v61 = vadd.f32 %v3725_v12, %v3024_v39  ;;  %v3750_v26 = vld [vmem:[%s5094_s11 + $0x28] sm:$0xf]  ;;  %v3746_v53 = vld [vmem:[%s5094_s11 + $0x20] sm:$0xf] }
 0x1a2   : > { %v3043_v59 = vmax.f32 %v3035_v54, 0.0  ;;  %v3036_v60 = vadd.f32 %v3725_v12, %v3022_v55  ;;  %v3846_v62 = vpack.c.bf16 %v3047_v56, %v3047_v56  ;;  %v3048_v0 = vmax.f32 %v3040_v57, 0.0  ;;  %v3748_v55 = vld [vmem:[%s5094_s11 + $0x24] sm:$0x1] }
 0x1a3   : > { %v3041_v63 = vmax.f32 %v3033_v47, 0.0  ;;  %v3844_v2 = vpack.c.bf16 %v3045_v7, %v3045_v7  ;;  %v5124_v4 = vadd.f32 %v3725_v12, %v3020_v32  ;;  %v3046_v10 = vmax.f32 %v5122_v61, 0.0  ;;  %v3752_v12 = vld [vmem:[%s5094_s11 + $0x2c] sm:$0x1]  ;;  %v3762_v7 = vld [vmem:[%s5094_s11 + $0x40] sm:$0xf] }
 0x1a4   : > { %v3842_v1 = vpack.c.bf16 %v3043_v59, %v3043_v59  ;;  %v3044_v3 = vmax.f32 %v3036_v60, 0.0  ;;  %v3130_v5 = vshrl.u32 %v3846_v62, 16  ;;  %v3847_v8 = vpack.c.bf16 %v3048_v0, %v3048_v0  ;;  %v3764_v60 = vld [vmem:[%s5094_s11 + $0x44] sm:$0x1] }
 0x1a5   : > { %v3840_v6 = vpack.c.bf16 %v3041_v63, %v3041_v63  ;;  %v3133_v14 = vshll.u32 %v3846_v62, 16  ;;  %v3114_v16 = vshrl.u32 %v3844_v2, 16  ;;  %v3117_v22 = vshll.u32 %v3844_v2, 16 }
 0x1a6   : > { %v3098_v9 = vshrl.u32 %v3842_v1, 16  ;;  %v3101_v11 = vshll.u32 %v3842_v1, 16  ;;  %v3132_v19 = vrot.slane %v3130_v5, 7  ;;  %v3843_v23 = vpack.c.bf16 %v3044_v3, %v3044_v3 }
 0x1a7   : > { %v3082_v21 = vshrl.u32 %v3840_v6, 16  ;;  %v3085_v27 = vshll.u32 %v3840_v6, 16  ;;  %v3116_v28 = vrot.slane %v3114_v16, 7  ;;  %v3138_v58 = vshrl.u32 %v3847_v8, 16  ;;  %v3740_v16 = vld [vmem:[%s5094_s11 + $0x14] sm:$0x1] }
 0x1a8   : > { %v3100_v24 = vrot.slane %v3098_v9, 7  ;;  %v3135_v29 = vor.u32 %v3133_v14, %v3132_v19  ;;  %v3136_v31 = vrot.slane %v3132_v19, 4  ;;  %v3106_v33 = vshrl.u32 %v3843_v23, 16  ;;  %v3756_v14 = vld [vmem:[%s5094_s11 + $0x34] sm:$0x1] }
 0x1a9   : > { %v3084_v13 = vrot.slane %v3082_v21, 7  ;;  %v3119_v38 = vor.u32 %v3117_v22, %v3116_v28  ;;  %v3120_v40 = vrot.slane %v3116_v28, 4  ;;  %v3109_v54 = vshll.u32 %v3843_v23, 16 }
 0x1aa   : > { %v3103_v34 = vor.u32 %v3101_v11, %v3100_v24  ;;  %v3104_v35 = vrot.slane %v3100_v24, 4  ;;  %v3205_v41 = vsel %vm5133_vm8, %v3135_v29, %v3758_v15  ;;  %v3208_v42 = vsel %vm4649_vm2, %v3136_v31, %v3760_v20  ;;  %v3754_v11 = vld [vmem:[%s5094_s11 + $0x30] sm:$0xf] }
 0x1ab   : > { %v3087_v43 = vor.u32 %v3085_v27, %v3084_v13  ;;  %v3088_v44 = vrot.slane %v3084_v13, 4  ;;  %3759 = vst [vmem:[%s5094_s11 + $0x38] sm:$0xf] %v3205_v41  ;;  %3761 = vst [vmem:[%s5094_s11 + $0x3c] sm:$0x1] %v3208_v42  ;;  %v3193_v48 = vsel %vm5133_vm8, %v3119_v38, %v3750_v26  ;;  %v3196_v49 = vsel %vm4649_vm2, %v3120_v40, %v3752_v12 }
 0x1ac   : > { %v3181_v45 = vsel %vm5133_vm8, %v3103_v34, %v3742_v17  ;;  %v3184_v46 = vsel %vm4649_vm2, %v3104_v35, %v3744_v18  ;;  %3751 = vst [vmem:[%s5094_s11 + $0x28] sm:$0xf] %v3193_v48  ;;  %3753 = vst [vmem:[%s5094_s11 + $0x2c] sm:$0x1] %v3196_v49  ;;  %v3108_v52 = vrot.slane %v3106_v33, 7  ;;  %v3140_v39 = vrot.slane %v3138_v58, 7 }
 0x1ad   : > { %3743 = vst [vmem:[%s5094_s11 + $0x18] sm:$0xf] %v3181_v45  ;;  %3745 = vst [vmem:[%s5094_s11 + $0x1c] sm:$0x1] %v3184_v46  ;;  %v3166_v50 = vsel %vm5133_vm8, %v3087_v43, %v3734_v36  ;;  %v3172_v51 = vsel %vm4649_vm2, %v3088_v44, %v3736_v37  ;;  %v3141_v56 = vshll.u32 %v3847_v8, 16  ;;  %v3042_v47 = vmax.f32 %v5124_v4, 0.0 }
 0x1ae   : > { %3735 = vst [vmem:[%s5094_s11 + $0x8] sm:$0xf] %v3166_v50  ;;  %3737 = vst [vmem:[%s5094_s11 + $0xc] sm:$0x1] %v3172_v51  ;;  %v3845_v57 = vpack.c.bf16 %v3046_v10, %v3046_v10  ;;  %v3111_v32 = vor.u32 %v3109_v54, %v3108_v52  ;;  %v3112_v59 = vrot.slane %v3108_v52, 4  ;;  %v3144_v62 = vrot.slane %v3140_v39, 4 }
 0x1af   : > { %v3143_v61 = vor.u32 %v3141_v56, %v3140_v39  ;;  %v3841_v63 = vpack.c.bf16 %v3042_v47, %v3042_v47  ;;  %v3738_v15 = vld [vmem:[%s5094_s11 + $0x10] sm:$0xf] }
 0x1b0   : > { %v3122_v0 = vshrl.u32 %v3845_v57, 16  ;;  %v3187_v1 = vsel %vm5133_vm8, %v3111_v32, %v3746_v53  ;;  %v3190_v2 = vsel %vm4649_vm2, %v3112_v59, %v3748_v55  ;;  %v3214_v4 = vsel %vm4649_vm2, %v3144_v62, %v3764_v60 }
 0x1b1   : > { %3747 = vst [vmem:[%s5094_s11 + $0x20] sm:$0xf] %v3187_v1  ;;  %3749 = vst [vmem:[%s5094_s11 + $0x24] sm:$0x1] %v3190_v2  ;;  %v3211_v3 = vsel %vm5133_vm8, %v3143_v61, %v3762_v7  ;;  %v3090_v5 = vshrl.u32 %v3841_v63, 16  ;;  %v3125_v8 = vshll.u32 %v3845_v57, 16 }
 0x1b2   : > { %3763 = vst [vmem:[%s5094_s11 + $0x40] sm:$0xf] %v3211_v3  ;;  %3765 = vst [vmem:[%s5094_s11 + $0x44] sm:$0x1] %v3214_v4  ;;  %v3124_v6 = vrot.slane %v3122_v0, 7  ;;  %v3093_v9 = vshll.u32 %v3841_v63, 16 }
 0x1b3   : > { %v3092_v10 = vrot.slane %v3090_v5, 7 }
 0x1b4   : > { %v3127_v17 = vor.u32 %v3125_v8, %v3124_v6  ;;  %v3128_v18 = vrot.slane %v3124_v6, 4 }
 0x1b5   : > { %v3095_v19 = vor.u32 %v3093_v9, %v3092_v10  ;;  %v3096_v20 = vrot.slane %v3092_v10, 4 }
 0x1b6   : > { %v3199_v21 = vsel %vm5133_vm8, %v3127_v17, %v3754_v11  ;;  %v3202_v22 = vsel %vm4649_vm2, %v3128_v18, %v3756_v14 }
 0x1b7   : > { %v3175_v23 = vsel %vm5133_vm8, %v3095_v19, %v3738_v15  ;;  %v3178_v24 = vsel %vm4649_vm2, %v3096_v20, %v3740_v16  ;;  %3755 = vst [vmem:[%s5094_s11 + $0x30] sm:$0xf] %v3199_v21  ;;  %3757 = vst [vmem:[%s5094_s11 + $0x34] sm:$0x1] %v3202_v22 }
 0x1b8   : > { %3739 = vst [vmem:[%s5094_s11 + $0x10] sm:$0xf] %v3175_v23  ;;  %3741 = vst [vmem:[%s5094_s11 + $0x14] sm:$0x1] %v3178_v24 }
 0x1b9 PF: > { %s16_s23 = sadd.s32 1, %s4401_s23   ;;  %s5220_s21 = smov %s4397_s22 }
 0x1ba   : > { %p13_p6 = scmp.ge.s32.totalorder %s16_s23, 4   ;;  %s5221_s22 = smov %s5223_s24 }
 0x1bc   :  { %15 = sbr.rel (!%p13_p6) target bundleno = 2 (0x2), region = 171 }

</bundles_post_ra>
